<compile_context>
chip_gen: v7x
topology: tpu7x:2x2x1
jax: 0.10.0
libtpu: 0.0.40
codegen_flags: <defaults>
</compile_context>

<pallas_src>
import numpy as np

import jax
import jax.numpy as jnp
from jax.experimental import pallas as pl
from jax.experimental.pallas import tpu as pltpu


# --------------------------------------------------------------------------
# Kernel 1: fused conv0 + ReLU + maxpool + conv1 (+residual) + ReLU + conv2
# --------------------------------------------------------------------------

def _conv_stack_kernel(x0_ref, t0_ref, sdown_ref, a1_ref, t1_ref, a2_ref,
                       t2_ref, sh0_ref, sh1_ref, sh2_ref, mask_ref, o_ref):
    f32, bf16 = jnp.float32, jnp.bfloat16

    # conv0 (+ folded BN scale), evaluated at (h, w) and (h, w+1) in one matmul
    y0 = jnp.dot(x0_ref[0], t0_ref[0], preferred_element_type=f32)
    for kh in (1, 2):
        y0 = y0 + jnp.dot(x0_ref[kh], t0_ref[kh], preferred_element_type=f32)
    sh0 = sh0_ref[...]
    y0a = jnp.maximum(y0[:, :512] + sh0, 0.0)      # relu(BN(conv0)) at (h, w)
    y0b = jnp.maximum(y0[:, 512:] + sh0, 0.0)      # relu(BN(conv0)) at (h, w+1)

    # 2x2 max-pool: pair-max over w, then pair-max over h (row shift via matmul)
    p = jnp.maximum(y0a, y0b)
    pd = jnp.dot(sdown_ref[...], p.astype(bf16), preferred_element_type=f32)
    q = jnp.maximum(p, pd).astype(bf16)            # pooled activation (all phases)

    # conv1 + BN + residual (identity folded into the centre tap) + ReLU
    y1 = None
    for kh in range(3):
        xk = jnp.dot(a1_ref[kh], q, preferred_element_type=f32).astype(bf16)
        z = jnp.dot(xk, t1_ref[kh], preferred_element_type=f32)
        y1 = z if y1 is None else y1 + z
    x2 = (jnp.maximum(y1 + sh1_ref[...], 0.0) * mask_ref[...]).astype(bf16)

    # conv2 + BN (no ReLU, matching the reference model)
    y2 = None
    for kh in range(3):
        xk = jnp.dot(a2_ref[kh], x2, preferred_element_type=f32).astype(bf16)
        z = jnp.dot(xk, t2_ref[kh], preferred_element_type=f32)
        y2 = z if y2 is None else y2 + z
    o_ref[...] = y2 + sh2_ref[...]


def conv_stack_pallas(x0, t0, sdown, a1, t1, a2, t2, sh0, sh1, sh2, mask):
    args = (x0, t0, sdown, a1, t1, a2, t2, sh0, sh1, sh2, mask)
    r1 = mask.shape[0]

    def full_spec(a):
        zeros = (0,) * a.ndim
        return pl.BlockSpec(a.shape, lambda i, _z=zeros: _z)

    return pl.pallas_call(
        _conv_stack_kernel,
        out_shape=jax.ShapeDtypeStruct((r1, 512), jnp.float32),
        grid=(1,),
        in_specs=[full_spec(a) for a in args],
        out_specs=pl.BlockSpec((r1, 512), lambda i: (0, 0)),
        compiler_params=pltpu.CompilerParams(dimension_semantics=("arbitrary",)),
    )(*args)


# --------------------------------------------------------------------------
# Kernel 2: FC head (3 Linears + ReLUs + Softmax), fc1 K-tiled, bf16 weights
# --------------------------------------------------------------------------

def _mlp_kernel(x_ref, w1_ref, b1_ref, w2_ref, b2_ref, w3_ref, b3_ref,
                o_ref, acc_ref):
    k = pl.program_id(0)

    @pl.when(k == 0)
    def _():
        acc_ref[...] = jnp.zeros_like(acc_ref)

    # K-tiled first Linear (6272 -> 512), bf16 MXU operands, f32 accumulation.
    acc_ref[...] += jnp.dot(x_ref[0], w1_ref[0],
                            preferred_element_type=jnp.float32)

    @pl.when(k == pl.num_programs(0) - 1)
    def _():
        h1 = jnp.maximum(acc_ref[...] + b1_ref[...], 0.0)
        h2 = jnp.maximum(
            jnp.dot(h1.astype(jnp.bfloat16), w2_ref[...],
                    preferred_element_type=jnp.float32) + b2_ref[...], 0.0)
        logits = (jnp.dot(h2, w3_ref[...], preferred_element_type=jnp.float32)
                  + b3_ref[...])
        m = jnp.max(logits, axis=1, keepdims=True)
        e = jnp.exp(logits - m)
        o_ref[...] = e / jnp.sum(e, axis=1, keepdims=True)   # Softmax(dim=1)


def mlp_softmax_pallas(x3d, w1, b1, w2, b2, w3, b3):
    kt, n, tk = x3d.shape
    h1, h2, o = w1.shape[2], w2.shape[1], w3.shape[1]
    return pl.pallas_call(
        _mlp_kernel,
        out_shape=jax.ShapeDtypeStruct((n, o), jnp.float32),
        grid=(kt,),
        in_specs=[
            pl.BlockSpec((1, n, tk), lambda k: (k, 0, 0)),
            pl.BlockSpec((1, tk, h1), lambda k: (k, 0, 0)),
            pl.BlockSpec((1, h1), lambda k: (0, 0)),
            pl.BlockSpec((h1, h2), lambda k: (0, 0)),
            pl.BlockSpec((1, h2), lambda k: (0, 0)),
            pl.BlockSpec((h2, o), lambda k: (0, 0)),
            pl.BlockSpec((1, o), lambda k: (0, 0)),
        ],
        out_specs=pl.BlockSpec((n, o), lambda k: (0, 0)),
        scratch_shapes=[pltpu.VMEM((n, h1), jnp.float32)],
        compiler_params=pltpu.CompilerParams(dimension_semantics=("arbitrary",)),
    )(x3d, w1, b1, w2, b2, w3, b3)


# --------------------------------------------------------------------------
# Init-time construction of the banded conv matrices (BN scale folded in)
# --------------------------------------------------------------------------
# Slab layouts used by the conv kernel (zero borders act as conv padding):
#   conv0 input  : rows = n*32 + hp (image h = hp-1),  lanes = wq (image w = wq-1)
#   conv0 output : rows as above, lanes = wq*16 + c
#   conv1/2 i/o  : rows = n*16 + rp (image i = rp-1),  lanes = jp*C + c (image j = jp-1)

def _build_t0(ws0):          # ws0: (3,3,1,16).  columns = [conv@(h,w) | conv@(h,w+1)]
    t = np.zeros((3, 32, 1024), np.float32)
    for kh in range(3):
        for kw in range(3):
            for wq in range(1, 29):
                t[kh, wq + kw - 1, wq * 16:(wq + 1) * 16] += ws0[kh, kw, 0]
                t[kh, wq + kw, 512 + wq * 16:512 + (wq + 1) * 16] += ws0[kh, kw, 0]
    return t


def _build_t1(ws1):          # ws1: (3,3,16,16); input lanes are in pooled-Q layout
    w = np.array(ws1, np.float32, copy=True)
    w[1, 1] += np.eye(16, dtype=np.float32)        # residual x1 folded into centre tap
    t = np.zeros((3, 512, 256), np.float32)
    for kh in range(3):
        for kw in range(3):
            for jp in range(1, 15):
                j_in = jp + kw - 2
                if 0 <= j_in <= 13:
                    li = (2 * j_in + 1) * 16       # x1[:, :, j_in, :] lives at lane (2*j_in+1)*16
                    t[kh, li:li + 16, jp * 16:(jp + 1) * 16] += w[kh, kw]
    return t


def _build_t2(ws2):          # ws2: (3,3,16,32)
    t = np.zeros((3, 256, 512), np.float32)
    for kh in range(3):
        for kw in range(3):
            for jp in range(1, 15):
                ji = jp + kw - 1
                t[kh, ji * 16:(ji + 1) * 16, jp * 32:(jp + 1) * 32] += ws2[kh, kw]
    return t


def _build_selectors(n):
    """0/1 row-shift / pool-selection matrices and the interior mask (batch-size n)."""
    r0, r1 = 32 * n, 16 * n
    sdown = np.zeros((r0, r0), np.float32)         # P[r] -> P[r+1] (h-pair max)
    for r in range(r0 - 1):
        if (r % 32) <= 30:
            sdown[r, r + 1] = 1.0
    a1 = np.zeros((3, r1, r0), np.float32)         # pooled stride-2 select + conv1 row taps
    a2 = np.zeros((3, r1, r1), np.float32)         # conv2 row taps
    for kh in range(3):
        for b in range(n):
            for rp in range(1, 15):
                i_in = rp + kh - 2
                if 0 <= i_in <= 13:
                    a1[kh, 16 * b + rp, 32 * b + 2 * i_in + 1] = 1.0
                a2[kh, 16 * b + rp, 16 * b + rp + kh - 1] = 1.0
    mask = np.zeros((r1, 256), np.float32)         # interior of the x2 slab
    for b in range(n):
        mask[16 * b + 1:16 * b + 15, 16:240] = 1.0
    return (jnp.asarray(sdown, jnp.bfloat16), jnp.asarray(a1, jnp.bfloat16),
            jnp.asarray(a2, jnp.bfloat16), jnp.asarray(mask))


# --------------------------------------------------------------------------
# Forward
# --------------------------------------------------------------------------

def resnet_forward(x_nchw, params):
    n = x_nchw.shape[0]
    x = x_nchw.reshape(n, 28, 28).astype(jnp.float32)     # Cin=1: NCHW == (N,H,W)
    # three row-shifted, zero-padded 32x32 copies of the input (one per vertical tap)
    x0 = jnp.stack(
        [jnp.pad(x, ((0, 0), (2 - kh, 2 + kh), (1, 3))) for kh in range(3)],
        axis=0).reshape(3, n * 32, 32).astype(jnp.bfloat16)

    sdown, a1, a2, mask = _build_selectors(n)
    slab = conv_stack_pallas(x0, params["t0"], sdown, a1, params["t1"],
                             a2, params["t2"], params["sh0"], params["sh1"],
                             params["sh2"], mask)

    # interior of the padded NHWC slab -> (N, 14*14*32) flat in (h, w, c) order,
    # split into 4 K-tiles for the fc1 reduction grid.
    flat = slab.reshape(n, 16, 16, 32)[:, 1:15, 1:15, :].reshape(n, 6272)
    x3d = flat.reshape(n, 4, 1568).transpose(1, 0, 2).astype(jnp.bfloat16)

    # Dropout(p=0.5) is identity at inference time.
    return mlp_softmax_pallas(x3d, *params["fc"])


# --------------------------------------------------------------------------
# Deterministic parameter init (shapes from ResNet.__init__)
# --------------------------------------------------------------------------

def init_params(key):
    eps = 1e-5
    keys = jax.random.split(key, 6)

    def conv_folded(k, cin, cout):
        k1, k2, k3, k4, k5, k6 = jax.random.split(k, 6)
        w = jax.random.normal(k1, (cout, cin, 3, 3), jnp.float32) / jnp.sqrt(cin * 9.0)
        bias = 0.05 * jax.random.normal(k2, (cout,), jnp.float32)
        gamma = 1.0 + 0.1 * jax.random.normal(k3, (cout,), jnp.float32)
        beta = 0.1 * jax.random.normal(k4, (cout,), jnp.float32)
        rmean = 0.1 * jax.random.normal(k5, (cout,), jnp.float32)
        rvar = jax.random.uniform(k6, (cout,), jnp.float32, 0.5, 1.5)
        scale = gamma / jnp.sqrt(rvar + eps)
        shift = (bias - rmean) * scale + beta
        ws = np.asarray(jnp.transpose(w, (2, 3, 1, 0)) * scale)  # (kh,kw,ci,co), scale folded
        return ws, np.asarray(shift)

    ws0, sh0 = conv_folded(keys[0], 1, 16)
    ws1, sh1 = conv_folded(keys[1], 16, 16)
    ws2, sh2 = conv_folded(keys[2], 16, 32)

    def lin(k, fin, fout):
        k1, k2 = jax.random.split(k)
        w = jax.random.normal(k1, (fin, fout), jnp.float32) / jnp.sqrt(float(fin))
        b = 0.05 * jax.random.normal(k2, (fout,), jnp.float32)
        return w, b.reshape(1, fout)

    w1t, b1 = lin(keys[3], 32 * 14 * 14, 512)   # rows in PyTorch NCHW-flatten (c,h,w) order
    w2, b2 = lin(keys[4], 512, 128)
    w3, b3 = lin(keys[5], 128, 10)

    # permute fc1 rows once at init to the NHWC (h,w,c) flatten order emitted by the conv kernel
    hh, ww, cc = np.meshgrid(np.arange(14), np.arange(14), np.arange(32), indexing="ij")
    perm = jnp.asarray((cc * 196 + hh * 14 + ww).reshape(-1))
    w1 = w1t[perm].reshape(4, 1568, 512).astype(jnp.bfloat16)

    return {
        "t0": jnp.asarray(_build_t0(ws0), jnp.bfloat16),
        "t1": jnp.asarray(_build_t1(ws1), jnp.bfloat16),
        "t2": jnp.asarray(_build_t2(ws2), jnp.bfloat16),
        "sh0": jnp.asarray(np.tile(sh0, 32).reshape(1, 512)),
        "sh1": jnp.asarray(np.tile(sh1, 16).reshape(1, 256)),
        "sh2": jnp.asarray(np.tile(sh2, 16).reshape(1, 512)),
        "fc": (w1, b1, w2.astype(jnp.bfloat16), b2, w3, b3),
    }


if __name__ == "__main__":
    key = jax.random.PRNGKey(0)
    pkey, xkey = jax.random.split(key)
    params = init_params(pkey)

    # MNIST-like input (NCHW). Spatial must be 28 so that flatten -> 32*14*14.
    x = jax.random.normal(xkey, (2, 1, 28, 28), jnp.float32)

    out = jax.jit(resnet_forward)(x, params)
    out = jax.block_until_ready(out)

    assert out.shape == (2, 10), out.shape
    assert bool(jnp.all(jnp.isfinite(out)))
    assert bool(jnp.allclose(jnp.sum(out, axis=1), 1.0, atol=1e-5))
    print("KERNEL_OK")
</pallas_src>

<mosaic_0001>
module attributes {stable_mosaic.version = 11 : i64} {
  func.func @_conv_stack_kernel(%arg0: i32, %arg1: memref<3x64x32xbf16, #tpu.memory_space<vmem>>, %arg2: memref<3x32x1024xbf16, #tpu.memory_space<vmem>>, %arg3: memref<64x64xbf16, #tpu.memory_space<vmem>>, %arg4: memref<3x32x64xbf16, #tpu.memory_space<vmem>>, %arg5: memref<3x512x256xbf16, #tpu.memory_space<vmem>>, %arg6: memref<3x32x32xbf16, #tpu.memory_space<vmem>>, %arg7: memref<3x256x512xbf16, #tpu.memory_space<vmem>>, %arg8: memref<1x512xf32, #tpu.memory_space<vmem>>, %arg9: memref<1x256xf32, #tpu.memory_space<vmem>>, %arg10: memref<1x512xf32, #tpu.memory_space<vmem>>, %arg11: memref<32x256xf32, #tpu.memory_space<vmem>>, %arg12: memref<32x512xf32, #tpu.memory_space<vmem>>) attributes {dimension_semantics = [#tpu.dimension_semantics<arbitrary>], iteration_bounds = array<i64: 1>, scalar_prefetch = 0 : i64, scratch_operands = 0 : i64, tpu.core_type = #tpu.core_type<tc>, window_params = [{pipeline_mode = #tpu.pipeline_mode<synchronous>, transform_indices = @transform_0, window_bounds = array<i64: 3, 64, 32>}, {pipeline_mode = #tpu.pipeline_mode<synchronous>, transform_indices = @transform_1, window_bounds = array<i64: 3, 32, 1024>}, {pipeline_mode = #tpu.pipeline_mode<synchronous>, transform_indices = @transform_2, window_bounds = array<i64: 64, 64>}, {pipeline_mode = #tpu.pipeline_mode<synchronous>, transform_indices = @transform_3, window_bounds = array<i64: 3, 32, 64>}, {pipeline_mode = #tpu.pipeline_mode<synchronous>, transform_indices = @transform_4, window_bounds = array<i64: 3, 512, 256>}, {pipeline_mode = #tpu.pipeline_mode<synchronous>, transform_indices = @transform_5, window_bounds = array<i64: 3, 32, 32>}, {pipeline_mode = #tpu.pipeline_mode<synchronous>, transform_indices = @transform_6, window_bounds = array<i64: 3, 256, 512>}, {pipeline_mode = #tpu.pipeline_mode<synchronous>, transform_indices = @transform_7, window_bounds = array<i64: 1, 512>}, {pipeline_mode = #tpu.pipeline_mode<synchronous>, transform_indices = @transform_8, window_bounds = array<i64: 1, 256>}, {pipeline_mode = #tpu.pipeline_mode<synchronous>, transform_indices = @transform_9, window_bounds = array<i64: 1, 512>}, {pipeline_mode = #tpu.pipeline_mode<synchronous>, transform_indices = @transform_10, window_bounds = array<i64: 32, 256>}, {pipeline_mode = #tpu.pipeline_mode<synchronous>, transform_indices = @transform_11, window_bounds = array<i64: 32, 512>}]} {
    %c0 = arith.constant 0 : index
    %c0_0 = arith.constant 0 : index
    %c0_1 = arith.constant 0 : index
    %0 = vector.load %arg1[%c0, %c0_0, %c0_1] : memref<3x64x32xbf16, #tpu.memory_space<vmem>>, vector<1x64x32xbf16>
    %1 = vector.shape_cast %0 : vector<1x64x32xbf16> to vector<64x32xbf16>
    %c0_2 = arith.constant 0 : index
    %c0_3 = arith.constant 0 : index
    %c0_4 = arith.constant 0 : index
    %2 = vector.load %arg2[%c0_2, %c0_3, %c0_4] : memref<3x32x1024xbf16, #tpu.memory_space<vmem>>, vector<1x32x1024xbf16>
    %3 = vector.shape_cast %2 : vector<1x32x1024xbf16> to vector<32x1024xbf16>
    %cst = arith.constant dense<0.000000e+00> : vector<64x1024xf32>
    %4 = tpu.matmul %1, %3, %cst {dimension_numbers = #tpu.dot_dimension_numbers<[1], [0], [0], [1], [0, 0, 1, 1], [], []>} : vector<64x32xbf16>, vector<32x1024xbf16>, vector<64x1024xf32> -> vector<64x1024xf32>
    %c1 = arith.constant 1 : index
    %c0_5 = arith.constant 0 : index
    %c0_6 = arith.constant 0 : index
    %5 = vector.load %arg1[%c1, %c0_5, %c0_6] : memref<3x64x32xbf16, #tpu.memory_space<vmem>>, vector<1x64x32xbf16>
    %6 = vector.shape_cast %5 : vector<1x64x32xbf16> to vector<64x32xbf16>
    %c1_7 = arith.constant 1 : index
    %c0_8 = arith.constant 0 : index
    %c0_9 = arith.constant 0 : index
    %7 = vector.load %arg2[%c1_7, %c0_8, %c0_9] : memref<3x32x1024xbf16, #tpu.memory_space<vmem>>, vector<1x32x1024xbf16>
    %8 = vector.shape_cast %7 : vector<1x32x1024xbf16> to vector<32x1024xbf16>
    %cst_10 = arith.constant dense<0.000000e+00> : vector<64x1024xf32>
    %9 = tpu.matmul %6, %8, %cst_10 {dimension_numbers = #tpu.dot_dimension_numbers<[1], [0], [0], [1], [0, 0, 1, 1], [], []>} : vector<64x32xbf16>, vector<32x1024xbf16>, vector<64x1024xf32> -> vector<64x1024xf32>
    %10 = arith.addf %4, %9 : vector<64x1024xf32>
    %c2 = arith.constant 2 : index
    %c0_11 = arith.constant 0 : index
    %c0_12 = arith.constant 0 : index
    %11 = vector.load %arg1[%c2, %c0_11, %c0_12] : memref<3x64x32xbf16, #tpu.memory_space<vmem>>, vector<1x64x32xbf16>
    %12 = vector.shape_cast %11 : vector<1x64x32xbf16> to vector<64x32xbf16>
    %c2_13 = arith.constant 2 : index
    %c0_14 = arith.constant 0 : index
    %c0_15 = arith.constant 0 : index
    %13 = vector.load %arg2[%c2_13, %c0_14, %c0_15] : memref<3x32x1024xbf16, #tpu.memory_space<vmem>>, vector<1x32x1024xbf16>
    %14 = vector.shape_cast %13 : vector<1x32x1024xbf16> to vector<32x1024xbf16>
    %cst_16 = arith.constant dense<0.000000e+00> : vector<64x1024xf32>
    %15 = tpu.matmul %12, %14, %cst_16 {dimension_numbers = #tpu.dot_dimension_numbers<[1], [0], [0], [1], [0, 0, 1, 1], [], []>} : vector<64x32xbf16>, vector<32x1024xbf16>, vector<64x1024xf32> -> vector<64x1024xf32>
    %16 = arith.addf %10, %15 : vector<64x1024xf32>
    %c0_17 = arith.constant 0 : index
    %c0_18 = arith.constant 0 : index
    %17 = vector.load %arg8[%c0_17, %c0_18] : memref<1x512xf32, #tpu.memory_space<vmem>>, vector<1x512xf32>
    %18 = vector.extract_strided_slice %16 {offsets = [0, 0], sizes = [64, 512], strides = [1, 1]} : vector<64x1024xf32> to vector<64x512xf32>
    %19 = vector.broadcast %17 : vector<1x512xf32> to vector<64x512xf32>
    %20 = arith.addf %18, %19 : vector<64x512xf32>
    %cst_19 = arith.constant 0.000000e+00 : f32
    %21 = vector.broadcast %cst_19 : f32 to vector<64x512xf32>
    %22 = arith.maximumf %20, %21 : vector<64x512xf32>
    %23 = vector.extract_strided_slice %16 {offsets = [0, 512], sizes = [64, 512], strides = [1, 1]} : vector<64x1024xf32> to vector<64x512xf32>
    %24 = vector.broadcast %17 : vector<1x512xf32> to vector<64x512xf32>
    %25 = arith.addf %23, %24 : vector<64x512xf32>
    %cst_20 = arith.constant 0.000000e+00 : f32
    %26 = vector.broadcast %cst_20 : f32 to vector<64x512xf32>
    %27 = arith.maximumf %25, %26 : vector<64x512xf32>
    %28 = arith.maximumf %22, %27 : vector<64x512xf32>
    %c0_21 = arith.constant 0 : index
    %c0_22 = arith.constant 0 : index
    %29 = vector.load %arg3[%c0_21, %c0_22] : memref<64x64xbf16, #tpu.memory_space<vmem>>, vector<64x64xbf16>
    %30 = arith.truncf %28 : vector<64x512xf32> to vector<64x512xbf16>
    %cst_23 = arith.constant dense<0.000000e+00> : vector<64x512xf32>
    %31 = tpu.matmul %29, %30, %cst_23 {dimension_numbers = #tpu.dot_dimension_numbers<[1], [0], [0], [1], [0, 0, 1, 1], [], []>} : vector<64x64xbf16>, vector<64x512xbf16>, vector<64x512xf32> -> vector<64x512xf32>
    %32 = arith.maximumf %28, %31 : vector<64x512xf32>
    %33 = arith.truncf %32 : vector<64x512xf32> to vector<64x512xbf16>
    %c0_24 = arith.constant 0 : index
    %c0_25 = arith.constant 0 : index
    %c0_26 = arith.constant 0 : index
    %34 = vector.load %arg4[%c0_24, %c0_25, %c0_26] : memref<3x32x64xbf16, #tpu.memory_space<vmem>>, vector<1x32x64xbf16>
    %35 = vector.shape_cast %34 : vector<1x32x64xbf16> to vector<32x64xbf16>
    %cst_27 = arith.constant dense<0.000000e+00> : vector<32x512xf32>
    %36 = tpu.matmul %35, %33, %cst_27 {dimension_numbers = #tpu.dot_dimension_numbers<[1], [0], [0], [1], [0, 0, 1, 1], [], []>} : vector<32x64xbf16>, vector<64x512xbf16>, vector<32x512xf32> -> vector<32x512xf32>
    %37 = arith.truncf %36 : vector<32x512xf32> to vector<32x512xbf16>
    %c0_28 = arith.constant 0 : index
    %c0_29 = arith.constant 0 : index
    %c0_30 = arith.constant 0 : index
    %38 = vector.load %arg5[%c0_28, %c0_29, %c0_30] : memref<3x512x256xbf16, #tpu.memory_space<vmem>>, vector<1x512x256xbf16>
    %39 = vector.shape_cast %38 : vector<1x512x256xbf16> to vector<512x256xbf16>
    %cst_31 = arith.constant dense<0.000000e+00> : vector<32x256xf32>
    %40 = tpu.matmul %37, %39, %cst_31 {dimension_numbers = #tpu.dot_dimension_numbers<[1], [0], [0], [1], [0, 0, 1, 1], [], []>} : vector<32x512xbf16>, vector<512x256xbf16>, vector<32x256xf32> -> vector<32x256xf32>
    %c1_32 = arith.constant 1 : index
    %c0_33 = arith.constant 0 : index
    %c0_34 = arith.constant 0 : index
    %41 = vector.load %arg4[%c1_32, %c0_33, %c0_34] : memref<3x32x64xbf16, #tpu.memory_space<vmem>>, vector<1x32x64xbf16>
    %42 = vector.shape_cast %41 : vector<1x32x64xbf16> to vector<32x64xbf16>
    %cst_35 = arith.constant dense<0.000000e+00> : vector<32x512xf32>
    %43 = tpu.matmul %42, %33, %cst_35 {dimension_numbers = #tpu.dot_dimension_numbers<[1], [0], [0], [1], [0, 0, 1, 1], [], []>} : vector<32x64xbf16>, vector<64x512xbf16>, vector<32x512xf32> -> vector<32x512xf32>
    %44 = arith.truncf %43 : vector<32x512xf32> to vector<32x512xbf16>
    %c1_36 = arith.constant 1 : index
    %c0_37 = arith.constant 0 : index
    %c0_38 = arith.constant 0 : index
    %45 = vector.load %arg5[%c1_36, %c0_37, %c0_38] : memref<3x512x256xbf16, #tpu.memory_space<vmem>>, vector<1x512x256xbf16>
    %46 = vector.shape_cast %45 : vector<1x512x256xbf16> to vector<512x256xbf16>
    %cst_39 = arith.constant dense<0.000000e+00> : vector<32x256xf32>
    %47 = tpu.matmul %44, %46, %cst_39 {dimension_numbers = #tpu.dot_dimension_numbers<[1], [0], [0], [1], [0, 0, 1, 1], [], []>} : vector<32x512xbf16>, vector<512x256xbf16>, vector<32x256xf32> -> vector<32x256xf32>
    %48 = arith.addf %40, %47 : vector<32x256xf32>
    %c2_40 = arith.constant 2 : index
    %c0_41 = arith.constant 0 : index
    %c0_42 = arith.constant 0 : index
    %49 = vector.load %arg4[%c2_40, %c0_41, %c0_42] : memref<3x32x64xbf16, #tpu.memory_space<vmem>>, vector<1x32x64xbf16>
    %50 = vector.shape_cast %49 : vector<1x32x64xbf16> to vector<32x64xbf16>
    %cst_43 = arith.constant dense<0.000000e+00> : vector<32x512xf32>
    %51 = tpu.matmul %50, %33, %cst_43 {dimension_numbers = #tpu.dot_dimension_numbers<[1], [0], [0], [1], [0, 0, 1, 1], [], []>} : vector<32x64xbf16>, vector<64x512xbf16>, vector<32x512xf32> -> vector<32x512xf32>
    %52 = arith.truncf %51 : vector<32x512xf32> to vector<32x512xbf16>
    %c2_44 = arith.constant 2 : index
    %c0_45 = arith.constant 0 : index
    %c0_46 = arith.constant 0 : index
    %53 = vector.load %arg5[%c2_44, %c0_45, %c0_46] : memref<3x512x256xbf16, #tpu.memory_space<vmem>>, vector<1x512x256xbf16>
    %54 = vector.shape_cast %53 : vector<1x512x256xbf16> to vector<512x256xbf16>
    %cst_47 = arith.constant dense<0.000000e+00> : vector<32x256xf32>
    %55 = tpu.matmul %52, %54, %cst_47 {dimension_numbers = #tpu.dot_dimension_numbers<[1], [0], [0], [1], [0, 0, 1, 1], [], []>} : vector<32x512xbf16>, vector<512x256xbf16>, vector<32x256xf32> -> vector<32x256xf32>
    %56 = arith.addf %48, %55 : vector<32x256xf32>
    %c0_48 = arith.constant 0 : index
    %c0_49 = arith.constant 0 : index
    %57 = vector.load %arg9[%c0_48, %c0_49] : memref<1x256xf32, #tpu.memory_space<vmem>>, vector<1x256xf32>
    %58 = vector.broadcast %57 : vector<1x256xf32> to vector<32x256xf32>
    %59 = arith.addf %56, %58 : vector<32x256xf32>
    %cst_50 = arith.constant 0.000000e+00 : f32
    %60 = vector.broadcast %cst_50 : f32 to vector<32x256xf32>
    %61 = arith.maximumf %59, %60 : vector<32x256xf32>
    %c0_51 = arith.constant 0 : index
    %c0_52 = arith.constant 0 : index
    %62 = vector.load %arg11[%c0_51, %c0_52] : memref<32x256xf32, #tpu.memory_space<vmem>>, vector<32x256xf32>
    %63 = arith.mulf %61, %62 : vector<32x256xf32>
    %64 = arith.truncf %63 : vector<32x256xf32> to vector<32x256xbf16>
    %c0_53 = arith.constant 0 : index
    %c0_54 = arith.constant 0 : index
    %c0_55 = arith.constant 0 : index
    %65 = vector.load %arg6[%c0_53, %c0_54, %c0_55] : memref<3x32x32xbf16, #tpu.memory_space<vmem>>, vector<1x32x32xbf16>
    %66 = vector.shape_cast %65 : vector<1x32x32xbf16> to vector<32x32xbf16>
    %cst_56 = arith.constant dense<0.000000e+00> : vector<32x256xf32>
    %67 = tpu.matmul %66, %64, %cst_56 {dimension_numbers = #tpu.dot_dimension_numbers<[1], [0], [0], [1], [0, 0, 1, 1], [], []>} : vector<32x32xbf16>, vector<32x256xbf16>, vector<32x256xf32> -> vector<32x256xf32>
    %68 = arith.truncf %67 : vector<32x256xf32> to vector<32x256xbf16>
    %c0_57 = arith.constant 0 : index
    %c0_58 = arith.constant 0 : index
    %c0_59 = arith.constant 0 : index
    %69 = vector.load %arg7[%c0_57, %c0_58, %c0_59] : memref<3x256x512xbf16, #tpu.memory_space<vmem>>, vector<1x256x512xbf16>
    %70 = vector.shape_cast %69 : vector<1x256x512xbf16> to vector<256x512xbf16>
    %cst_60 = arith.constant dense<0.000000e+00> : vector<32x512xf32>
    %71 = tpu.matmul %68, %70, %cst_60 {dimension_numbers = #tpu.dot_dimension_numbers<[1], [0], [0], [1], [0, 0, 1, 1], [], []>} : vector<32x256xbf16>, vector<256x512xbf16>, vector<32x512xf32> -> vector<32x512xf32>
    %c1_61 = arith.constant 1 : index
    %c0_62 = arith.constant 0 : index
    %c0_63 = arith.constant 0 : index
    %72 = vector.load %arg6[%c1_61, %c0_62, %c0_63] : memref<3x32x32xbf16, #tpu.memory_space<vmem>>, vector<1x32x32xbf16>
    %73 = vector.shape_cast %72 : vector<1x32x32xbf16> to vector<32x32xbf16>
    %cst_64 = arith.constant dense<0.000000e+00> : vector<32x256xf32>
    %74 = tpu.matmul %73, %64, %cst_64 {dimension_numbers = #tpu.dot_dimension_numbers<[1], [0], [0], [1], [0, 0, 1, 1], [], []>} : vector<32x32xbf16>, vector<32x256xbf16>, vector<32x256xf32> -> vector<32x256xf32>
    %75 = arith.truncf %74 : vector<32x256xf32> to vector<32x256xbf16>
    %c1_65 = arith.constant 1 : index
    %c0_66 = arith.constant 0 : index
    %c0_67 = arith.constant 0 : index
    %76 = vector.load %arg7[%c1_65, %c0_66, %c0_67] : memref<3x256x512xbf16, #tpu.memory_space<vmem>>, vector<1x256x512xbf16>
    %77 = vector.shape_cast %76 : vector<1x256x512xbf16> to vector<256x512xbf16>
    %cst_68 = arith.constant dense<0.000000e+00> : vector<32x512xf32>
    %78 = tpu.matmul %75, %77, %cst_68 {dimension_numbers = #tpu.dot_dimension_numbers<[1], [0], [0], [1], [0, 0, 1, 1], [], []>} : vector<32x256xbf16>, vector<256x512xbf16>, vector<32x512xf32> -> vector<32x512xf32>
    %79 = arith.addf %71, %78 : vector<32x512xf32>
    %c2_69 = arith.constant 2 : index
    %c0_70 = arith.constant 0 : index
    %c0_71 = arith.constant 0 : index
    %80 = vector.load %arg6[%c2_69, %c0_70, %c0_71] : memref<3x32x32xbf16, #tpu.memory_space<vmem>>, vector<1x32x32xbf16>
    %81 = vector.shape_cast %80 : vector<1x32x32xbf16> to vector<32x32xbf16>
    %cst_72 = arith.constant dense<0.000000e+00> : vector<32x256xf32>
    %82 = tpu.matmul %81, %64, %cst_72 {dimension_numbers = #tpu.dot_dimension_numbers<[1], [0], [0], [1], [0, 0, 1, 1], [], []>} : vector<32x32xbf16>, vector<32x256xbf16>, vector<32x256xf32> -> vector<32x256xf32>
    %83 = arith.truncf %82 : vector<32x256xf32> to vector<32x256xbf16>
    %c2_73 = arith.constant 2 : index
    %c0_74 = arith.constant 0 : index
    %c0_75 = arith.constant 0 : index
    %84 = vector.load %arg7[%c2_73, %c0_74, %c0_75] : memref<3x256x512xbf16, #tpu.memory_space<vmem>>, vector<1x256x512xbf16>
    %85 = vector.shape_cast %84 : vector<1x256x512xbf16> to vector<256x512xbf16>
    %cst_76 = arith.constant dense<0.000000e+00> : vector<32x512xf32>
    %86 = tpu.matmul %83, %85, %cst_76 {dimension_numbers = #tpu.dot_dimension_numbers<[1], [0], [0], [1], [0, 0, 1, 1], [], []>} : vector<32x256xbf16>, vector<256x512xbf16>, vector<32x512xf32> -> vector<32x512xf32>
    %87 = arith.addf %79, %86 : vector<32x512xf32>
    %c0_77 = arith.constant 0 : index
    %c0_78 = arith.constant 0 : index
    %88 = vector.load %arg10[%c0_77, %c0_78] : memref<1x512xf32, #tpu.memory_space<vmem>>, vector<1x512xf32>
    %89 = vector.broadcast %88 : vector<1x512xf32> to vector<32x512xf32>
    %90 = arith.addf %87, %89 : vector<32x512xf32>
    %c0_79 = arith.constant 0 : index
    %c0_80 = arith.constant 0 : index
    %91 = vector.load %arg12[%c0_79, %c0_80] : memref<32x512xf32, #tpu.memory_space<vmem>>, vector<32x512xf32>
    tpu.vector_store %arg12[%c0_79, %c0_80], %90 {strides = array<i32>} : memref<32x512xf32, #tpu.memory_space<vmem>>, vector<32x512xf32>,
    return
  }
  func.func @transform_0(%arg0: i32) -> (i32, i32, i32) {
    %c0_i32 = arith.constant 0 : i32
    %c0_i32_0 = arith.constant 0 : i32
    %c0_i32_1 = arith.constant 0 : i32
    %c0_i32_2 = arith.constant 0 : i32
    return %c0_i32, %c0_i32_0, %c0_i32_1 : i32, i32, i32
  }
  func.func @transform_1(%arg0: i32) -> (i32, i32, i32) {
    %c0_i32 = arith.constant 0 : i32
    %c0_i32_0 = arith.constant 0 : i32
    %c0_i32_1 = arith.constant 0 : i32
    %c0_i32_2 = arith.constant 0 : i32
    return %c0_i32, %c0_i32_0, %c0_i32_1 : i32, i32, i32
  }
  func.func @transform_2(%arg0: i32) -> (i32, i32) {
    %c0_i32 = arith.constant 0 : i32
    %c0_i32_0 = arith.constant 0 : i32
    %c0_i32_1 = arith.constant 0 : i32
    return %c0_i32, %c0_i32_0 : i32, i32
  }
  func.func @transform_3(%arg0: i32) -> (i32, i32, i32) {
    %c0_i32 = arith.constant 0 : i32
    %c0_i32_0 = arith.constant 0 : i32
    %c0_i32_1 = arith.constant 0 : i32
    %c0_i32_2 = arith.constant 0 : i32
    return %c0_i32, %c0_i32_0, %c0_i32_1 : i32, i32, i32
  }
  func.func @transform_4(%arg0: i32) -> (i32, i32, i32) {
    %c0_i32 = arith.constant 0 : i32
    %c0_i32_0 = arith.constant 0 : i32
    %c0_i32_1 = arith.constant 0 : i32
    %c0_i32_2 = arith.constant 0 : i32
    return %c0_i32, %c0_i32_0, %c0_i32_1 : i32, i32, i32
  }
  func.func @transform_5(%arg0: i32) -> (i32, i32, i32) {
    %c0_i32 = arith.constant 0 : i32
    %c0_i32_0 = arith.constant 0 : i32
    %c0_i32_1 = arith.constant 0 : i32
    %c0_i32_2 = arith.constant 0 : i32
    return %c0_i32, %c0_i32_0, %c0_i32_1 : i32, i32, i32
  }
  func.func @transform_6(%arg0: i32) -> (i32, i32, i32) {
    %c0_i32 = arith.constant 0 : i32
    %c0_i32_0 = arith.constant 0 : i32
    %c0_i32_1 = arith.constant 0 : i32
    %c0_i32_2 = arith.constant 0 : i32
    return %c0_i32, %c0_i32_0, %c0_i32_1 : i32, i32, i32
  }
  func.func @transform_7(%arg0: i32) -> (i32, i32) {
    %c0_i32 = arith.constant 0 : i32
    %c0_i32_0 = arith.constant 0 : i32
    %c0_i32_1 = arith.constant 0 : i32
    return %c0_i32, %c0_i32_0 : i32, i32
  }
  func.func @transform_8(%arg0: i32) -> (i32, i32) {
    %c0_i32 = arith.constant 0 : i32
    %c0_i32_0 = arith.constant 0 : i32
    %c0_i32_1 = arith.constant 0 : i32
    return %c0_i32, %c0_i32_0 : i32, i32
  }
  func.func @transform_9(%arg0: i32) -> (i32, i32) {
    %c0_i32 = arith.constant 0 : i32
    %c0_i32_0 = arith.constant 0 : i32
    %c0_i32_1 = arith.constant 0 : i32
    return %c0_i32, %c0_i32_0 : i32, i32
  }
  func.func @transform_10(%arg0: i32) -> (i32, i32) {
    %c0_i32 = arith.constant 0 : i32
    %c0_i32_0 = arith.constant 0 : i32
    %c0_i32_1 = arith.constant 0 : i32
    return %c0_i32, %c0_i32_0 : i32, i32
  }
  func.func @transform_11(%arg0: i32) -> (i32, i32) {
    %c0_i32 = arith.constant 0 : i32
    %c0_i32_0 = arith.constant 0 : i32
    %c0_i32_1 = arith.constant 0 : i32
    return %c0_i32, %c0_i32_0 : i32, i32
  }
}

module attributes {stable_mosaic.version = 11 : i64} {
  func.func @_mlp_kernel(%arg0: i32, %arg1: memref<1x2x1568xbf16, #tpu.memory_space<vmem>>, %arg2: memref<1x1568x512xbf16, #tpu.memory_space<vmem>>, %arg3: memref<1x512xf32, #tpu.memory_space<vmem>>, %arg4: memref<512x128xbf16, #tpu.memory_space<vmem>>, %arg5: memref<1x128xf32, #tpu.memory_space<vmem>>, %arg6: memref<128x10xf32, #tpu.memory_space<vmem>>, %arg7: memref<1x10xf32, #tpu.memory_space<vmem>>, %arg8: memref<2x10xf32, #tpu.memory_space<vmem>>, %arg9: memref<2x512xf32, #tpu.memory_space<vmem>>) attributes {dimension_semantics = [#tpu.dimension_semantics<arbitrary>], iteration_bounds = array<i64: 4>, scalar_prefetch = 0 : i64, scratch_operands = 1 : i64, tpu.core_type = #tpu.core_type<tc>, window_params = [{transform_indices = @transform_0, window_bounds = array<i64: 1, 2, 1568>}, {transform_indices = @transform_1, window_bounds = array<i64: 1, 1568, 512>}, {pipeline_mode = #tpu.pipeline_mode<synchronous>, transform_indices = @transform_2, window_bounds = array<i64: 1, 512>}, {pipeline_mode = #tpu.pipeline_mode<synchronous>, transform_indices = @transform_3, window_bounds = array<i64: 512, 128>}, {pipeline_mode = #tpu.pipeline_mode<synchronous>, transform_indices = @transform_4, window_bounds = array<i64: 1, 128>}, {pipeline_mode = #tpu.pipeline_mode<synchronous>, transform_indices = @transform_5, window_bounds = array<i64: 128, 10>}, {pipeline_mode = #tpu.pipeline_mode<synchronous>, transform_indices = @transform_6, window_bounds = array<i64: 1, 10>}, {pipeline_mode = #tpu.pipeline_mode<synchronous>, transform_indices = @transform_7, window_bounds = array<i64: 2, 10>}]} {
    %c0_i32 = arith.constant 0 : i32
    %0 = arith.cmpi eq, %arg0, %c0_i32 : i32
    %1 = arith.extui %0 : i1 to i32
    %c0_i32_0 = arith.constant 0 : i32
    %2 = arith.cmpi ne, %1, %c0_i32_0 : i32
    scf.if %2 {
      %cst_11 = arith.constant 0.000000e+00 : f32
      %14 = vector.broadcast %cst_11 : f32 to vector<2x512xf32>
      %c0_12 = arith.constant 0 : index
      %c0_13 = arith.constant 0 : index
      %15 = vector.load %arg9[%c0_12, %c0_13] : memref<2x512xf32, #tpu.memory_space<vmem>>, vector<2x512xf32>
      tpu.vector_store %arg9[%c0_12, %c0_13], %14 {strides = array<i32>} : memref<2x512xf32, #tpu.memory_space<vmem>>, vector<2x512xf32>,
    } else {
    }
    %c0 = arith.constant 0 : index
    %c0_1 = arith.constant 0 : index
    %3 = vector.load %arg9[%c0, %c0_1] : memref<2x512xf32, #tpu.memory_space<vmem>>, vector<2x512xf32>
    %c0_2 = arith.constant 0 : index
    %c0_3 = arith.constant 0 : index
    %c0_4 = arith.constant 0 : index
    %4 = vector.load %arg1[%c0_2, %c0_3, %c0_4] : memref<1x2x1568xbf16, #tpu.memory_space<vmem>>, vector<1x2x1568xbf16>
    %5 = vector.shape_cast %4 : vector<1x2x1568xbf16> to vector<2x1568xbf16>
    %c0_5 = arith.constant 0 : index
    %c0_6 = arith.constant 0 : index
    %c0_7 = arith.constant 0 : index
    %6 = vector.load %arg2[%c0_5, %c0_6, %c0_7] : memref<1x1568x512xbf16, #tpu.memory_space<vmem>>, vector<1x1568x512xbf16>
    %7 = vector.shape_cast %6 : vector<1x1568x512xbf16> to vector<1568x512xbf16>
    %cst = arith.constant dense<0.000000e+00> : vector<2x512xf32>
    %8 = tpu.matmul %5, %7, %cst {dimension_numbers = #tpu.dot_dimension_numbers<[1], [0], [0], [1], [0, 0, 1, 1], [], []>} : vector<2x1568xbf16>, vector<1568x512xbf16>, vector<2x512xf32> -> vector<2x512xf32>
    %9 = arith.addf %3, %8 : vector<2x512xf32>
    %c0_8 = arith.constant 0 : index
    %c0_9 = arith.constant 0 : index
    %10 = vector.load %arg9[%c0_8, %c0_9] : memref<2x512xf32, #tpu.memory_space<vmem>>, vector<2x512xf32>
    tpu.vector_store %arg9[%c0_8, %c0_9], %9 {strides = array<i32>} : memref<2x512xf32, #tpu.memory_space<vmem>>, vector<2x512xf32>,
    %c3_i32 = arith.constant 3 : i32
    %11 = arith.cmpi eq, %arg0, %c3_i32 : i32
    %12 = arith.extui %11 : i1 to i32
    %c0_i32_10 = arith.constant 0 : i32
    %13 = arith.cmpi ne, %12, %c0_i32_10 : i32
    scf.if %13 {
      %c0_11 = arith.constant 0 : index
      %c0_12 = arith.constant 0 : index
      %14 = vector.load %arg9[%c0_11, %c0_12] : memref<2x512xf32, #tpu.memory_space<vmem>>, vector<2x512xf32>
      %c0_13 = arith.constant 0 : index
      %c0_14 = arith.constant 0 : index
      %15 = vector.load %arg3[%c0_13, %c0_14] : memref<1x512xf32, #tpu.memory_space<vmem>>, vector<1x512xf32>
      %16 = vector.broadcast %15 : vector<1x512xf32> to vector<2x512xf32>
      %17 = arith.addf %14, %16 : vector<2x512xf32>
      %cst_15 = arith.constant 0.000000e+00 : f32
      %18 = vector.broadcast %cst_15 : f32 to vector<2x512xf32>
      %19 = arith.maximumf %17, %18 : vector<2x512xf32>
      %20 = arith.truncf %19 : vector<2x512xf32> to vector<2x512xbf16>
      %c0_16 = arith.constant 0 : index
      %c0_17 = arith.constant 0 : index
      %21 = vector.load %arg4[%c0_16, %c0_17] : memref<512x128xbf16, #tpu.memory_space<vmem>>, vector<512x128xbf16>
      %cst_18 = arith.constant dense<0.000000e+00> : vector<2x128xf32>
      %22 = tpu.matmul %20, %21, %cst_18 {dimension_numbers = #tpu.dot_dimension_numbers<[1], [0], [0], [1], [0, 0, 1, 1], [], []>} : vector<2x512xbf16>, vector<512x128xbf16>, vector<2x128xf32> -> vector<2x128xf32>
      %c0_19 = arith.constant 0 : index
      %c0_20 = arith.constant 0 : index
      %23 = vector.load %arg5[%c0_19, %c0_20] : memref<1x128xf32, #tpu.memory_space<vmem>>, vector<1x128xf32>
      %24 = vector.broadcast %23 : vector<1x128xf32> to vector<2x128xf32>
      %25 = arith.addf %22, %24 : vector<2x128xf32>
      %cst_21 = arith.constant 0.000000e+00 : f32
      %26 = vector.broadcast %cst_21 : f32 to vector<2x128xf32>
      %27 = arith.maximumf %25, %26 : vector<2x128xf32>
      %c0_22 = arith.constant 0 : index
      %c0_23 = arith.constant 0 : index
      %28 = vector.load %arg6[%c0_22, %c0_23] : memref<128x10xf32, #tpu.memory_space<vmem>>, vector<128x10xf32>
      %cst_24 = arith.constant dense<0.000000e+00> : vector<2x10xf32>
      %29 = tpu.matmul %27, %28, %cst_24 {dimension_numbers = #tpu.dot_dimension_numbers<[1], [0], [0], [1], [0, 0, 1, 1], [], []>} : vector<2x128xf32>, vector<128x10xf32>, vector<2x10xf32> -> vector<2x10xf32>
      %c0_25 = arith.constant 0 : index
      %c0_26 = arith.constant 0 : index
      %30 = vector.load %arg7[%c0_25, %c0_26] : memref<1x10xf32, #tpu.memory_space<vmem>>, vector<1x10xf32>
      %31 = vector.broadcast %30 : vector<1x10xf32> to vector<2x10xf32>
      %32 = arith.addf %29, %31 : vector<2x10xf32>
      %cst_27 = arith.constant dense<0xFF800000> : vector<2xf32>
      %33 = vector.multi_reduction <maximumf>, %32, %cst_27 [1] : vector<2x10xf32> to vector<2xf32>
      %34 = vector.shape_cast %33 : vector<2xf32> to vector<2x1xf32>
      %35 = vector.broadcast %34 : vector<2x1xf32> to vector<2x10xf32>
      %36 = arith.subf %32, %35 : vector<2x10xf32>
      %37 = math.exp %36 : vector<2x10xf32>
      %cst_28 = arith.constant dense<0.000000e+00> : vector<2xf32>
      %38 = vector.multi_reduction <add>, %37, %cst_28 [1] : vector<2x10xf32> to vector<2xf32>
      %39 = vector.shape_cast %38 : vector<2xf32> to vector<2x1xf32>
      %40 = vector.broadcast %39 : vector<2x1xf32> to vector<2x10xf32>
      %41 = arith.divf %37, %40 : vector<2x10xf32>
      %c0_29 = arith.constant 0 : index
      %c0_30 = arith.constant 0 : index
      %42 = vector.load %arg8[%c0_29, %c0_30] : memref<2x10xf32, #tpu.memory_space<vmem>>, vector<2x10xf32>
      tpu.vector_store %arg8[%c0_29, %c0_30], %41 {strides = array<i32>} : memref<2x10xf32, #tpu.memory_space<vmem>>, vector<2x10xf32>,
    } else {
    }
    return
  }
  func.func @transform_0(%arg0: i32) -> (i32, i32, i32) {
    %c0_i32 = arith.constant 0 : i32
    %c0_i32_0 = arith.constant 0 : i32
    %c0_i32_1 = arith.constant 0 : i32
    return %arg0, %c0_i32, %c0_i32_0 : i32, i32, i32
  }
  func.func @transform_1(%arg0: i32) -> (i32, i32, i32) {
    %c0_i32 = arith.constant 0 : i32
    %c0_i32_0 = arith.constant 0 : i32
    %c0_i32_1 = arith.constant 0 : i32
    return %arg0, %c0_i32, %c0_i32_0 : i32, i32, i32
  }
  func.func @transform_2(%arg0: i32) -> (i32, i32) {
    %c0_i32 = arith.constant 0 : i32
    %c0_i32_0 = arith.constant 0 : i32
    %c0_i32_1 = arith.constant 0 : i32
    return %c0_i32, %c0_i32_0 : i32, i32
  }
  func.func @transform_3(%arg0: i32) -> (i32, i32) {
    %c0_i32 = arith.constant 0 : i32
    %c0_i32_0 = arith.constant 0 : i32
    %c0_i32_1 = arith.constant 0 : i32
    return %c0_i32, %c0_i32_0 : i32, i32
  }
  func.func @transform_4(%arg0: i32) -> (i32, i32) {
    %c0_i32 = arith.constant 0 : i32
    %c0_i32_0 = arith.constant 0 : i32
    %c0_i32_1 = arith.constant 0 : i32
    return %c0_i32, %c0_i32_0 : i32, i32
  }
  func.func @transform_5(%arg0: i32) -> (i32, i32) {
    %c0_i32 = arith.constant 0 : i32
    %c0_i32_0 = arith.constant 0 : i32
    %c0_i32_1 = arith.constant 0 : i32
    return %c0_i32, %c0_i32_0 : i32, i32
  }
  func.func @transform_6(%arg0: i32) -> (i32, i32) {
    %c0_i32 = arith.constant 0 : i32
    %c0_i32_0 = arith.constant 0 : i32
    %c0_i32_1 = arith.constant 0 : i32
    return %c0_i32, %c0_i32_0 : i32, i32
  }
  func.func @transform_7(%arg0: i32) -> (i32, i32) {
    %c0_i32 = arith.constant 0 : i32
    %c0_i32_0 = arith.constant 0 : i32
    %c0_i32_1 = arith.constant 0 : i32
    return %c0_i32, %c0_i32_0 : i32, i32
  }
}

</mosaic_0001>

<bundles_post_ra>
// kernel: resnet_forward.3
= control target key start
LH: loop header
LB: loop body
LE: loop exit
PB: predicated region body
PF: predicated region fallthrough
CT: control target
= control target key end

     0   :  { %12 = vsyncpa [#allocation4], 0  ;;  %s6439_s0 = inlined_call_operand.vmem [shape: bf16[4,2,1568], index: 0, kind: input, shape index: {}]   ;;  %s6440_s1 = inlined_call_operand.hbm [shape: bf16[4,1568,512], index: 1, kind: input, shape index: {}]   ;;  %s6441_s2 = inlined_call_operand.hbm [shape: f32[1,512], index: 2, kind: input, shape index: {}]   ;;  %s6442_s3 = inlined_call_operand.hbm [shape: bf16[512,128], index: 3, kind: input, shape index: {}]   ;;  %s6443_s4 = inlined_call_operand.hbm [shape: f32[1,128], index: 4, kind: input, shape index: {}]   ;;  %s6444_s5 = inlined_call_operand.vmem [shape: f32[128,10], index: 5, kind: input, shape index: {}]   ;;  %s6445_s6 = inlined_call_operand.hbm [shape: f32[1,10], index: 6, kind: input, shape index: {}]   ;;  %s6446_s7 = inlined_call_operand.hbm [shape: f32[2,10], index: 7, kind: output, shape index: {}]  }
   0x1   :  { %14 = vsyncpa [#allocation4 + $0x1], 0 }
   0x2   :  { %15 = vsyncpa [#allocation7], 0 }
   0x3   :  { %16 = vsyncpa [#allocation10], 0 }
   0x4   :  { %17 = vsyncpa [#allocation5], 0  ;;  %s5661_s24 = smov 0   ;;  %s5663_s25 = smov 0  }
   0x5   :  { %s5665_s26 = smov 0   ;;  %s5667_s27 = smov 0  }
   0x6 LB: > { %s5680_s28 = sadd.s32 4294967295, %s5602_s27   ;;  %p69_p0 = scmp.ne.s32.totalorder %s5594_s25, %s5590_s24  ;;  %s5602_s27 = sphi %s5667_s27, %s6465_s27   ;;  %s5598_s26 = sphi %s5665_s26, %s6464_s26   ;;  %s5594_s25 = sphi %s5663_s25, %s6463_s25   ;;  %s5590_s24 = sphi %s5661_s24, %s6462_s24  }
   0x7   : > { %p6447_p1 = scmp.eq.s32.totalorder %s5680_s28, 0  ;;  %p4046_p2 = scmp.ge.s32.totalorder %s5602_s27, 1 }
   0x8   : > { %p206_p3 = scmp.lt.s32.totalorder %s5602_s27, 5  ;;  %s5604_s8 = smov [#allocation6]  }
   0x9   : > { %p5689_p5 = por %p6447_p1, %p69_p0  ;;  %s219_s9 = sshll.u32 %s5604_s8, 4  ;;  %s220_s9 = int_to_ptr.vmem [resolvable:$true] %s219_s9 }
   0xa   : > { %p5693_p6 = pnand %p4046_p2, %p206_p3  ;;  %s5605_s10 = smov [#allocation9]  }
   0xb   : > { %s6450_s29 = scalar_select %p5689_p5, 1, 0 }
   0xc   : > { %s6451_s30 = scalar_select %p5693_p6, 1, 0 }
   0xd   : > { %p4686_p7 = pneg %p5693_p6  ;;  %s243_s11 = sshll.u32 %s5605_s10, 4  ;;  %s5705_s11 = int_to_ptr.vmem [resolvable:$true] %s243_s11 }
   0xe   : > { %s5606_s13 = smov [#allocation8]   ;;  %s5388_s17 = scalar_lea.hbm %s6441_s2, 64 }
   0xf   : > { %p5701_p8 = pnand %p4686_p7, %p6447_p1  ;;  %s229_s14 = sshll.u32 %s5606_s13, 4  ;;  %s5707_s14 = int_to_ptr.vmem [resolvable:$true] %s229_s14 }
  0x10   : > { %p5389_p9 = scmp.ne.s32.totalorder %s6441_s2, %s5388_s17  ;;  %p5395_p13 = scmp.lt.u32.totalorder %s5388_s17, %s6441_s2 }
  0x11   : > { %p5717_p10 = pneg %p5701_p8 }
  0x13   : > { %p5391_p11 = pnand %p5717_p10, %p5389_p9 }
  0x15   : > { %p5392_p12 = pneg %p5391_p11 }
  0x17   : > { %p5397_p0 = pnand %p5395_p13, %p5392_p12 }
  0x19   : > { %5400 = shalt.err (!%p5397_p0)
}
  0x1a   : > { %s5401_s23 = scalar_lea.vmem %s220_s9, 64  ;;  %p5409_p4 = scmp.lt.s32.totalorder %s220_s9, %s220_s9 }
  0x1b   : > { %p5402_p2 = scmp.ne.s32.totalorder %s220_s9, %s5401_s23  ;;  %p5410_p1 = scmp.lt.s32.totalorder %s5401_s23, %s5401_s23 }
  0x1d   : > { %p5404_p3 = pnand %p5402_p2, %p5717_p10  ;;  %p5411_p5 = por %p5410_p1, %p5409_p4 }
  0x1f   : > { %p5405_p7 = pneg %p5404_p3 }
  0x21   : > { %p5412_p6 = pnand %p5411_p5, %p5405_p7 }
  0x23   : > { %5415 = shalt.err (!%p5412_p6)
}
  0x24   : > { %4689 = dma.hbm_to_vmem [thread:$0]  (!%p5701_p8), %s6441_s2, 64, %s220_s9, [#allocation7]  }
  0x25   : > { %s5416_s15 = scalar_lea.hbm %s6443_s4, 16 }
  0x26   : > { %p5417_p9 = scmp.ne.s32.totalorder %s6443_s4, %s5416_s15  ;;  %p5423_p4 = scmp.lt.u32.totalorder %s5416_s15, %s6443_s4 }
  0x28   : > { %p5419_p11 = pnand %p5417_p9, %p5717_p10 }
  0x2a   : > { %p5420_p1 = pneg %p5419_p11 }
  0x2c   : > { %p5425_p5 = pnand %p5423_p4, %p5420_p1 }
  0x2e   : > { %5428 = shalt.err (!%p5425_p5)
}
  0x2f   : > { %s5429_s9 = scalar_lea.vmem %s5705_s11, 16  ;;  %s5436_s21 = scalar_lea.vmem %s5705_s11, 32 }
  0x30   : > { %p5430_p6 = scmp.ne.s32.totalorder %s5705_s11, %s5429_s9  ;;  %p5437_p0 = scmp.lt.s32.totalorder %s5705_s11, %s5705_s11 }
  0x31   : > { %p5438_p2 = scmp.lt.s32.totalorder %s5436_s21, %s5429_s9 }
  0x32   : > { %p5432_p12 = pnand %p5430_p6, %p5717_p10 }
  0x33   : > { %p5439_p3 = por %p5438_p2, %p5437_p0 }
  0x34   : > { %p5433_p13 = pneg %p5432_p12 }
  0x36   : > { %p5440_p7 = pnand %p5439_p3, %p5433_p13 }
  0x38   : > { %5443 = shalt.err (!%p5440_p7)
}
  0x39   : > { %4695 = dma.hbm_to_vmem [thread:$0]  (!%p5701_p8), %s6443_s4, 16, %s5705_s11, [#allocation10]  }
  0x3a   : > { %s5444_s10 = scalar_lea.hbm %s6442_s3, 4096 }
  0x3b   : > { %p5445_p9 = scmp.ne.s32.totalorder %s6442_s3, %s5444_s10  ;;  %p5451_p4 = scmp.lt.u32.totalorder %s5444_s10, %s6442_s3 }
  0x3d   : > { %p5447_p11 = pnand %p5445_p9, %p5717_p10 }
  0x3f   : > { %p5448_p1 = pneg %p5447_p11 }
  0x41   : > { %p5453_p5 = pnand %p5451_p4, %p5448_p1 }
  0x43   : > { %5456 = shalt.err (!%p5453_p5)
}
  0x44   : > { %s5457_s11 = scalar_lea.vmem %s5707_s14, 4096  ;;  %p5465_p0 = scmp.lt.s32.totalorder %s5707_s14, %s5707_s14 }
  0x45   : > { %p5458_p6 = scmp.ne.s32.totalorder %s5707_s14, %s5457_s11  ;;  %p5466_p2 = scmp.lt.s32.totalorder %s5457_s11, %s5457_s11 }
  0x47   : > { %p5460_p12 = pnand %p5458_p6, %p5717_p10  ;;  %p5467_p3 = por %p5466_p2, %p5465_p0 }
  0x49   : > { %p5461_p13 = pneg %p5460_p12 }
  0x4b   : > { %p5468_p7 = pnand %p5467_p3, %p5461_p13 }
  0x4d   : > { %5471 = shalt.err (!%p5468_p7)
}
  0x4e   : > { %s5607_s18 = smov 64   ;;  %s5608_s19 = smov 4  }
  0x4f   : > { %4692 = dma.hbm_to_vmem [thread:$0]  (!%p5701_p8), %s6442_s3, 4096, %s5707_s14, [#allocation7], %s5607_s18, %s5607_s18, %s5608_s19  }
  0x50   : > { %s5609_s22 = smov [#allocation11]   ;;  %s5472_s10 = scalar_lea.hbm %s6445_s6, 16 }
  0x51   : > { %s257_s23 = sshll.u32 %s5609_s22, 4  ;;  %p5473_p9 = scmp.ne.s32.totalorder %s6445_s6, %s5472_s10  ;;  %s258_s23 = int_to_ptr.vmem [resolvable:$true] %s257_s23 }
  0x52   : > { %p5479_p4 = scmp.lt.u32.totalorder %s5472_s10, %s6445_s6 }
  0x53   : > { %p5475_p11 = pnand %p5473_p9, %p5717_p10 }
  0x55   : > { %p5476_p1 = pneg %p5475_p11 }
  0x57   : > { %p5481_p5 = pnand %p5479_p4, %p5476_p1 }
  0x59   : > { %5484 = shalt.err (!%p5481_p5)
}
  0x5a   : > { %s5485_s14 = scalar_lea.vmem %s258_s23, 16  ;;  %s5492_s11 = scalar_lea.vmem %s258_s23, 32 }
  0x5b   : > { %p5486_p6 = scmp.ne.s32.totalorder %s258_s23, %s5485_s14  ;;  %p5493_p0 = scmp.lt.s32.totalorder %s258_s23, %s258_s23 }
  0x5c   : > { %p5494_p2 = scmp.lt.s32.totalorder %s5492_s11, %s5485_s14 }
  0x5d   : > { %p5488_p12 = pnand %p5486_p6, %p5717_p10 }
  0x5e   : > { %p5495_p3 = por %p5494_p2, %p5493_p0 }
  0x5f   : > { %p5489_p13 = pneg %p5488_p12 }
  0x61   : > { %p5496_p7 = pnand %p5495_p3, %p5489_p13 }
  0x63   : > { %5499 = shalt.err (!%p5496_p7)
}
  0x64   : > { %4698 = dma.hbm_to_vmem [thread:$0]  (!%p5701_p8), %s6445_s6, 16, %s258_s23, [#allocation10]  }
  0x65   : > { %s5799_s20 = sadd.s32 1, %s5602_s27   ;;  %s56_s9 = sadd.s32 1, %s5598_s26 }
  0x66   : > { %s53_s21 = ssub.s32 %s5602_s27, %s5799_s20  ;;  %p63_p10 = scmp.ne.s32.totalorder %s5598_s26, %s5594_s25 }
  0x67   : > { %p54_p9 = scmp.eq.s32.totalorder %s53_s21, 0  ;;  %p64_p11 = scmp.eq.s32.totalorder %s5602_s27, 0 }
  0x68   : > { %p4707_p1 = scmp.lt.s32.totalorder %s5602_s27, 4  ;;  %s275_s12 = sand.u32 1, %s5598_s26  }
  0x69   : > { %s5810_s22 = scalar_select %p54_p9, %s5598_s26, %s56_s9  }
  0x6a   : > { %p65_p4 = por %p64_p11, %p63_p10  ;;  %s4660_s24 = smul.u32 3136, %s275_s12 }
  0x6b   : > { %s4661_s8 = smul.u32 50176, %s5602_s27  ;;  %s5824_s27 = scalar_lea.sflag [#allocation4], %s275_s12 }
  0x6c   : > { %p5813_p5 = pnand %p4707_p1, %p65_p4  ;;  %s279_s16 = scalar_lea.vmem [#allocation3], %s4660_s24 }
  0x6d   : > { %s5820_s15 = scalar_lea.hbm %s6440_s1, %s4661_s8  ;;  %s286_s17 = sshll.u32 %s279_s16, 4  ;;  %s5822_s17 = int_to_ptr.vmem [resolvable:$true] %s286_s17 }
  0x6e   : > { %s5500_s14 = scalar_lea.hbm %s5820_s15, 50176  ;;  %p5502_p6 = pneg %p5813_p5 }
  0x6f   : > { %p5501_p8 = scmp.ne.s32.totalorder %s5820_s15, %s5500_s14  ;;  %s5505_s19 = scalar_lea.hbm %s6440_s1, 200704 }
  0x70   : > { %p5506_p0 = scmp.lt.u32.totalorder %s5820_s15, %s6440_s1  ;;  %p5507_p2 = scmp.lt.u32.totalorder %s5505_s19, %s5500_s14 }
  0x71   : > { %p5503_p12 = pnand %p5502_p6, %p5501_p8  ;;  %p5509_p7 = scmp.lt.u32.totalorder %s5500_s14, %s5820_s15 }
  0x72   : > { %p5508_p3 = por %p5507_p2, %p5506_p0 }
  0x73   : > { %p5504_p13 = pneg %p5503_p12 }
  0x74   : > { %p5510_p10 = por %p5509_p7, %p5508_p3 }
  0x76   : > { %p5511_p9 = pnand %p5510_p10, %p5504_p13 }
  0x78   : > { %5514 = shalt.err (!%p5511_p9)
}
  0x79   : > { %s5515_s12 = scalar_lea.vmem %s5822_s17, 50176  ;;  %s5610_s24 = smov [#allocation3]  }
  0x7a   : > { %p5516_p11 = scmp.ne.s32.totalorder %s5822_s17, %s5515_s12  ;;  %s5520_s8 = sshll.u32 %s5610_s24, 4  ;;  %s5521_s8 = int_to_ptr.vmem [resolvable:$false] %s5520_s8 }
  0x7b   : > { %s5522_s23 = scalar_lea.vmem %s5521_s8, 100352  ;;  %p5523_p8 = scmp.lt.s32.totalorder %s5822_s17, %s5521_s8 }
  0x7c   : > { %p5518_p1 = pnand %p5516_p11, %p5502_p6  ;;  %p5524_p12 = scmp.lt.s32.totalorder %s5522_s23, %s5515_s12 }
  0x7e   : > { %p5519_p4 = pneg %p5518_p1  ;;  %p5525_p0 = por %p5524_p12, %p5523_p8 }
  0x80   : > { %p5526_p2 = pnand %p5525_p0, %p5519_p4 }
  0x82   : > { %5529 = shalt.err (!%p5526_p2)
}
  0x83   : > { %s5611_s13 = smov 256   ;;  %s5612_s16 = smov 16  }
  0x84   : > { %4702 = dma.hbm_to_vmem [thread:$0]  (!%p5813_p5), %s5820_s15, 50176, %s5822_s17, %s5824_s27, %s5611_s13, %s5611_s13, %s5612_s16  }
  0x85   : > { %p6455_p6 = scmp.ne.s32.totalorder %s6451_s30, 0 }
  0x86   : > { %s300_s14 = sand.u32 (!%p6455_p6), 1, %s5594_s25   ;;  %p6456_p13 = scmp.ne.s32.totalorder (!%p6455_p6), %s6450_s29, 0 }
  0x87   : > { %298 = sbr.rel (%p6455_p6) target bundleno = 1571 (0x623), region = 48  ;;  %s301_s18 = scalar_lea.sflag (!%p6455_p6), [#allocation4], %s300_s14 }
  0x88   : > { %s4662_s11 = smul.u32 (!%p6455_p6), 3136, %s300_s14 }
  0x8a   : > { %s5855_s19 = scalar_lea.vmem (!%p6455_p6), [#allocation3], %s4662_s11 }
  0x8e   : > { %5573 = dma.done.wait (%p6456_p13), %s301_s18, 50176  }
  0x8f   : > { %5575 = vsyncadd (%p6456_p13), %s301_s18, 4294917120  ;;  %p6457_p3 = scmp.eq.s32.totalorder %s5680_s28, 0 }
  0x91   : > { %5577 = dma.done.wait (%p6457_p3), [#allocation7], 4160   ;;  %p6458_p5 = pmov %p6457_p3 }
  0x92   : > { %p6459_p7 = pmov %p6457_p3 }
  0x93   : > { %5579 = vsyncadd (%p6458_p5), [#allocation7], 4294963136 }
  0x94   : > { %5581 = dma.done.wait (%p6459_p7), [#allocation10], 32   ;;  %p6460_p10 = pmov %p6457_p3 }
  0x95   : > { %p350_p9 = scmp.lt.s32.totalorder %s5680_s28, 3  ;;  %p6461_p11 = scmp.ne.s32.totalorder %s5680_s28, 0 }
  0x96   : > { %5583 = vsyncadd (%p6460_p10), [#allocation10], 4294967264  ;;  %v5613_v0 = vmov (!%p6461_p11), 0.0  }
  0x97   : > { %s351_s30 = scalar_select %p350_p9, %s5680_s28, 3 }
  0x98   : > { %358 = sbr.rel (%p6461_p11) target bundleno = 159 (0x9f), region = 72  ;;  %359 = vst [vmem:[#allocation2] sm:$0xff] (!%p6461_p11), %v5613_v0 }
  0x99   : > { %s4663_s10 = smul.u32 13, %s351_s30 }
  0x9b   : > { %s5874_s17 = scalar_lea.vmem %s6439_s0, %s4663_s10 }
  0x9f PF: > { %v4762_v1 = vld [vmem:[%s5855_s19 + $0x4] ss:$16 sps:$4 sm:$0xff]   ;;  %v4764_v2 = vld [vmem:[%s5855_s19 + $0xc] ss:$16 sps:$4 sm:$0xff]   ;;  %v4766_v3 = vld [vmem:[%s5855_s19] ss:$16 sps:$4 sm:$0xff]   ;;  %v761_v39 = vlaneseq }
  0xa0   : > { %2821 = vmatprep.subr.bf16.mxu0 %v4762_v1  ;;  %v4767_v4 = vld [vmem:[%s5855_s19 + $0x8] ss:$16 sps:$4 sm:$0xff]   ;;  %3108 = vmatprep.subr.bf16.mxu1 %v4764_v2  ;;  %v4768_v5 = vld [vmem:[%s5855_s19 + $0x24] ss:$16 sps:$4 sm:$0xff]   ;;  %v4770_v6 = vld [vmem:[%s5855_s19 + $0x2c] ss:$16 sps:$4 sm:$0xff]  }
  0xa1   : > { %2822 = vmatpush1.bf16.msra.mxu0 %v4766_v3  ;;  %3109 = vmatpush1.bf16.msra.mxu1 %v4767_v4  ;;  %v4772_v7 = vld [vmem:[%s5855_s19 + $0x20] ss:$16 sps:$4 sm:$0xff]   ;;  %v4773_v8 = vld [vmem:[%s5855_s19 + $0x28] ss:$16 sps:$4 sm:$0xff]   ;;  %v4774_v9 = vld [vmem:[%s5855_s19 + $0x44] ss:$16 sps:$4 sm:$0xff]  }
  0xa2   : > { %2823 = vmatprep.subr.bf16.mxu0 %v4768_v5  ;;  %3110 = vmatprep.subr.bf16.mxu1 %v4770_v6  ;;  %v4776_v10 = vld [vmem:[%s5855_s19 + $0x4c] ss:$16 sps:$4 sm:$0xff]   ;;  %v4778_v11 = vld [vmem:[%s5855_s19 + $0x40] ss:$16 sps:$4 sm:$0xff]   ;;  %v4779_v12 = vld [vmem:[%s5855_s19 + $0x48] ss:$16 sps:$4 sm:$0xff]  }
  0xa3   : > { %v4780_v13 = vld [vmem:[%s5855_s19 + $0x64] ss:$16 sps:$4 sm:$0xff]   ;;  %v4782_v14 = vld [vmem:[%s5855_s19 + $0x6c] ss:$16 sps:$4 sm:$0xff]   ;;  %v4784_v15 = vld [vmem:[%s5855_s19 + $0x60] ss:$16 sps:$4 sm:$0xff]  }
  0xa4   : > { %v4785_v16 = vld [vmem:[%s5855_s19 + $0x68] ss:$16 sps:$4 sm:$0xff]   ;;  %v4786_v17 = vld [vmem:[%s5855_s19 + $0x84] ss:$16 sps:$4 sm:$0xff]   ;;  %v4788_v18 = vld [vmem:[%s5855_s19 + $0x8c] ss:$16 sps:$4 sm:$0xff]  }
  0xa5   : > { %2824 = vmatpush1.bf16.msra.mxu0 %v4772_v7  ;;  %3111 = vmatpush1.bf16.msra.mxu1 %v4773_v8  ;;  %v4790_v19 = vld [vmem:[%s5855_s19 + $0x80] ss:$16 sps:$4 sm:$0xff]   ;;  %v4791_v20 = vld [vmem:[%s5855_s19 + $0x88] ss:$16 sps:$4 sm:$0xff]   ;;  %v4792_v21 = vld [vmem:[%s5855_s19 + $0xa4] ss:$16 sps:$4 sm:$0xff]  }
  0xa6   : > { %2825 = vmatprep.subr.bf16.mxu0 %v4774_v9  ;;  %3112 = vmatprep.subr.bf16.mxu1 %v4776_v10  ;;  %v4794_v22 = vld [vmem:[%s5855_s19 + $0xac] ss:$16 sps:$4 sm:$0xff]   ;;  %v4796_v23 = vld [vmem:[%s5855_s19 + $0xa0] ss:$16 sps:$4 sm:$0xff]   ;;  %v4797_v24 = vld [vmem:[%s5855_s19 + $0xa8] ss:$16 sps:$4 sm:$0xff]  }
  0xa7   : > { %v4798_v25 = vld [vmem:[%s5855_s19 + $0xc4] ss:$16 sps:$4 sm:$0xff]   ;;  %v4800_v26 = vld [vmem:[%s5855_s19 + $0xcc] ss:$16 sps:$4 sm:$0xff]   ;;  %v4802_v27 = vld [vmem:[%s5855_s19 + $0xc0] ss:$16 sps:$4 sm:$0xff]  }
  0xa8   : > { %v4803_v28 = vld [vmem:[%s5855_s19 + $0xc8] ss:$16 sps:$4 sm:$0xff]   ;;  %v4804_v29 = vld [vmem:[%s5855_s19 + $0xe4] ss:$16 sps:$4 sm:$0xff]   ;;  %v4806_v30 = vld [vmem:[%s5855_s19 + $0xec] ss:$16 sps:$4 sm:$0xff]  }
  0xa9   : > { %2826 = vmatpush1.bf16.msra.mxu0 %v4778_v11  ;;  %3113 = vmatpush1.bf16.msra.mxu1 %v4779_v12  ;;  %v4808_v31 = vld [vmem:[%s5855_s19 + $0xe0] ss:$16 sps:$4 sm:$0xff]   ;;  %v4809_v32 = vld [vmem:[%s5855_s19 + $0xe8] ss:$16 sps:$4 sm:$0xff]   ;;  %v4810_v33 = vld [vmem:[%s5855_s19 + $0x104] ss:$16 sps:$4 sm:$0xff]  }
  0xaa   : > { %2827 = vmatprep.subr.bf16.mxu0 %v4780_v13  ;;  %3114 = vmatprep.subr.bf16.mxu1 %v4782_v14  ;;  %v4812_v34 = vld [vmem:[%s5855_s19 + $0x10c] ss:$16 sps:$4 sm:$0xff]   ;;  %v4814_v35 = vld [vmem:[%s5855_s19 + $0x100] ss:$16 sps:$4 sm:$0xff]   ;;  %v4815_v36 = vld [vmem:[%s5855_s19 + $0x108] ss:$16 sps:$4 sm:$0xff]  }
  0xab   : > { %v5614_v37 = vmov 1966171168   ;;  %v4816_v40 = vld [vmem:[%s5855_s19 + $0x124] ss:$16 sps:$4 sm:$0xff]   ;;  %v4818_v41 = vld [vmem:[%s5855_s19 + $0x12c] ss:$16 sps:$4 sm:$0xff]  }
  0xac   : > { %v759_v38 = vunpack.c.l.s4 %v5614_v37  ;;  %v4820_v42 = vld [vmem:[%s5855_s19 + $0x120] ss:$16 sps:$4 sm:$0xff]   ;;  %v5917_v44 = vshrl.u32 %v761_v39, 7  ;;  %v4821_v45 = vld [vmem:[%s5855_s19 + $0x128] ss:$16 sps:$4 sm:$0xff]   ;;  %vm2817_vm0 = vcmask 261120  }
  0xad   : > { %2828 = vmatpush1.bf16.msra.mxu0 %v4784_v15  ;;  %3115 = vmatpush1.bf16.msra.mxu1 %v4785_v16  ;;  %v4822_v46 = vld [vmem:[%s5855_s19 + $0x144] ss:$16 sps:$4 sm:$0xff]   ;;  %v4824_v47 = vld [vmem:[%s5855_s19 + $0x14c] ss:$16 sps:$4 sm:$0xff]   ;;  %v4826_v48 = vld [vmem:[%s5855_s19 + $0x140] ss:$16 sps:$4 sm:$0xff]  }
  0xae   : > { %2829 = vmatprep.subr.bf16.mxu0 %v4786_v17  ;;  %3116 = vmatprep.subr.bf16.mxu1 %v4788_v18  ;;  %v760_v43 = vunpack.c.0.s8 %v759_v38  ;;  %v4827_v49 = vld [vmem:[%s5855_s19 + $0x148] ss:$16 sps:$4 sm:$0xff]   ;;  %v4828_v51 = vld [vmem:[%s5855_s19 + $0x164] ss:$16 sps:$4 sm:$0xff]   ;;  %v4830_v52 = vld [vmem:[%s5855_s19 + $0x16c] ss:$16 sps:$4 sm:$0xff]  }
  0xaf   : > { %v5930_v53 = vld [vmem:[%s5874_s17] sm:$0xff]  ;;  %v4832_v54 = vld [vmem:[%s5855_s19 + $0x160] ss:$16 sps:$4 sm:$0xff]   ;;  %v4834_v57 = vld [vmem:[%s5855_s19 + $0x184] ss:$16 sps:$4 sm:$0xff]   ;;  %p4453_p1 = scmp.ne.s32.totalorder %s5680_s28, 3 }
  0xb0   : > { %v5925_v50 = vsub.s32 %v760_v43, %v5917_v44  ;;  %v4833_v56 = vld [vmem:[%s5855_s19 + $0x168] ss:$16 sps:$4 sm:$0xff]   ;;  %v4836_v58 = vld [vmem:[%s5855_s19 + $0x18c] ss:$16 sps:$4 sm:$0xff]   ;;  %v4838_v60 = vld [vmem:[%s5855_s19 + $0x180] ss:$16 sps:$4 sm:$0xff]  }
  0xb1   : > { %2830 = vmatpush1.bf16.msra.mxu0 %v4790_v19  ;;  %3117 = vmatpush1.bf16.msra.mxu1 %v4791_v20  ;;  %v4839_v62 = vld [vmem:[%s5855_s19 + $0x188] ss:$16 sps:$4 sm:$0xff]   ;;  %v4840_v63 = vld [vmem:[%s5855_s19 + $0x1a4] ss:$16 sps:$4 sm:$0xff]   ;;  %v4842_v0 = vld [vmem:[%s5855_s19 + $0x1ac] ss:$16 sps:$4 sm:$0xff]  }
  0xb2   : > { %2831 = vmatprep.subr.bf16.mxu0 %v4792_v21  ;;  %3118 = vmatprep.subr.bf16.mxu1 %v4794_v22  ;;  %v764_v55 = vrot.slane %v5930_v53, %v5925_v50  ;;  %v4844_v1 = vld [vmem:[%s5855_s19 + $0x1a0] ss:$16 sps:$4 sm:$0xff]   ;;  %v4845_v2 = vld [vmem:[%s5855_s19 + $0x1a8] ss:$16 sps:$4 sm:$0xff]   ;;  %v4846_v3 = vld [vmem:[%s5855_s19 + $0x1c4] ss:$16 sps:$4 sm:$0xff]  }
  0xb3   : > { %v4848_v4 = vld [vmem:[%s5855_s19 + $0x1cc] ss:$16 sps:$4 sm:$0xff]   ;;  %v4850_v5 = vld [vmem:[%s5855_s19 + $0x1c0] ss:$16 sps:$4 sm:$0xff]   ;;  %v4851_v6 = vld [vmem:[%s5855_s19 + $0x1c8] ss:$16 sps:$4 sm:$0xff]  }
  0xb4   : > { %v772_v59 = vcombine.high %v764_v55, %v764_v55  ;;  %v4852_v7 = vld [vmem:[%s5855_s19 + $0x1e4] ss:$16 sps:$4 sm:$0xff]   ;;  %v4854_v8 = vld [vmem:[%s5855_s19 + $0x1ec] ss:$16 sps:$4 sm:$0xff]   ;;  %v4856_v9 = vld [vmem:[%s5855_s19 + $0x1e0] ss:$16 sps:$4 sm:$0xff]   ;;  %v5957_v14 = vrot.slane %v764_v55, %v5925_v50 }
  0xb5   : > { %2832 = vmatpush1.bf16.msra.mxu0 %v4796_v23  ;;  %3119 = vmatpush1.bf16.msra.mxu1 %v4797_v24  ;;  %v4857_v10 = vld [vmem:[%s5855_s19 + $0x1e8] ss:$16 sps:$4 sm:$0xff]   ;;  %v4860_v11 = vld [vmem:[%s5855_s19 + $0x204] ss:$16 sps:$4 sm:$0xff]   ;;  %v4863_v12 = vld [vmem:[%s5855_s19 + $0x20c] ss:$16 sps:$4 sm:$0xff]  }
  0xb6   : > { %2833 = vmatprep.subr.bf16.mxu0 %v4798_v25  ;;  %3120 = vmatprep.subr.bf16.mxu1 %v4800_v26  ;;  %v794_v61 = vrot.slane %v772_v59, %v5925_v50  ;;  %v4858_v13 = vld [vmem:[%s5855_s19 + $0x200] ss:$16 sps:$4 sm:$0xff]   ;;  %v4861_v15 = vld [vmem:[%s5855_s19 + $0x208] ss:$16 sps:$4 sm:$0xff]   ;;  %v4866_v16 = vld [vmem:[%s5855_s19 + $0x224] ss:$16 sps:$4 sm:$0xff]  }
  0xb7   : > { %v4869_v17 = vld [vmem:[%s5855_s19 + $0x22c] ss:$16 sps:$4 sm:$0xff]   ;;  %v4864_v19 = vld [vmem:[%s5855_s19 + $0x220] ss:$16 sps:$4 sm:$0xff]   ;;  %v4867_v20 = vld [vmem:[%s5855_s19 + $0x228] ss:$16 sps:$4 sm:$0xff]  }
  0xb8   : > { %2853 = vmatprep.mubr.bf16.mxu0 %v794_v61  ;;  %3140 = vmatprep.mubr.bf16.mxu1 %v794_v61  ;;  %v804_v18 = vcombine.high %v794_v61, %v794_v61  ;;  %v4872_v21 = vld [vmem:[%s5855_s19 + $0x244] ss:$16 sps:$4 sm:$0xff]   ;;  %v4875_v22 = vld [vmem:[%s5855_s19 + $0x24c] ss:$16 sps:$4 sm:$0xff]   ;;  %v4870_v23 = vld [vmem:[%s5855_s19 + $0x240] ss:$16 sps:$4 sm:$0xff]  }
  0xb9   : > { %2834 = vmatpush1.bf16.msra.mxu0 %v4802_v27  ;;  %3121 = vmatpush1.bf16.msra.mxu1 %v4803_v28  ;;  %v4873_v24 = vld [vmem:[%s5855_s19 + $0x248] ss:$16 sps:$4 sm:$0xff]   ;;  %v4878_v25 = vld [vmem:[%s5855_s19 + $0x264] ss:$16 sps:$4 sm:$0xff]   ;;  %v4881_v26 = vld [vmem:[%s5855_s19 + $0x26c] ss:$16 sps:$4 sm:$0xff]  }
  0xba   : > { %2835 = vmatprep.subr.bf16.mxu0 %v4804_v29  ;;  %3122 = vmatprep.subr.bf16.mxu1 %v4806_v30  ;;  %v4876_v27 = vld [vmem:[%s5855_s19 + $0x260] ss:$16 sps:$4 sm:$0xff]   ;;  %v4879_v28 = vld [vmem:[%s5855_s19 + $0x268] ss:$16 sps:$4 sm:$0xff]   ;;  %v4884_v29 = vld [vmem:[%s5855_s19 + $0x284] ss:$16 sps:$4 sm:$0xff]  }
  0xbb   : > { %v4887_v30 = vld [vmem:[%s5855_s19 + $0x28c] ss:$16 sps:$4 sm:$0xff]   ;;  %v4896_v37 = vld [vmem:[%s5855_s19 + $0x2c4] ss:$16 sps:$4 sm:$0xff]   ;;  %v4894_v39 = vld [vmem:[%s5855_s19 + $0x2c0] ss:$16 sps:$4 sm:$0xff]  }
  0xbc   : > { %v4899_v38 = vld [vmem:[%s5855_s19 + $0x2cc] ss:$16 sps:$4 sm:$0xff]   ;;  %v4900_v43 = vld [vmem:[%s5855_s19 + $0x2e0] ss:$16 sps:$4 sm:$0xff]   ;;  %v4915_v55 = vld [vmem:[%s5855_s19 + $0x328] ss:$16 sps:$4 sm:$0xff]  }
  0xbd   : > { %2836 = vmatpush1.bf16.msra.mxu0 %v4808_v31  ;;  %3123 = vmatpush1.bf16.msra.mxu1 %v4809_v32  ;;  %v4882_v31 = vld [vmem:[%s5855_s19 + $0x280] ss:$16 sps:$4 sm:$0xff]   ;;  %v4885_v32 = vld [vmem:[%s5855_s19 + $0x288] ss:$16 sps:$4 sm:$0xff]   ;;  %v4929_v61 = vld [vmem:[%s5855_s19 + $0x36c] ss:$16 sps:$4 sm:$0xff]  }
  0xbe   : > { %2837 = vmatprep.subr.bf16.mxu0 %v4810_v33  ;;  %3124 = vmatprep.subr.bf16.mxu1 %v4812_v34  ;;  %v4890_v33 = vld [vmem:[%s5855_s19 + $0x2a4] ss:$16 sps:$4 sm:$0xff]   ;;  %v4893_v34 = vld [vmem:[%s5855_s19 + $0x2ac] ss:$16 sps:$4 sm:$0xff]   ;;  %v4921_v59 = vld [vmem:[%s5855_s19 + $0x348] ss:$16 sps:$4 sm:$0xff]  }
  0xbf   : > { %vm5618_vm1 = vmmov (!%p4453_p1), 0   ;;  %vm3925_vm2 = vcmask (!%p4453_p1), 74752  }
  0xc1   : > { %2838 = vmatpush1.bf16.msra.mxu0 %v4814_v35  ;;  %3125 = vmatpush1.bf16.msra.mxu1 %v4815_v36  ;;  %v4888_v35 = vld [vmem:[%s5855_s19 + $0x2a0] ss:$16 sps:$4 sm:$0xff]   ;;  %v4891_v36 = vld [vmem:[%s5855_s19 + $0x2a8] ss:$16 sps:$4 sm:$0xff]  }
  0xc2   : > { %2839 = vmatprep.subr.bf16.mxu0 %v4816_v40  ;;  %3126 = vmatprep.subr.bf16.mxu1 %v4818_v41  ;;  %v4897_v40 = vld [vmem:[%s5855_s19 + $0x2c8] ss:$16 sps:$4 sm:$0xff]   ;;  %v4902_v41 = vld [vmem:[%s5855_s19 + $0x2e4] ss:$16 sps:$4 sm:$0xff]  }
  0xc5   : > { %2840 = vmatpush1.bf16.msra.mxu0 %v4820_v42  ;;  %3127 = vmatpush1.bf16.msra.mxu1 %v4821_v45  ;;  %v4905_v42 = vld [vmem:[%s5855_s19 + $0x2ec] ss:$16 sps:$4 sm:$0xff]   ;;  %v4903_v45 = vld [vmem:[%s5855_s19 + $0x2e8] ss:$16 sps:$4 sm:$0xff]  }
  0xc6   : > { %2841 = vmatprep.subr.bf16.mxu0 %v4822_v46  ;;  %3128 = vmatprep.subr.bf16.mxu1 %v4824_v47  ;;  %v4908_v46 = vld [vmem:[%s5855_s19 + $0x304] ss:$16 sps:$4 sm:$0xff]   ;;  %v4911_v47 = vld [vmem:[%s5855_s19 + $0x30c] ss:$16 sps:$4 sm:$0xff]  }
  0xc9   : > { %2842 = vmatpush1.bf16.msra.mxu0 %v4826_v48  ;;  %3129 = vmatpush1.bf16.msra.mxu1 %v4827_v49  ;;  %v4906_v48 = vld [vmem:[%s5855_s19 + $0x300] ss:$16 sps:$4 sm:$0xff]   ;;  %v4909_v49 = vld [vmem:[%s5855_s19 + $0x308] ss:$16 sps:$4 sm:$0xff]  }
  0xca   : > { %2843 = vmatprep.subr.bf16.mxu0 %v4828_v51  ;;  %3130 = vmatprep.subr.bf16.mxu1 %v4830_v52  ;;  %v4914_v51 = vld [vmem:[%s5855_s19 + $0x324] ss:$16 sps:$4 sm:$0xff]   ;;  %v4917_v52 = vld [vmem:[%s5855_s19 + $0x32c] ss:$16 sps:$4 sm:$0xff]  }
  0xcd   : > { %2844 = vmatpush1.bf16.msra.mxu0 %v4832_v54  ;;  %3131 = vmatpush1.bf16.msra.mxu1 %v4833_v56  ;;  %v4912_v54 = vld [vmem:[%s5855_s19 + $0x320] ss:$16 sps:$4 sm:$0xff]   ;;  %v4920_v56 = vld [vmem:[%s5855_s19 + $0x344] ss:$16 sps:$4 sm:$0xff]  }
  0xce   : > { %2845 = vmatprep.subr.bf16.mxu0 %v4834_v57  ;;  %3132 = vmatprep.subr.bf16.mxu1 %v4836_v58  ;;  %v4923_v57 = vld [vmem:[%s5855_s19 + $0x34c] ss:$16 sps:$4 sm:$0xff]   ;;  %v4918_v58 = vld [vmem:[%s5855_s19 + $0x340] ss:$16 sps:$4 sm:$0xff]  }
  0xd1   : > { %2846 = vmatpush1.bf16.msra.mxu0 %v4838_v60  ;;  %3133 = vmatpush1.bf16.msra.mxu1 %v4839_v62  ;;  %v4926_v60 = vld [vmem:[%s5855_s19 + $0x364] ss:$16 sps:$4 sm:$0xff]   ;;  %v4924_v62 = vld [vmem:[%s5855_s19 + $0x360] ss:$16 sps:$4 sm:$0xff]  }
  0xd2   : > { %2847 = vmatprep.subr.bf16.mxu0 %v4840_v63  ;;  %3134 = vmatprep.subr.bf16.mxu1 %v4842_v0  ;;  %v4927_v63 = vld [vmem:[%s5855_s19 + $0x368] ss:$16 sps:$4 sm:$0xff]   ;;  %v4932_v0 = vld [vmem:[%s5855_s19 + $0x384] ss:$16 sps:$4 sm:$0xff]  }
  0xd5   : > { %2848 = vmatpush1.bf16.msra.mxu0 %v4844_v1  ;;  %3135 = vmatpush1.bf16.msra.mxu1 %v4845_v2  ;;  %v4935_v1 = vld [vmem:[%s5855_s19 + $0x38c] ss:$16 sps:$4 sm:$0xff]   ;;  %v4930_v2 = vld [vmem:[%s5855_s19 + $0x380] ss:$16 sps:$4 sm:$0xff]  }
  0xd6   : > { %2849 = vmatprep.subr.bf16.mxu0 %v4846_v3  ;;  %3136 = vmatprep.subr.bf16.mxu1 %v4848_v4  ;;  %v4933_v3 = vld [vmem:[%s5855_s19 + $0x388] ss:$16 sps:$4 sm:$0xff]   ;;  %v4938_v4 = vld [vmem:[%s5855_s19 + $0x3a4] ss:$16 sps:$4 sm:$0xff]  }
  0xd9   : > { %2850 = vmatpush1.bf16.msra.mxu0 %v4850_v5  ;;  %3137 = vmatpush1.bf16.msra.mxu1 %v4851_v6  ;;  %v4941_v5 = vld [vmem:[%s5855_s19 + $0x3ac] ss:$16 sps:$4 sm:$0xff]   ;;  %v4936_v6 = vld [vmem:[%s5855_s19 + $0x3a0] ss:$16 sps:$4 sm:$0xff]  }
  0xda   : > { %2851 = vmatprep.subr.bf16.mxu0 %v4852_v7  ;;  %3138 = vmatprep.subr.bf16.mxu1 %v4854_v8  ;;  %v4939_v7 = vld [vmem:[%s5855_s19 + $0x3a8] ss:$16 sps:$4 sm:$0xff]   ;;  %v4944_v8 = vld [vmem:[%s5855_s19 + $0x3c4] ss:$16 sps:$4 sm:$0xff]  }
  0xdd   : > { %2852 = vmatpush1.bf16.msra.mxu0 %v4856_v9  ;;  %3139 = vmatpush1.bf16.msra.mxu1 %v4857_v10  ;;  %v4947_v9 = vld [vmem:[%s5855_s19 + $0x3cc] ss:$16 sps:$4 sm:$0xff]   ;;  %v757_v10 = vcombine.high %v5930_v53, %v5930_v53  ;;  %v4951_v53 = vld [vmem:[%s5855_s19 + $0x3e8] ss:$16 sps:$4 sm:$0xff]  }
  0xde   : > { %2862 = vmatprep.subr.bf16.mxu0 %v4860_v11  ;;  %3149 = vmatprep.subr.bf16.mxu1 %v4863_v12  ;;  %v4942_v11 = vld [vmem:[%s5855_s19 + $0x3c0] ss:$16 sps:$4 sm:$0xff]   ;;  %v4945_v12 = vld [vmem:[%s5855_s19 + $0x3c8] ss:$16 sps:$4 sm:$0xff]  }
  0xe0   : > { %2854 = vmatmul.mubr.bf16.vlgmr.msra.gmra.mrb[0].mxu0 %v5957_v14  ;;  %3141 = vmatmul.mubr.bf16.vlgmr.msra.gmra.mrb[0].mxu1 %v5957_v14 }
  0xe1   : > { %2863 = vmatpush1.bf16.msra.mxu0 %v4858_v13  ;;  %3150 = vmatpush1.bf16.msra.mxu1 %v4861_v15  ;;  %v4950_v13 = vld [vmem:[%s5855_s19 + $0x3e4] ss:$16 sps:$4 sm:$0xff]   ;;  %v4953_v15 = vld [vmem:[%s5855_s19 + $0x3ec] ss:$16 sps:$4 sm:$0xff]  }
  0xe2   : > { %2864 = vmatprep.subr.bf16.mxu0 %v4866_v16  ;;  %3151 = vmatprep.subr.bf16.mxu1 %v4869_v17  ;;  %v6023_v16 = vrot.slane %v757_v10, %v5925_v50  ;;  %v4948_v17 = vld [vmem:[%s5855_s19 + $0x3e0] ss:$16 sps:$4 sm:$0xff]   ;;  %v5029_v10 = vld [vmem:[%s5855_s19 + $0x588] ss:$16 sps:$4 sm:$0xff]  }
  0xe3   : > { %2894 = vmatprep.mubr.bf16.mxu0 %v804_v18  ;;  %3181 = vmatprep.mubr.bf16.mxu1 %v804_v18  ;;  %v4956_v18 = vld [vmem:[%s5855_s19 + $0x404] ss:$16 sps:$4 sm:$0xff]  }
  0xe5   : > { %2865 = vmatpush1.bf16.msra.mxu0 %v4864_v19  ;;  %3152 = vmatpush1.bf16.msra.mxu1 %v4867_v20  ;;  %v4959_v19 = vld [vmem:[%s5855_s19 + $0x40c] ss:$16 sps:$4 sm:$0xff]   ;;  %v773_v20 = vcombine.high %v6023_v16, %v6023_v16 }
  0xe6   : > { %2866 = vmatprep.subr.bf16.mxu0 %v4872_v21  ;;  %3153 = vmatprep.subr.bf16.mxu1 %v4875_v22  ;;  %v4954_v21 = vld [vmem:[%s5855_s19 + $0x400] ss:$16 sps:$4 sm:$0xff]   ;;  %v802_v22 = vcombine.high %v5957_v14, %v5957_v14  ;;  %v4963_v14 = vld [vmem:[%s5855_s19 + $0x428] ss:$16 sps:$4 sm:$0xff]  }
  0xe9   : > { %2867 = vmatpush1.bf16.msra.mxu0 %v4870_v23  ;;  %3154 = vmatpush1.bf16.msra.mxu1 %v4873_v24  ;;  %v4957_v23 = vld [vmem:[%s5855_s19 + $0x408] ss:$16 sps:$4 sm:$0xff]   ;;  %v4962_v24 = vld [vmem:[%s5855_s19 + $0x424] ss:$16 sps:$4 sm:$0xff]  }
  0xea   : > { %2868 = vmatprep.subr.bf16.mxu0 %v4878_v25  ;;  %3155 = vmatprep.subr.bf16.mxu1 %v4881_v26  ;;  %v4965_v25 = vld [vmem:[%s5855_s19 + $0x42c] ss:$16 sps:$4 sm:$0xff]   ;;  %v6038_v26 = vrot.slane %v773_v20, %v5925_v50  ;;  %v5046_v20 = vld [vmem:[%s5855_s19 + $0x5e4] ss:$16 sps:$4 sm:$0xff]  }
  0xed   : > { %2869 = vmatpush1.bf16.msra.mxu0 %v4876_v27  ;;  %3156 = vmatpush1.bf16.msra.mxu1 %v4879_v28  ;;  %v4960_v27 = vld [vmem:[%s5855_s19 + $0x420] ss:$16 sps:$4 sm:$0xff]   ;;  %v4968_v28 = vld [vmem:[%s5855_s19 + $0x444] ss:$16 sps:$4 sm:$0xff]  }
  0xee   : > { %2870 = vmatprep.subr.bf16.mxu0 %v4884_v29  ;;  %3157 = vmatprep.subr.bf16.mxu1 %v4887_v30  ;;  %v4971_v29 = vld [vmem:[%s5855_s19 + $0x44c] ss:$16 sps:$4 sm:$0xff]   ;;  %v4966_v30 = vld [vmem:[%s5855_s19 + $0x440] ss:$16 sps:$4 sm:$0xff]  }
  0xf1   : > { %2871 = vmatpush1.bf16.msra.mxu0 %v4882_v31  ;;  %3158 = vmatpush1.bf16.msra.mxu1 %v4885_v32  ;;  %v4969_v31 = vld [vmem:[%s5855_s19 + $0x448] ss:$16 sps:$4 sm:$0xff]   ;;  %v4974_v32 = vld [vmem:[%s5855_s19 + $0x464] ss:$16 sps:$4 sm:$0xff]  }
  0xf2   : > { %2872 = vmatprep.subr.bf16.mxu0 %v4890_v33  ;;  %3159 = vmatprep.subr.bf16.mxu1 %v4893_v34  ;;  %v4977_v33 = vld [vmem:[%s5855_s19 + $0x46c] ss:$16 sps:$4 sm:$0xff]   ;;  %v4972_v34 = vld [vmem:[%s5855_s19 + $0x460] ss:$16 sps:$4 sm:$0xff]  }
  0xf5   : > { %2873 = vmatpush1.bf16.msra.mxu0 %v4888_v35  ;;  %3160 = vmatpush1.bf16.msra.mxu1 %v4891_v36  ;;  %v4975_v35 = vld [vmem:[%s5855_s19 + $0x468] ss:$16 sps:$4 sm:$0xff]   ;;  %v4980_v36 = vld [vmem:[%s5855_s19 + $0x484] ss:$16 sps:$4 sm:$0xff]  }
  0xf6   : > { %2874 = vmatprep.subr.bf16.mxu0 %v4896_v37  ;;  %3161 = vmatprep.subr.bf16.mxu1 %v4899_v38  ;;  %v4983_v37 = vld [vmem:[%s5855_s19 + $0x48c] ss:$16 sps:$4 sm:$0xff]   ;;  %v4978_v38 = vld [vmem:[%s5855_s19 + $0x480] ss:$16 sps:$4 sm:$0xff]  }
  0xf9   : > { %2875 = vmatpush1.bf16.msra.mxu0 %v4894_v39  ;;  %3162 = vmatpush1.bf16.msra.mxu1 %v4897_v40  ;;  %v4981_v39 = vld [vmem:[%s5855_s19 + $0x488] ss:$16 sps:$4 sm:$0xff]   ;;  %v4986_v40 = vld [vmem:[%s5855_s19 + $0x4a4] ss:$16 sps:$4 sm:$0xff]  }
  0xfa   : > { %2876 = vmatprep.subr.bf16.mxu0 %v4902_v41  ;;  %3163 = vmatprep.subr.bf16.mxu1 %v4905_v42  ;;  %v4989_v41 = vld [vmem:[%s5855_s19 + $0x4ac] ss:$16 sps:$4 sm:$0xff]   ;;  %v4984_v42 = vld [vmem:[%s5855_s19 + $0x4a0] ss:$16 sps:$4 sm:$0xff]  }
  0xfd   : > { %2877 = vmatpush1.bf16.msra.mxu0 %v4900_v43  ;;  %3164 = vmatpush1.bf16.msra.mxu1 %v4903_v45  ;;  %v4987_v43 = vld [vmem:[%s5855_s19 + $0x4a8] ss:$16 sps:$4 sm:$0xff]   ;;  %v4992_v45 = vld [vmem:[%s5855_s19 + $0x4c4] ss:$16 sps:$4 sm:$0xff]  }
  0xfe   : > { %2878 = vmatprep.subr.bf16.mxu0 %v4908_v46  ;;  %3165 = vmatprep.subr.bf16.mxu1 %v4911_v47  ;;  %v4995_v46 = vld [vmem:[%s5855_s19 + $0x4cc] ss:$16 sps:$4 sm:$0xff]   ;;  %v4990_v47 = vld [vmem:[%s5855_s19 + $0x4c0] ss:$16 sps:$4 sm:$0xff]  }
 0x101   : > { %2879 = vmatpush1.bf16.msra.mxu0 %v4906_v48  ;;  %3166 = vmatpush1.bf16.msra.mxu1 %v4909_v49  ;;  %v4993_v48 = vld [vmem:[%s5855_s19 + $0x4c8] ss:$16 sps:$4 sm:$0xff]   ;;  %v4998_v49 = vld [vmem:[%s5855_s19 + $0x4e4] ss:$16 sps:$4 sm:$0xff]  }
 0x102   : > { %2880 = vmatprep.subr.bf16.mxu0 %v4914_v51  ;;  %3167 = vmatprep.subr.bf16.mxu1 %v4917_v52  ;;  %v5001_v51 = vld [vmem:[%s5855_s19 + $0x4ec] ss:$16 sps:$4 sm:$0xff]   ;;  %v4996_v52 = vld [vmem:[%s5855_s19 + $0x4e0] ss:$16 sps:$4 sm:$0xff]  }
 0x105   : > { %2881 = vmatpush1.bf16.msra.mxu0 %v4912_v54  ;;  %3168 = vmatpush1.bf16.msra.mxu1 %v4915_v55  ;;  %v4999_v54 = vld [vmem:[%s5855_s19 + $0x4e8] ss:$16 sps:$4 sm:$0xff]   ;;  %v5004_v55 = vld [vmem:[%s5855_s19 + $0x504] ss:$16 sps:$4 sm:$0xff]  }
 0x106   : > { %2882 = vmatprep.subr.bf16.mxu0 %v4920_v56  ;;  %3169 = vmatprep.subr.bf16.mxu1 %v4923_v57  ;;  %v5007_v56 = vld [vmem:[%s5855_s19 + $0x50c] ss:$16 sps:$4 sm:$0xff]   ;;  %v5002_v57 = vld [vmem:[%s5855_s19 + $0x500] ss:$16 sps:$4 sm:$0xff]  }
 0x109   : > { %2883 = vmatpush1.bf16.msra.mxu0 %v4918_v58  ;;  %3170 = vmatpush1.bf16.msra.mxu1 %v4921_v59  ;;  %v5005_v58 = vld [vmem:[%s5855_s19 + $0x508] ss:$16 sps:$4 sm:$0xff]   ;;  %v5010_v59 = vld [vmem:[%s5855_s19 + $0x524] ss:$16 sps:$4 sm:$0xff]  }
 0x10a   : > { %2884 = vmatprep.subr.bf16.mxu0 %v4926_v60  ;;  %3171 = vmatprep.subr.bf16.mxu1 %v4929_v61  ;;  %v5013_v60 = vld [vmem:[%s5855_s19 + $0x52c] ss:$16 sps:$4 sm:$0xff]   ;;  %v5008_v61 = vld [vmem:[%s5855_s19 + $0x520] ss:$16 sps:$4 sm:$0xff]  }
 0x10d   : > { %2885 = vmatpush1.bf16.msra.mxu0 %v4924_v62  ;;  %3172 = vmatpush1.bf16.msra.mxu1 %v4927_v63  ;;  %v5011_v62 = vld [vmem:[%s5855_s19 + $0x528] ss:$16 sps:$4 sm:$0xff]   ;;  %v5016_v63 = vld [vmem:[%s5855_s19 + $0x544] ss:$16 sps:$4 sm:$0xff]  }
 0x10e   : > { %2886 = vmatprep.subr.bf16.mxu0 %v4932_v0  ;;  %3173 = vmatprep.subr.bf16.mxu1 %v4935_v1  ;;  %v5019_v0 = vld [vmem:[%s5855_s19 + $0x54c] ss:$16 sps:$4 sm:$0xff]   ;;  %v5014_v1 = vld [vmem:[%s5855_s19 + $0x540] ss:$16 sps:$4 sm:$0xff]  }
 0x111   : > { %2887 = vmatpush1.bf16.msra.mxu0 %v4930_v2  ;;  %3174 = vmatpush1.bf16.msra.mxu1 %v4933_v3  ;;  %v5017_v2 = vld [vmem:[%s5855_s19 + $0x548] ss:$16 sps:$4 sm:$0xff]   ;;  %v5022_v3 = vld [vmem:[%s5855_s19 + $0x564] ss:$16 sps:$4 sm:$0xff]  }
 0x112   : > { %2888 = vmatprep.subr.bf16.mxu0 %v4938_v4  ;;  %3175 = vmatprep.subr.bf16.mxu1 %v4941_v5  ;;  %v5025_v4 = vld [vmem:[%s5855_s19 + $0x56c] ss:$16 sps:$4 sm:$0xff]   ;;  %v5020_v5 = vld [vmem:[%s5855_s19 + $0x560] ss:$16 sps:$4 sm:$0xff]  }
 0x115   : > { %2889 = vmatpush1.bf16.msra.mxu0 %v4936_v6  ;;  %3176 = vmatpush1.bf16.msra.mxu1 %v4939_v7  ;;  %v5023_v6 = vld [vmem:[%s5855_s19 + $0x568] ss:$16 sps:$4 sm:$0xff]   ;;  %v5028_v7 = vld [vmem:[%s5855_s19 + $0x584] ss:$16 sps:$4 sm:$0xff]  }
 0x116   : > { %2890 = vmatprep.subr.bf16.mxu0 %v4944_v8  ;;  %3177 = vmatprep.subr.bf16.mxu1 %v4947_v9  ;;  %v5031_v8 = vld [vmem:[%s5855_s19 + $0x58c] ss:$16 sps:$4 sm:$0xff]   ;;  %v5026_v9 = vld [vmem:[%s5855_s19 + $0x580] ss:$16 sps:$4 sm:$0xff]  }
 0x119   : > { %2891 = vmatpush1.bf16.msra.mxu0 %v4942_v11  ;;  %3178 = vmatpush1.bf16.msra.mxu1 %v4945_v12  ;;  %v5034_v11 = vld [vmem:[%s5855_s19 + $0x5a4] ss:$16 sps:$4 sm:$0xff]   ;;  %v5037_v12 = vld [vmem:[%s5855_s19 + $0x5ac] ss:$16 sps:$4 sm:$0xff]  }
 0x11a   : > { %2892 = vmatprep.subr.bf16.mxu0 %v4950_v13  ;;  %3179 = vmatprep.subr.bf16.mxu1 %v4953_v15  ;;  %v5032_v13 = vld [vmem:[%s5855_s19 + $0x5a0] ss:$16 sps:$4 sm:$0xff]   ;;  %v5035_v15 = vld [vmem:[%s5855_s19 + $0x5a8] ss:$16 sps:$4 sm:$0xff]  }
 0x11d   : > { %2893 = vmatpush1.bf16.msra.mxu0 %v4948_v17  ;;  %3180 = vmatpush1.bf16.msra.mxu1 %v4951_v53  ;;  %v5040_v17 = vld [vmem:[%s5855_s19 + $0x5c4] ss:$16 sps:$4 sm:$0xff]   ;;  %v5043_v53 = vld [vmem:[%s5855_s19 + $0x5cc] ss:$16 sps:$4 sm:$0xff]  }
 0x11e   : > { %2903 = vmatprep.subr.bf16.mxu0 %v4956_v18  ;;  %3190 = vmatprep.subr.bf16.mxu1 %v4959_v19  ;;  %v5038_v18 = vld [vmem:[%s5855_s19 + $0x5c0] ss:$16 sps:$4 sm:$0xff]   ;;  %v5041_v19 = vld [vmem:[%s5855_s19 + $0x5c8] ss:$16 sps:$4 sm:$0xff]  }
 0x120   : > { %2895 = vmatmul.mubr.bf16.vlgmr.msra.gmra.mrb[0].mxu0 %v802_v22  ;;  %3182 = vmatmul.mubr.bf16.vlgmr.msra.gmra.mrb[0].mxu1 %v802_v22  ;;  %v5044_v22 = vld [vmem:[%s5855_s19 + $0x5e0] ss:$16 sps:$4 sm:$0xff]  }
 0x121   : > { %2904 = vmatpush1.bf16.msra.mxu0 %v4954_v21  ;;  %3191 = vmatpush1.bf16.msra.mxu1 %v4957_v23  ;;  %v5049_v21 = vld [vmem:[%s5855_s19 + $0x5ec] ss:$16 sps:$4 sm:$0xff]   ;;  %v5047_v23 = vld [vmem:[%s5855_s19 + $0x5e8] ss:$16 sps:$4 sm:$0xff]  }
 0x122   : > { %2905 = vmatprep.subr.bf16.mxu0 %v4962_v24  ;;  %3192 = vmatprep.subr.bf16.mxu1 %v4965_v25  ;;  %v5053_v24 = vld [vmem:[%s5855_s19 + $0x604] ss:$16 sps:$4 sm:$0xff]   ;;  %v5056_v25 = vld [vmem:[%s5855_s19 + $0x60c] ss:$16 sps:$4 sm:$0xff]  }
 0x123   : > { %2935 = vmatprep.mubr.bf16.mxu0 %v6038_v26  ;;  %3222 = vmatprep.mubr.bf16.mxu1 %v6038_v26 }
 0x125   : > { %2906 = vmatpush1.bf16.msra.mxu0 %v4960_v27  ;;  %3193 = vmatpush1.bf16.msra.mxu1 %v4963_v14  ;;  %v5051_v27 = vld [vmem:[%s5855_s19 + $0x600] ss:$16 sps:$4 sm:$0xff]   ;;  %v6105_v14 = vrot.slane %v6023_v16, %v5925_v50 }
 0x126   : > { %2907 = vmatprep.subr.bf16.mxu0 %v4968_v28  ;;  %3194 = vmatprep.subr.bf16.mxu1 %v4971_v29  ;;  %v5054_v28 = vld [vmem:[%s5855_s19 + $0x608] ss:$16 sps:$4 sm:$0xff]   ;;  %v5059_v29 = vld [vmem:[%s5855_s19 + $0x624] ss:$16 sps:$4 sm:$0xff]   ;;  %v5057_v16 = vld [vmem:[%s5855_s19 + $0x620] ss:$16 sps:$4 sm:$0xff]  }
 0x129   : > { %2908 = vmatpush1.bf16.msra.mxu0 %v4966_v30  ;;  %3195 = vmatpush1.bf16.msra.mxu1 %v4969_v31  ;;  %v5062_v30 = vld [vmem:[%s5855_s19 + $0x62c] ss:$16 sps:$4 sm:$0xff]   ;;  %v805_v31 = vcombine.high %v6038_v26, %v6038_v26  ;;  %v5063_v26 = vld [vmem:[%s5855_s19 + $0x640] ss:$16 sps:$4 sm:$0xff]  }
 0x12a   : > { %2909 = vmatprep.subr.bf16.mxu0 %v4974_v32  ;;  %3196 = vmatprep.subr.bf16.mxu1 %v4977_v33  ;;  %v5060_v32 = vld [vmem:[%s5855_s19 + $0x628] ss:$16 sps:$4 sm:$0xff]   ;;  %v5065_v33 = vld [vmem:[%s5855_s19 + $0x644] ss:$16 sps:$4 sm:$0xff]  }
 0x12d   : > { %2910 = vmatpush1.bf16.msra.mxu0 %v4972_v34  ;;  %3197 = vmatpush1.bf16.msra.mxu1 %v4975_v35  ;;  %v5068_v34 = vld [vmem:[%s5855_s19 + $0x64c] ss:$16 sps:$4 sm:$0xff]   ;;  %v5066_v35 = vld [vmem:[%s5855_s19 + $0x648] ss:$16 sps:$4 sm:$0xff]  }
 0x12e   : > { %2911 = vmatprep.subr.bf16.mxu0 %v4980_v36  ;;  %3198 = vmatprep.subr.bf16.mxu1 %v4983_v37  ;;  %v5071_v36 = vld [vmem:[%s5855_s19 + $0x664] ss:$16 sps:$4 sm:$0xff]   ;;  %v5074_v37 = vld [vmem:[%s5855_s19 + $0x66c] ss:$16 sps:$4 sm:$0xff]  }
 0x131   : > { %2912 = vmatpush1.bf16.msra.mxu0 %v4978_v38  ;;  %3199 = vmatpush1.bf16.msra.mxu1 %v4981_v39  ;;  %v5069_v38 = vld [vmem:[%s5855_s19 + $0x660] ss:$16 sps:$4 sm:$0xff]   ;;  %v5072_v39 = vld [vmem:[%s5855_s19 + $0x668] ss:$16 sps:$4 sm:$0xff]  }
 0x132   : > { %2913 = vmatprep.subr.bf16.mxu0 %v4986_v40  ;;  %3200 = vmatprep.subr.bf16.mxu1 %v4989_v41  ;;  %v5077_v40 = vld [vmem:[%s5855_s19 + $0x684] ss:$16 sps:$4 sm:$0xff]   ;;  %v5080_v41 = vld [vmem:[%s5855_s19 + $0x68c] ss:$16 sps:$4 sm:$0xff]  }
 0x135   : > { %2914 = vmatpush1.bf16.msra.mxu0 %v4984_v42  ;;  %3201 = vmatpush1.bf16.msra.mxu1 %v4987_v43  ;;  %v5075_v42 = vld [vmem:[%s5855_s19 + $0x680] ss:$16 sps:$4 sm:$0xff]   ;;  %v5078_v43 = vld [vmem:[%s5855_s19 + $0x688] ss:$16 sps:$4 sm:$0xff]  }
 0x136   : > { %2915 = vmatprep.subr.bf16.mxu0 %v4992_v45  ;;  %3202 = vmatprep.subr.bf16.mxu1 %v4995_v46  ;;  %v5083_v45 = vld [vmem:[%s5855_s19 + $0x6a4] ss:$16 sps:$4 sm:$0xff]   ;;  %v5086_v46 = vld [vmem:[%s5855_s19 + $0x6ac] ss:$16 sps:$4 sm:$0xff]  }
 0x139   : > { %2916 = vmatpush1.bf16.msra.mxu0 %v4990_v47  ;;  %3203 = vmatpush1.bf16.msra.mxu1 %v4993_v48  ;;  %v5081_v47 = vld [vmem:[%s5855_s19 + $0x6a0] ss:$16 sps:$4 sm:$0xff]   ;;  %v5084_v48 = vld [vmem:[%s5855_s19 + $0x6a8] ss:$16 sps:$4 sm:$0xff]  }
 0x13a   : > { %2917 = vmatprep.subr.bf16.mxu0 %v4998_v49  ;;  %3204 = vmatprep.subr.bf16.mxu1 %v5001_v51  ;;  %v5089_v49 = vld [vmem:[%s5855_s19 + $0x6c4] ss:$16 sps:$4 sm:$0xff]   ;;  %v5092_v51 = vld [vmem:[%s5855_s19 + $0x6cc] ss:$16 sps:$4 sm:$0xff]  }
 0x13d   : > { %2918 = vmatpush1.bf16.msra.mxu0 %v4996_v52  ;;  %3205 = vmatpush1.bf16.msra.mxu1 %v4999_v54  ;;  %v5087_v52 = vld [vmem:[%s5855_s19 + $0x6c0] ss:$16 sps:$4 sm:$0xff]   ;;  %v5090_v54 = vld [vmem:[%s5855_s19 + $0x6c8] ss:$16 sps:$4 sm:$0xff]  }
 0x13e   : > { %2919 = vmatprep.subr.bf16.mxu0 %v5004_v55  ;;  %3206 = vmatprep.subr.bf16.mxu1 %v5007_v56  ;;  %v5095_v55 = vld [vmem:[%s5855_s19 + $0x6e4] ss:$16 sps:$4 sm:$0xff]   ;;  %v5098_v56 = vld [vmem:[%s5855_s19 + $0x6ec] ss:$16 sps:$4 sm:$0xff]  }
 0x141   : > { %2920 = vmatpush1.bf16.msra.mxu0 %v5002_v57  ;;  %3207 = vmatpush1.bf16.msra.mxu1 %v5005_v58  ;;  %v5093_v57 = vld [vmem:[%s5855_s19 + $0x6e0] ss:$16 sps:$4 sm:$0xff]   ;;  %v5096_v58 = vld [vmem:[%s5855_s19 + $0x6e8] ss:$16 sps:$4 sm:$0xff]  }
 0x142   : > { %2921 = vmatprep.subr.bf16.mxu0 %v5010_v59  ;;  %3208 = vmatprep.subr.bf16.mxu1 %v5013_v60  ;;  %v5101_v59 = vld [vmem:[%s5855_s19 + $0x704] ss:$16 sps:$4 sm:$0xff]   ;;  %v5104_v60 = vld [vmem:[%s5855_s19 + $0x70c] ss:$16 sps:$4 sm:$0xff]  }
 0x145   : > { %2922 = vmatpush1.bf16.msra.mxu0 %v5008_v61  ;;  %3209 = vmatpush1.bf16.msra.mxu1 %v5011_v62  ;;  %v5099_v61 = vld [vmem:[%s5855_s19 + $0x700] ss:$16 sps:$4 sm:$0xff]   ;;  %v5102_v62 = vld [vmem:[%s5855_s19 + $0x708] ss:$16 sps:$4 sm:$0xff]  }
 0x146   : > { %2923 = vmatprep.subr.bf16.mxu0 %v5016_v63  ;;  %3210 = vmatprep.subr.bf16.mxu1 %v5019_v0  ;;  %v5107_v63 = vld [vmem:[%s5855_s19 + $0x724] ss:$16 sps:$4 sm:$0xff]   ;;  %v5110_v0 = vld [vmem:[%s5855_s19 + $0x72c] ss:$16 sps:$4 sm:$0xff]  }
 0x149   : > { %2924 = vmatpush1.bf16.msra.mxu0 %v5014_v1  ;;  %3211 = vmatpush1.bf16.msra.mxu1 %v5017_v2  ;;  %v5105_v1 = vld [vmem:[%s5855_s19 + $0x720] ss:$16 sps:$4 sm:$0xff]   ;;  %v5108_v2 = vld [vmem:[%s5855_s19 + $0x728] ss:$16 sps:$4 sm:$0xff]  }
 0x14a   : > { %2925 = vmatprep.subr.bf16.mxu0 %v5022_v3  ;;  %3212 = vmatprep.subr.bf16.mxu1 %v5025_v4  ;;  %v5113_v3 = vld [vmem:[%s5855_s19 + $0x744] ss:$16 sps:$4 sm:$0xff]   ;;  %v5116_v4 = vld [vmem:[%s5855_s19 + $0x74c] ss:$16 sps:$4 sm:$0xff]  }
 0x14d   : > { %2926 = vmatpush1.bf16.msra.mxu0 %v5020_v5  ;;  %3213 = vmatpush1.bf16.msra.mxu1 %v5023_v6  ;;  %v5111_v5 = vld [vmem:[%s5855_s19 + $0x740] ss:$16 sps:$4 sm:$0xff]   ;;  %v5114_v6 = vld [vmem:[%s5855_s19 + $0x748] ss:$16 sps:$4 sm:$0xff]  }
 0x14e   : > { %2927 = vmatprep.subr.bf16.mxu0 %v5028_v7  ;;  %3214 = vmatprep.subr.bf16.mxu1 %v5031_v8  ;;  %v5119_v7 = vld [vmem:[%s5855_s19 + $0x764] ss:$16 sps:$4 sm:$0xff]   ;;  %v5122_v8 = vld [vmem:[%s5855_s19 + $0x76c] ss:$16 sps:$4 sm:$0xff]  }
 0x151   : > { %2928 = vmatpush1.bf16.msra.mxu0 %v5026_v9  ;;  %3215 = vmatpush1.bf16.msra.mxu1 %v5029_v10  ;;  %v5117_v9 = vld [vmem:[%s5855_s19 + $0x760] ss:$16 sps:$4 sm:$0xff]   ;;  %v5120_v10 = vld [vmem:[%s5855_s19 + $0x768] ss:$16 sps:$4 sm:$0xff]  }
 0x152   : > { %2929 = vmatprep.subr.bf16.mxu0 %v5034_v11  ;;  %3216 = vmatprep.subr.bf16.mxu1 %v5037_v12  ;;  %v5125_v11 = vld [vmem:[%s5855_s19 + $0x784] ss:$16 sps:$4 sm:$0xff]   ;;  %v5128_v12 = vld [vmem:[%s5855_s19 + $0x78c] ss:$16 sps:$4 sm:$0xff]  }
 0x155   : > { %2930 = vmatpush1.bf16.msra.mxu0 %v5032_v13  ;;  %3217 = vmatpush1.bf16.msra.mxu1 %v5035_v15  ;;  %v5123_v13 = vld [vmem:[%s5855_s19 + $0x780] ss:$16 sps:$4 sm:$0xff]   ;;  %v5126_v15 = vld [vmem:[%s5855_s19 + $0x788] ss:$16 sps:$4 sm:$0xff]  }
 0x156   : > { %2931 = vmatprep.subr.bf16.mxu0 %v5040_v17  ;;  %3218 = vmatprep.subr.bf16.mxu1 %v5043_v53  ;;  %v5131_v17 = vld [vmem:[%s5855_s19 + $0x7a4] ss:$16 sps:$4 sm:$0xff]   ;;  %v5134_v53 = vld [vmem:[%s5855_s19 + $0x7ac] ss:$16 sps:$4 sm:$0xff]  }
 0x159   : > { %2932 = vmatpush1.bf16.msra.mxu0 %v5038_v18  ;;  %3219 = vmatpush1.bf16.msra.mxu1 %v5041_v19  ;;  %v5129_v18 = vld [vmem:[%s5855_s19 + $0x7a0] ss:$16 sps:$4 sm:$0xff]   ;;  %v5132_v19 = vld [vmem:[%s5855_s19 + $0x7a8] ss:$16 sps:$4 sm:$0xff]  }
 0x15a   : > { %2933 = vmatprep.subr.bf16.mxu0 %v5046_v20  ;;  %3220 = vmatprep.subr.bf16.mxu1 %v5049_v21  ;;  %v5137_v20 = vld [vmem:[%s5855_s19 + $0x7c4] ss:$16 sps:$4 sm:$0xff]   ;;  %v5140_v21 = vld [vmem:[%s5855_s19 + $0x7cc] ss:$16 sps:$4 sm:$0xff]  }
 0x15d   : > { %2934 = vmatpush1.bf16.msra.mxu0 %v5044_v22  ;;  %3221 = vmatpush1.bf16.msra.mxu1 %v5047_v23  ;;  %v6167_v22 = vld [vmem:[%s5874_s17 + $0x8] sm:$0x1f] }
 0x15e   : > { %2944 = vmatprep.subr.bf16.mxu0 %v5053_v24  ;;  %3231 = vmatprep.subr.bf16.mxu1 %v5056_v25  ;;  %v5135_v23 = vld [vmem:[%s5855_s19 + $0x7c0] ss:$16 sps:$4 sm:$0xff]   ;;  %v5138_v24 = vld [vmem:[%s5855_s19 + $0x7c8] ss:$16 sps:$4 sm:$0xff]   ;;  %v5143_v25 = vld [vmem:[%s5855_s19 + $0x7e4] ss:$16 sps:$4 sm:$0xff]  }
 0x160   : > { %2936 = vmatmul.mubr.bf16.vlgmr.msra.gmra.mrb[0].mxu0 %v6105_v14  ;;  %3223 = vmatmul.mubr.bf16.vlgmr.msra.gmra.mrb[0].mxu1 %v6105_v14 }
 0x161   : > { %2945 = vmatpush1.bf16.msra.mxu0 %v5051_v27  ;;  %3232 = vmatpush1.bf16.msra.mxu1 %v5054_v28  ;;  %v5146_v27 = vld [vmem:[%s5855_s19 + $0x7ec] ss:$16 sps:$4 sm:$0xff]   ;;  %v6175_v28 = vrot.slane %v6167_v22, %v5925_v50 }
 0x162   : > { %2946 = vmatprep.subr.bf16.mxu0 %v5059_v29  ;;  %3233 = vmatprep.subr.bf16.mxu1 %v5062_v30  ;;  %v5141_v29 = vld [vmem:[%s5855_s19 + $0x7e0] ss:$16 sps:$4 sm:$0xff]   ;;  %v5144_v30 = vld [vmem:[%s5855_s19 + $0x7e8] ss:$16 sps:$4 sm:$0xff]  }
 0x163   : > { %2976 = vmatprep.mubr.bf16.mxu0 %v805_v31  ;;  %3263 = vmatprep.mubr.bf16.mxu1 %v805_v31  ;;  %v5149_v31 = vld [vmem:[%s5855_s19 + $0x804] ss:$16 sps:$4 sm:$0xff]  }
 0x165   : > { %2947 = vmatpush1.bf16.msra.mxu0 %v5057_v16  ;;  %3234 = vmatpush1.bf16.msra.mxu1 %v5060_v32  ;;  %v5152_v16 = vld [vmem:[%s5855_s19 + $0x80c] ss:$16 sps:$4 sm:$0xff]   ;;  %v5147_v32 = vld [vmem:[%s5855_s19 + $0x800] ss:$16 sps:$4 sm:$0xff]  }
 0x166   : > { %2948 = vmatprep.subr.bf16.mxu0 %v5065_v33  ;;  %3235 = vmatprep.subr.bf16.mxu1 %v5068_v34  ;;  %v821_v33 = vcombine.high %v6175_v28, %v6175_v28  ;;  %v5150_v34 = vld [vmem:[%s5855_s19 + $0x808] ss:$16 sps:$4 sm:$0xff]  }
 0x169   : > { %2949 = vmatpush1.bf16.msra.mxu0 %v5063_v26  ;;  %3236 = vmatpush1.bf16.msra.mxu1 %v5066_v35  ;;  %v803_v26 = vcombine.high %v6105_v14, %v6105_v14  ;;  %v5155_v35 = vld [vmem:[%s5855_s19 + $0x824] ss:$16 sps:$4 sm:$0xff]   ;;  %v5153_v14 = vld [vmem:[%s5855_s19 + $0x820] ss:$16 sps:$4 sm:$0xff]  }
 0x16a   : > { %2950 = vmatprep.subr.bf16.mxu0 %v5071_v36  ;;  %3237 = vmatprep.subr.bf16.mxu1 %v5074_v37  ;;  %v5158_v36 = vld [vmem:[%s5855_s19 + $0x82c] ss:$16 sps:$4 sm:$0xff]   ;;  %v6190_v37 = vrot.slane %v821_v33, %v5925_v50  ;;  %v5239_v33 = vld [vmem:[%s5855_s19 + $0x9e4] ss:$16 sps:$4 sm:$0xff]  }
 0x16d   : > { %2951 = vmatpush1.bf16.msra.mxu0 %v5069_v38  ;;  %3238 = vmatpush1.bf16.msra.mxu1 %v5072_v39  ;;  %v5156_v38 = vld [vmem:[%s5855_s19 + $0x828] ss:$16 sps:$4 sm:$0xff]   ;;  %v5161_v39 = vld [vmem:[%s5855_s19 + $0x844] ss:$16 sps:$4 sm:$0xff]  }
 0x16e   : > { %2952 = vmatprep.subr.bf16.mxu0 %v5077_v40  ;;  %3239 = vmatprep.subr.bf16.mxu1 %v5080_v41  ;;  %v5164_v40 = vld [vmem:[%s5855_s19 + $0x84c] ss:$16 sps:$4 sm:$0xff]   ;;  %v5159_v41 = vld [vmem:[%s5855_s19 + $0x840] ss:$16 sps:$4 sm:$0xff]  }
 0x171   : > { %2953 = vmatpush1.bf16.msra.mxu0 %v5075_v42  ;;  %3240 = vmatpush1.bf16.msra.mxu1 %v5078_v43  ;;  %v5162_v42 = vld [vmem:[%s5855_s19 + $0x848] ss:$16 sps:$4 sm:$0xff]   ;;  %v5167_v43 = vld [vmem:[%s5855_s19 + $0x864] ss:$16 sps:$4 sm:$0xff]  }
 0x172   : > { %2954 = vmatprep.subr.bf16.mxu0 %v5083_v45  ;;  %3241 = vmatprep.subr.bf16.mxu1 %v5086_v46  ;;  %v5170_v45 = vld [vmem:[%s5855_s19 + $0x86c] ss:$16 sps:$4 sm:$0xff]   ;;  %v5165_v46 = vld [vmem:[%s5855_s19 + $0x860] ss:$16 sps:$4 sm:$0xff]  }
 0x175   : > { %2955 = vmatpush1.bf16.msra.mxu0 %v5081_v47  ;;  %3242 = vmatpush1.bf16.msra.mxu1 %v5084_v48  ;;  %v5168_v47 = vld [vmem:[%s5855_s19 + $0x868] ss:$16 sps:$4 sm:$0xff]   ;;  %v5173_v48 = vld [vmem:[%s5855_s19 + $0x884] ss:$16 sps:$4 sm:$0xff]  }
 0x176   : > { %2956 = vmatprep.subr.bf16.mxu0 %v5089_v49  ;;  %3243 = vmatprep.subr.bf16.mxu1 %v5092_v51  ;;  %v5176_v49 = vld [vmem:[%s5855_s19 + $0x88c] ss:$16 sps:$4 sm:$0xff]   ;;  %v5171_v51 = vld [vmem:[%s5855_s19 + $0x880] ss:$16 sps:$4 sm:$0xff]  }
 0x179   : > { %2957 = vmatpush1.bf16.msra.mxu0 %v5087_v52  ;;  %3244 = vmatpush1.bf16.msra.mxu1 %v5090_v54  ;;  %v5174_v52 = vld [vmem:[%s5855_s19 + $0x888] ss:$16 sps:$4 sm:$0xff]   ;;  %v5179_v54 = vld [vmem:[%s5855_s19 + $0x8a4] ss:$16 sps:$4 sm:$0xff]  }
 0x17a   : > { %2958 = vmatprep.subr.bf16.mxu0 %v5095_v55  ;;  %3245 = vmatprep.subr.bf16.mxu1 %v5098_v56  ;;  %v5182_v55 = vld [vmem:[%s5855_s19 + $0x8ac] ss:$16 sps:$4 sm:$0xff]   ;;  %v5177_v56 = vld [vmem:[%s5855_s19 + $0x8a0] ss:$16 sps:$4 sm:$0xff]  }
 0x17d   : > { %2959 = vmatpush1.bf16.msra.mxu0 %v5093_v57  ;;  %3246 = vmatpush1.bf16.msra.mxu1 %v5096_v58  ;;  %v5180_v57 = vld [vmem:[%s5855_s19 + $0x8a8] ss:$16 sps:$4 sm:$0xff]   ;;  %v5185_v58 = vld [vmem:[%s5855_s19 + $0x8c4] ss:$16 sps:$4 sm:$0xff]  }
 0x17e   : > { %2960 = vmatprep.subr.bf16.mxu0 %v5101_v59  ;;  %3247 = vmatprep.subr.bf16.mxu1 %v5104_v60  ;;  %v5188_v59 = vld [vmem:[%s5855_s19 + $0x8cc] ss:$16 sps:$4 sm:$0xff]   ;;  %v5183_v60 = vld [vmem:[%s5855_s19 + $0x8c0] ss:$16 sps:$4 sm:$0xff]  }
 0x181   : > { %2961 = vmatpush1.bf16.msra.mxu0 %v5099_v61  ;;  %3248 = vmatpush1.bf16.msra.mxu1 %v5102_v62  ;;  %v5186_v61 = vld [vmem:[%s5855_s19 + $0x8c8] ss:$16 sps:$4 sm:$0xff]   ;;  %v5191_v62 = vld [vmem:[%s5855_s19 + $0x8e4] ss:$16 sps:$4 sm:$0xff]  }
 0x182   : > { %2962 = vmatprep.subr.bf16.mxu0 %v5107_v63  ;;  %3249 = vmatprep.subr.bf16.mxu1 %v5110_v0  ;;  %v5194_v63 = vld [vmem:[%s5855_s19 + $0x8ec] ss:$16 sps:$4 sm:$0xff]   ;;  %v5189_v0 = vld [vmem:[%s5855_s19 + $0x8e0] ss:$16 sps:$4 sm:$0xff]  }
 0x185   : > { %2963 = vmatpush1.bf16.msra.mxu0 %v5105_v1  ;;  %3250 = vmatpush1.bf16.msra.mxu1 %v5108_v2  ;;  %v5192_v1 = vld [vmem:[%s5855_s19 + $0x8e8] ss:$16 sps:$4 sm:$0xff]   ;;  %v5197_v2 = vld [vmem:[%s5855_s19 + $0x904] ss:$16 sps:$4 sm:$0xff]  }
 0x186   : > { %2964 = vmatprep.subr.bf16.mxu0 %v5113_v3  ;;  %3251 = vmatprep.subr.bf16.mxu1 %v5116_v4  ;;  %v5200_v3 = vld [vmem:[%s5855_s19 + $0x90c] ss:$16 sps:$4 sm:$0xff]   ;;  %v5195_v4 = vld [vmem:[%s5855_s19 + $0x900] ss:$16 sps:$4 sm:$0xff]  }
 0x189   : > { %2965 = vmatpush1.bf16.msra.mxu0 %v5111_v5  ;;  %3252 = vmatpush1.bf16.msra.mxu1 %v5114_v6  ;;  %v5198_v5 = vld [vmem:[%s5855_s19 + $0x908] ss:$16 sps:$4 sm:$0xff]   ;;  %v5203_v6 = vld [vmem:[%s5855_s19 + $0x924] ss:$16 sps:$4 sm:$0xff]  }
 0x18a   : > { %2966 = vmatprep.subr.bf16.mxu0 %v5119_v7  ;;  %3253 = vmatprep.subr.bf16.mxu1 %v5122_v8  ;;  %v5206_v7 = vld [vmem:[%s5855_s19 + $0x92c] ss:$16 sps:$4 sm:$0xff]   ;;  %v5201_v8 = vld [vmem:[%s5855_s19 + $0x920] ss:$16 sps:$4 sm:$0xff]  }
 0x18d   : > { %2967 = vmatpush1.bf16.msra.mxu0 %v5117_v9  ;;  %3254 = vmatpush1.bf16.msra.mxu1 %v5120_v10  ;;  %v5204_v9 = vld [vmem:[%s5855_s19 + $0x928] ss:$16 sps:$4 sm:$0xff]   ;;  %v5209_v10 = vld [vmem:[%s5855_s19 + $0x944] ss:$16 sps:$4 sm:$0xff]  }
 0x18e   : > { %2968 = vmatprep.subr.bf16.mxu0 %v5125_v11  ;;  %3255 = vmatprep.subr.bf16.mxu1 %v5128_v12  ;;  %v5212_v11 = vld [vmem:[%s5855_s19 + $0x94c] ss:$16 sps:$4 sm:$0xff]   ;;  %v5207_v12 = vld [vmem:[%s5855_s19 + $0x940] ss:$16 sps:$4 sm:$0xff]  }
 0x191   : > { %2969 = vmatpush1.bf16.msra.mxu0 %v5123_v13  ;;  %3256 = vmatpush1.bf16.msra.mxu1 %v5126_v15  ;;  %v5210_v13 = vld [vmem:[%s5855_s19 + $0x948] ss:$16 sps:$4 sm:$0xff]   ;;  %v5215_v15 = vld [vmem:[%s5855_s19 + $0x964] ss:$16 sps:$4 sm:$0xff]  }
 0x192   : > { %2970 = vmatprep.subr.bf16.mxu0 %v5131_v17  ;;  %3257 = vmatprep.subr.bf16.mxu1 %v5134_v53  ;;  %v5218_v17 = vld [vmem:[%s5855_s19 + $0x96c] ss:$16 sps:$4 sm:$0xff]   ;;  %v5213_v53 = vld [vmem:[%s5855_s19 + $0x960] ss:$16 sps:$4 sm:$0xff]  }
 0x195   : > { %2971 = vmatpush1.bf16.msra.mxu0 %v5129_v18  ;;  %3258 = vmatpush1.bf16.msra.mxu1 %v5132_v19  ;;  %v5216_v18 = vld [vmem:[%s5855_s19 + $0x968] ss:$16 sps:$4 sm:$0xff]   ;;  %v5221_v19 = vld [vmem:[%s5855_s19 + $0x984] ss:$16 sps:$4 sm:$0xff]  }
 0x196   : > { %2972 = vmatprep.subr.bf16.mxu0 %v5137_v20  ;;  %3259 = vmatprep.subr.bf16.mxu1 %v5140_v21  ;;  %v5224_v20 = vld [vmem:[%s5855_s19 + $0x98c] ss:$16 sps:$4 sm:$0xff]   ;;  %v5219_v21 = vld [vmem:[%s5855_s19 + $0x980] ss:$16 sps:$4 sm:$0xff]  }
 0x199   : > { %2973 = vmatpush1.bf16.msra.mxu0 %v5135_v23  ;;  %3260 = vmatpush1.bf16.msra.mxu1 %v5138_v24  ;;  %v5222_v23 = vld [vmem:[%s5855_s19 + $0x988] ss:$16 sps:$4 sm:$0xff]   ;;  %v5227_v24 = vld [vmem:[%s5855_s19 + $0x9a4] ss:$16 sps:$4 sm:$0xff]  }
 0x19a   : > { %2974 = vmatprep.subr.bf16.mxu0 %v5143_v25  ;;  %3261 = vmatprep.subr.bf16.mxu1 %v5146_v27  ;;  %v5230_v25 = vld [vmem:[%s5855_s19 + $0x9ac] ss:$16 sps:$4 sm:$0xff]   ;;  %v5225_v27 = vld [vmem:[%s5855_s19 + $0x9a0] ss:$16 sps:$4 sm:$0xff]  }
 0x19d   : > { %2975 = vmatpush1.bf16.msra.mxu0 %v5141_v29  ;;  %3262 = vmatpush1.bf16.msra.mxu1 %v5144_v30  ;;  %v5228_v29 = vld [vmem:[%s5855_s19 + $0x9a8] ss:$16 sps:$4 sm:$0xff]   ;;  %v5233_v30 = vld [vmem:[%s5855_s19 + $0x9c4] ss:$16 sps:$4 sm:$0xff]  }
 0x19e   : > { %2985 = vmatprep.subr.bf16.mxu0 %v5149_v31  ;;  %3272 = vmatprep.subr.bf16.mxu1 %v5152_v16  ;;  %v5236_v31 = vld [vmem:[%s5855_s19 + $0x9cc] ss:$16 sps:$4 sm:$0xff]   ;;  %v5231_v16 = vld [vmem:[%s5855_s19 + $0x9c0] ss:$16 sps:$4 sm:$0xff]  }
 0x1a0   : > { %2977 = vmatmul.mubr.bf16.vlgmr.msra.gmra.mrb[0].mxu0 %v803_v26  ;;  %3264 = vmatmul.mubr.bf16.vlgmr.msra.gmra.mrb[0].mxu1 %v803_v26  ;;  %v5237_v26 = vld [vmem:[%s5855_s19 + $0x9e0] ss:$16 sps:$4 sm:$0xff]  }
 0x1a1   : > { %2986 = vmatpush1.bf16.msra.mxu0 %v5147_v32  ;;  %3273 = vmatpush1.bf16.msra.mxu1 %v5150_v34  ;;  %v5234_v32 = vld [vmem:[%s5855_s19 + $0x9c8] ss:$16 sps:$4 sm:$0xff]   ;;  %v5242_v34 = vld [vmem:[%s5855_s19 + $0x9ec] ss:$16 sps:$4 sm:$0xff]  }
 0x1a2   : > { %2987 = vmatprep.subr.bf16.mxu0 %v5155_v35  ;;  %3274 = vmatprep.subr.bf16.mxu1 %v5158_v36  ;;  %v5240_v35 = vld [vmem:[%s5855_s19 + $0x9e8] ss:$16 sps:$4 sm:$0xff]   ;;  %v5246_v36 = vld [vmem:[%s5855_s19 + $0xa04] ss:$16 sps:$4 sm:$0xff]  }
 0x1a3   : > { %3017 = vmatprep.mubr.bf16.mxu0 %v6190_v37  ;;  %3304 = vmatprep.mubr.bf16.mxu1 %v6190_v37 }
 0x1a5   : > { %2988 = vmatpush1.bf16.msra.mxu0 %v5153_v14  ;;  %3275 = vmatpush1.bf16.msra.mxu1 %v5156_v38  ;;  %v5249_v14 = vld [vmem:[%s5855_s19 + $0xa0c] ss:$16 sps:$4 sm:$0xff]   ;;  %v6256_v38 = vrot.slane %v6175_v28, %v5925_v50  ;;  %v5250_v28 = vld [vmem:[%s5855_s19 + $0xa20] ss:$16 sps:$4 sm:$0xff]  }
 0x1a6   : > { %2989 = vmatprep.subr.bf16.mxu0 %v5161_v39  ;;  %3276 = vmatprep.subr.bf16.mxu1 %v5164_v40  ;;  %v5244_v39 = vld [vmem:[%s5855_s19 + $0xa00] ss:$16 sps:$4 sm:$0xff]   ;;  %v5247_v40 = vld [vmem:[%s5855_s19 + $0xa08] ss:$16 sps:$4 sm:$0xff]  }
 0x1a9   : > { %2990 = vmatpush1.bf16.msra.mxu0 %v5159_v41  ;;  %3277 = vmatpush1.bf16.msra.mxu1 %v5162_v42  ;;  %v5252_v41 = vld [vmem:[%s5855_s19 + $0xa24] ss:$16 sps:$4 sm:$0xff]   ;;  %v5255_v42 = vld [vmem:[%s5855_s19 + $0xa2c] ss:$16 sps:$4 sm:$0xff]  }
 0x1aa   : > { %2991 = vmatprep.subr.bf16.mxu0 %v5167_v43  ;;  %3278 = vmatprep.subr.bf16.mxu1 %v5170_v45  ;;  %v844_v43 = vcombine.high %v6190_v37, %v6190_v37  ;;  %v5253_v45 = vld [vmem:[%s5855_s19 + $0xa28] ss:$16 sps:$4 sm:$0xff]   ;;  %v5256_v37 = vld [vmem:[%s5855_s19 + $0xa40] ss:$16 sps:$4 sm:$0xff]  }
 0x1ad   : > { %2992 = vmatpush1.bf16.msra.mxu0 %v5165_v46  ;;  %3279 = vmatpush1.bf16.msra.mxu1 %v5168_v47  ;;  %v5258_v46 = vld [vmem:[%s5855_s19 + $0xa44] ss:$16 sps:$4 sm:$0xff]   ;;  %v5261_v47 = vld [vmem:[%s5855_s19 + $0xa4c] ss:$16 sps:$4 sm:$0xff]  }
 0x1ae   : > { %2993 = vmatprep.subr.bf16.mxu0 %v5173_v48  ;;  %3280 = vmatprep.subr.bf16.mxu1 %v5176_v49  ;;  %v5259_v48 = vld [vmem:[%s5855_s19 + $0xa48] ss:$16 sps:$4 sm:$0xff]   ;;  %v5264_v49 = vld [vmem:[%s5855_s19 + $0xa64] ss:$16 sps:$4 sm:$0xff]  }
 0x1b1   : > { %2994 = vmatpush1.bf16.msra.mxu0 %v5171_v51  ;;  %3281 = vmatpush1.bf16.msra.mxu1 %v5174_v52  ;;  %v5267_v51 = vld [vmem:[%s5855_s19 + $0xa6c] ss:$16 sps:$4 sm:$0xff]   ;;  %v5262_v52 = vld [vmem:[%s5855_s19 + $0xa60] ss:$16 sps:$4 sm:$0xff]  }
 0x1b2   : > { %2995 = vmatprep.subr.bf16.mxu0 %v5179_v54  ;;  %3282 = vmatprep.subr.bf16.mxu1 %v5182_v55  ;;  %v5265_v54 = vld [vmem:[%s5855_s19 + $0xa68] ss:$16 sps:$4 sm:$0xff]   ;;  %v5270_v55 = vld [vmem:[%s5855_s19 + $0xa84] ss:$16 sps:$4 sm:$0xff]  }
 0x1b5   : > { %2996 = vmatpush1.bf16.msra.mxu0 %v5177_v56  ;;  %3283 = vmatpush1.bf16.msra.mxu1 %v5180_v57  ;;  %v5273_v56 = vld [vmem:[%s5855_s19 + $0xa8c] ss:$16 sps:$4 sm:$0xff]   ;;  %v5268_v57 = vld [vmem:[%s5855_s19 + $0xa80] ss:$16 sps:$4 sm:$0xff]  }
 0x1b6   : > { %2997 = vmatprep.subr.bf16.mxu0 %v5185_v58  ;;  %3284 = vmatprep.subr.bf16.mxu1 %v5188_v59  ;;  %v5271_v58 = vld [vmem:[%s5855_s19 + $0xa88] ss:$16 sps:$4 sm:$0xff]   ;;  %v5276_v59 = vld [vmem:[%s5855_s19 + $0xaa4] ss:$16 sps:$4 sm:$0xff]  }
 0x1b9   : > { %2998 = vmatpush1.bf16.msra.mxu0 %v5183_v60  ;;  %3285 = vmatpush1.bf16.msra.mxu1 %v5186_v61  ;;  %v5279_v60 = vld [vmem:[%s5855_s19 + $0xaac] ss:$16 sps:$4 sm:$0xff]   ;;  %v5274_v61 = vld [vmem:[%s5855_s19 + $0xaa0] ss:$16 sps:$4 sm:$0xff]  }
 0x1ba   : > { %2999 = vmatprep.subr.bf16.mxu0 %v5191_v62  ;;  %3286 = vmatprep.subr.bf16.mxu1 %v5194_v63  ;;  %v5277_v62 = vld [vmem:[%s5855_s19 + $0xaa8] ss:$16 sps:$4 sm:$0xff]   ;;  %v5282_v63 = vld [vmem:[%s5855_s19 + $0xac4] ss:$16 sps:$4 sm:$0xff]  }
 0x1bd   : > { %3000 = vmatpush1.bf16.msra.mxu0 %v5189_v0  ;;  %3287 = vmatpush1.bf16.msra.mxu1 %v5192_v1  ;;  %v5285_v0 = vld [vmem:[%s5855_s19 + $0xacc] ss:$16 sps:$4 sm:$0xff]   ;;  %v5280_v1 = vld [vmem:[%s5855_s19 + $0xac0] ss:$16 sps:$4 sm:$0xff]  }
 0x1be   : > { %3001 = vmatprep.subr.bf16.mxu0 %v5197_v2  ;;  %3288 = vmatprep.subr.bf16.mxu1 %v5200_v3  ;;  %v5283_v2 = vld [vmem:[%s5855_s19 + $0xac8] ss:$16 sps:$4 sm:$0xff]   ;;  %v5288_v3 = vld [vmem:[%s5855_s19 + $0xae4] ss:$16 sps:$4 sm:$0xff]  }
 0x1c1   : > { %3002 = vmatpush1.bf16.msra.mxu0 %v5195_v4  ;;  %3289 = vmatpush1.bf16.msra.mxu1 %v5198_v5  ;;  %v5291_v4 = vld [vmem:[%s5855_s19 + $0xaec] ss:$16 sps:$4 sm:$0xff]   ;;  %v5286_v5 = vld [vmem:[%s5855_s19 + $0xae0] ss:$16 sps:$4 sm:$0xff]  }
 0x1c2   : > { %3003 = vmatprep.subr.bf16.mxu0 %v5203_v6  ;;  %3290 = vmatprep.subr.bf16.mxu1 %v5206_v7  ;;  %v5289_v6 = vld [vmem:[%s5855_s19 + $0xae8] ss:$16 sps:$4 sm:$0xff]   ;;  %v5294_v7 = vld [vmem:[%s5855_s19 + $0xb04] ss:$16 sps:$4 sm:$0xff]  }
 0x1c5   : > { %3004 = vmatpush1.bf16.msra.mxu0 %v5201_v8  ;;  %3291 = vmatpush1.bf16.msra.mxu1 %v5204_v9  ;;  %v5297_v8 = vld [vmem:[%s5855_s19 + $0xb0c] ss:$16 sps:$4 sm:$0xff]   ;;  %v5292_v9 = vld [vmem:[%s5855_s19 + $0xb00] ss:$16 sps:$4 sm:$0xff]  }
 0x1c6   : > { %3005 = vmatprep.subr.bf16.mxu0 %v5209_v10  ;;  %3292 = vmatprep.subr.bf16.mxu1 %v5212_v11  ;;  %v5295_v10 = vld [vmem:[%s5855_s19 + $0xb08] ss:$16 sps:$4 sm:$0xff]   ;;  %v5300_v11 = vld [vmem:[%s5855_s19 + $0xb24] ss:$16 sps:$4 sm:$0xff]  }
 0x1c9   : > { %3006 = vmatpush1.bf16.msra.mxu0 %v5207_v12  ;;  %3293 = vmatpush1.bf16.msra.mxu1 %v5210_v13  ;;  %v5303_v12 = vld [vmem:[%s5855_s19 + $0xb2c] ss:$16 sps:$4 sm:$0xff]   ;;  %v5298_v13 = vld [vmem:[%s5855_s19 + $0xb20] ss:$16 sps:$4 sm:$0xff]  }
 0x1ca   : > { %3007 = vmatprep.subr.bf16.mxu0 %v5215_v15  ;;  %3294 = vmatprep.subr.bf16.mxu1 %v5218_v17  ;;  %v5301_v15 = vld [vmem:[%s5855_s19 + $0xb28] ss:$16 sps:$4 sm:$0xff]   ;;  %v5306_v17 = vld [vmem:[%s5855_s19 + $0xb44] ss:$16 sps:$4 sm:$0xff]  }
 0x1cd   : > { %3008 = vmatpush1.bf16.msra.mxu0 %v5213_v53  ;;  %3295 = vmatpush1.bf16.msra.mxu1 %v5216_v18  ;;  %v5309_v53 = vld [vmem:[%s5855_s19 + $0xb4c] ss:$16 sps:$4 sm:$0xff]   ;;  %v5304_v18 = vld [vmem:[%s5855_s19 + $0xb40] ss:$16 sps:$4 sm:$0xff]  }
 0x1ce   : > { %3009 = vmatprep.subr.bf16.mxu0 %v5221_v19  ;;  %3296 = vmatprep.subr.bf16.mxu1 %v5224_v20  ;;  %v5307_v19 = vld [vmem:[%s5855_s19 + $0xb48] ss:$16 sps:$4 sm:$0xff]   ;;  %v5312_v20 = vld [vmem:[%s5855_s19 + $0xb64] ss:$16 sps:$4 sm:$0xff]  }
 0x1d1   : > { %3010 = vmatpush1.bf16.msra.mxu0 %v5219_v21  ;;  %3297 = vmatpush1.bf16.msra.mxu1 %v5222_v23  ;;  %v5315_v21 = vld [vmem:[%s5855_s19 + $0xb6c] ss:$16 sps:$4 sm:$0xff]   ;;  %v5310_v23 = vld [vmem:[%s5855_s19 + $0xb60] ss:$16 sps:$4 sm:$0xff]  }
 0x1d2   : > { %3011 = vmatprep.subr.bf16.mxu0 %v5227_v24  ;;  %3298 = vmatprep.subr.bf16.mxu1 %v5230_v25  ;;  %v5313_v24 = vld [vmem:[%s5855_s19 + $0xb68] ss:$16 sps:$4 sm:$0xff]   ;;  %v5318_v25 = vld [vmem:[%s5855_s19 + $0xb84] ss:$16 sps:$4 sm:$0xff]  }
 0x1d5   : > { %3012 = vmatpush1.bf16.msra.mxu0 %v5225_v27  ;;  %3299 = vmatpush1.bf16.msra.mxu1 %v5228_v29  ;;  %v5321_v27 = vld [vmem:[%s5855_s19 + $0xb8c] ss:$16 sps:$4 sm:$0xff]   ;;  %v5316_v29 = vld [vmem:[%s5855_s19 + $0xb80] ss:$16 sps:$4 sm:$0xff]  }
 0x1d6   : > { %3013 = vmatprep.subr.bf16.mxu0 %v5233_v30  ;;  %3300 = vmatprep.subr.bf16.mxu1 %v5236_v31  ;;  %v5319_v30 = vld [vmem:[%s5855_s19 + $0xb88] ss:$16 sps:$4 sm:$0xff]   ;;  %v5324_v31 = vld [vmem:[%s5855_s19 + $0xba4] ss:$16 sps:$4 sm:$0xff]  }
 0x1d9   : > { %3014 = vmatpush1.bf16.msra.mxu0 %v5231_v16  ;;  %3301 = vmatpush1.bf16.msra.mxu1 %v5234_v32  ;;  %v5327_v16 = vld [vmem:[%s5855_s19 + $0xbac] ss:$16 sps:$4 sm:$0xff]   ;;  %v5322_v32 = vld [vmem:[%s5855_s19 + $0xba0] ss:$16 sps:$4 sm:$0xff]  }
 0x1da   : > { %3015 = vmatprep.subr.bf16.mxu0 %v5239_v33  ;;  %3302 = vmatprep.subr.bf16.mxu1 %v5242_v34  ;;  %v5325_v33 = vld [vmem:[%s5855_s19 + $0xba8] ss:$16 sps:$4 sm:$0xff]   ;;  %v5330_v34 = vld [vmem:[%s5855_s19 + $0xbc4] ss:$16 sps:$4 sm:$0xff]  }
 0x1dd   : > { %3016 = vmatpush1.bf16.msra.mxu0 %v5237_v26  ;;  %3303 = vmatpush1.bf16.msra.mxu1 %v5240_v35  ;;  %v5333_v26 = vld [vmem:[%s5855_s19 + $0xbcc] ss:$16 sps:$4 sm:$0xff]   ;;  %v5328_v35 = vld [vmem:[%s5855_s19 + $0xbc0] ss:$16 sps:$4 sm:$0xff]  }
 0x1de   : > { %3026 = vmatprep.subr.bf16.mxu0 %v5246_v36  ;;  %3313 = vmatprep.subr.bf16.mxu1 %v5249_v14  ;;  %v5331_v36 = vld [vmem:[%s5855_s19 + $0xbc8] ss:$16 sps:$4 sm:$0xff]   ;;  %v5336_v14 = vld [vmem:[%s5855_s19 + $0xbe4] ss:$16 sps:$4 sm:$0xff]  }
 0x1e0   : > { %3018 = vmatmul.mubr.bf16.vlgmr.msra.gmra.mrb[0].mxu0 %v6256_v38  ;;  %3305 = vmatmul.mubr.bf16.vlgmr.msra.gmra.mrb[0].mxu1 %v6256_v38 }
 0x1e1   : > { %3027 = vmatpush1.bf16.msra.mxu0 %v5244_v39  ;;  %3314 = vmatpush1.bf16.msra.mxu1 %v5247_v40  ;;  %v5339_v39 = vld [vmem:[%s5855_s19 + $0xbec] ss:$16 sps:$4 sm:$0xff]   ;;  %v5334_v40 = vld [vmem:[%s5855_s19 + $0xbe0] ss:$16 sps:$4 sm:$0xff]  }
 0x1e2   : > { %3028 = vmatprep.subr.bf16.mxu0 %v5252_v41  ;;  %3315 = vmatprep.subr.bf16.mxu1 %v5255_v42  ;;  %v5337_v41 = vld [vmem:[%s5855_s19 + $0xbe8] ss:$16 sps:$4 sm:$0xff]   ;;  %v5342_v42 = vld [vmem:[%s5855_s19 + $0xc04] ss:$16 sps:$4 sm:$0xff]  }
 0x1e3   : > { %3058 = vmatprep.mubr.bf16.mxu0 %v844_v43  ;;  %3345 = vmatprep.mubr.bf16.mxu1 %v844_v43  ;;  %v5345_v43 = vld [vmem:[%s5855_s19 + $0xc0c] ss:$16 sps:$4 sm:$0xff]  }
 0x1e5   : > { %3029 = vmatpush1.bf16.msra.mxu0 %v5250_v28  ;;  %3316 = vmatpush1.bf16.msra.mxu1 %v5253_v45  ;;  %v843_v28 = vcombine.high %v6256_v38, %v6256_v38  ;;  %v5340_v45 = vld [vmem:[%s5855_s19 + $0xc00] ss:$16 sps:$4 sm:$0xff]   ;;  %v5615_v38 = vmov 0  }
 0x1e6   : > { %3030 = vmatprep.subr.bf16.mxu0 %v5258_v46  ;;  %3317 = vmatprep.subr.bf16.mxu1 %v5261_v47  ;;  %v5343_v46 = vld [vmem:[%s5855_s19 + $0xc08] ss:$16 sps:$4 sm:$0xff]   ;;  %v5348_v47 = vld [vmem:[%s5855_s19 + $0xc24] ss:$16 sps:$4 sm:$0xff]  }
 0x1e9   : > { %3031 = vmatpush1.bf16.msra.mxu0 %v5256_v37  ;;  %3318 = vmatpush1.bf16.msra.mxu1 %v5259_v48  ;;  %v5351_v37 = vld [vmem:[%s5855_s19 + $0xc2c] ss:$16 sps:$4 sm:$0xff]   ;;  %v806_v48 = vcombine.high %v6167_v22, %v6167_v22  ;;  %v5616_v22 = vmov 1983009808  }
 0x1ea   : > { %3032 = vmatprep.subr.bf16.mxu0 %v5264_v49  ;;  %3319 = vmatprep.subr.bf16.mxu1 %v5267_v51  ;;  %v5346_v49 = vld [vmem:[%s5855_s19 + $0xc20] ss:$16 sps:$4 sm:$0xff]   ;;  %v5349_v51 = vld [vmem:[%s5855_s19 + $0xc28] ss:$16 sps:$4 sm:$0xff]  }
 0x1ed   : > { %3033 = vmatpush1.bf16.msra.mxu0 %v5262_v52  ;;  %3320 = vmatpush1.bf16.msra.mxu1 %v5265_v54  ;;  %v820_v52 = vrot.slane %v806_v48, %v5925_v50 }
 0x1ee   : > { %3034 = vmatprep.subr.bf16.mxu0 %v5270_v55  ;;  %3321 = vmatprep.subr.bf16.mxu1 %v5273_v56  ;;  %v3402_v55 = vunpack.c.l.s4 %v5616_v22 }
 0x1ef   : > { %v835_v54 = vrot.slane %v820_v52, %v5925_v50 }
 0x1f0   : > { %v3403_v56 = vunpack.c.0.s8 %v3402_v55 }
 0x1f1   : > { %3035 = vmatpush1.bf16.msra.mxu0 %v5268_v57  ;;  %3322 = vmatpush1.bf16.msra.mxu1 %v5271_v58 }
 0x1f2   : > { %3036 = vmatprep.subr.bf16.mxu0 %v5276_v59  ;;  %3323 = vmatprep.subr.bf16.mxu1 %v5279_v60  ;;  %v6339_v59 = vsub.s32 %v3403_v56, %v5917_v44 }
 0x1f5   : > { %3037 = vmatpush1.bf16.msra.mxu0 %v5274_v61  ;;  %3324 = vmatpush1.bf16.msra.mxu1 %v5277_v62 }
 0x1f6   : > { %3038 = vmatprep.subr.bf16.mxu0 %v5282_v63  ;;  %3325 = vmatprep.subr.bf16.mxu1 %v5285_v0 }
 0x1f9   : > { %3039 = vmatpush1.bf16.msra.mxu0 %v5280_v1  ;;  %3326 = vmatpush1.bf16.msra.mxu1 %v5283_v2 }
 0x1fa   : > { %3040 = vmatprep.subr.bf16.mxu0 %v5288_v3  ;;  %3327 = vmatprep.subr.bf16.mxu1 %v5291_v4 }
 0x1fd   : > { %3041 = vmatpush1.bf16.msra.mxu0 %v5286_v5  ;;  %3328 = vmatpush1.bf16.msra.mxu1 %v5289_v6  ;;  %v360_v5 = vld [vmem:[#allocation2] sm:$0xff] }
 0x1fe   : > { %3042 = vmatprep.subr.bf16.mxu0 %v5294_v7  ;;  %3329 = vmatprep.subr.bf16.mxu1 %v5297_v8  ;;  %v5352_v8 = vld [vmem:[#allocation8 + $0x40] sm:$0xff] (!%p4453_p1)  }
 0x201   : > { %3043 = vmatpush1.bf16.msra.mxu0 %v5292_v9  ;;  %3330 = vmatpush1.bf16.msra.mxu1 %v5295_v10  ;;  %v5353_v9 = vld [vmem:[#allocation8 + $0xc0] sm:$0xff] (!%p4453_p1)  }
 0x202   : > { %3044 = vmatprep.subr.bf16.mxu0 %v5300_v11  ;;  %3331 = vmatprep.subr.bf16.mxu1 %v5303_v12  ;;  %v5354_v10 = vld [vmem:[#allocation8] sm:$0xff] (!%p4453_p1)   ;;  %v5356_v12 = vld [vmem:[#allocation8 + $0x48] sm:$0xff] (!%p4453_p1)  }
 0x203   : > { %v5355_v11 = vld [vmem:[#allocation8 + $0x80] sm:$0xff] (!%p4453_p1)  }
 0x205   : > { %3045 = vmatpush1.bf16.msra.mxu0 %v5298_v13  ;;  %3332 = vmatpush1.bf16.msra.mxu1 %v5301_v15  ;;  %v5357_v13 = vld [vmem:[#allocation8 + $0xc8] sm:$0xff] (!%p4453_p1)  }
 0x206   : > { %3046 = vmatprep.subr.bf16.mxu0 %v5306_v17  ;;  %3333 = vmatprep.subr.bf16.mxu1 %v5309_v53  ;;  %v5358_v15 = vld [vmem:[#allocation8 + $0x8] sm:$0xff] (!%p4453_p1)   ;;  %v5360_v53 = vld [vmem:[#allocation8 + $0x50] sm:$0xff] (!%p4453_p1)  }
 0x207   : > { %v5359_v17 = vld [vmem:[#allocation8 + $0x88] sm:$0xff] (!%p4453_p1)  }
 0x209   : > { %3047 = vmatpush1.bf16.msra.mxu0 %v5304_v18  ;;  %3334 = vmatpush1.bf16.msra.mxu1 %v5307_v19  ;;  %v5361_v18 = vld [vmem:[#allocation8 + $0xd0] sm:$0xff] (!%p4453_p1)  }
 0x20a   : > { %3048 = vmatprep.subr.bf16.mxu0 %v5312_v20  ;;  %3335 = vmatprep.subr.bf16.mxu1 %v5315_v21  ;;  %v5362_v19 = vld [vmem:[#allocation8 + $0x10] sm:$0xff] (!%p4453_p1)   ;;  %v5364_v21 = vld [vmem:[#allocation8 + $0x58] sm:$0xff] (!%p4453_p1)  }
 0x20b   : > { %v5363_v20 = vld [vmem:[#allocation8 + $0x90] sm:$0xff] (!%p4453_p1)  }
 0x20d   : > { %3049 = vmatpush1.bf16.msra.mxu0 %v5310_v23  ;;  %3336 = vmatpush1.bf16.msra.mxu1 %v5313_v24  ;;  %v5365_v23 = vld [vmem:[#allocation8 + $0xd8] sm:$0xff] (!%p4453_p1)  }
 0x20e   : > { %3050 = vmatprep.subr.bf16.mxu0 %v5318_v25  ;;  %3337 = vmatprep.subr.bf16.mxu1 %v5321_v27  ;;  %v5366_v24 = vld [vmem:[#allocation8 + $0x18] sm:$0xff] (!%p4453_p1)   ;;  %v5368_v27 = vld [vmem:[#allocation8 + $0x60] sm:$0xff] (!%p4453_p1)  }
 0x20f   : > { %v5367_v25 = vld [vmem:[#allocation8 + $0x98] sm:$0xff] (!%p4453_p1)  }
 0x211   : > { %3051 = vmatpush1.bf16.msra.mxu0 %v5316_v29  ;;  %3338 = vmatpush1.bf16.msra.mxu1 %v5319_v30  ;;  %v5369_v29 = vld [vmem:[#allocation8 + $0xe0] sm:$0xff] (!%p4453_p1)  }
 0x212   : > { %3052 = vmatprep.subr.bf16.mxu0 %v5324_v31  ;;  %3339 = vmatprep.subr.bf16.mxu1 %v5327_v16  ;;  %v5370_v30 = vld [vmem:[#allocation8 + $0x20] sm:$0xff] (!%p4453_p1)   ;;  %v5372_v16 = vld [vmem:[#allocation8 + $0x68] sm:$0xff] (!%p4453_p1)  }
 0x213   : > { %v5371_v31 = vld [vmem:[#allocation8 + $0xa0] sm:$0xff] (!%p4453_p1)  }
 0x215   : > { %3053 = vmatpush1.bf16.msra.mxu0 %v5322_v32  ;;  %3340 = vmatpush1.bf16.msra.mxu1 %v5325_v33  ;;  %v5373_v32 = vld [vmem:[#allocation8 + $0xe8] sm:$0xff] (!%p4453_p1)  }
 0x216   : > { %3054 = vmatprep.subr.bf16.mxu0 %v5330_v34  ;;  %3341 = vmatprep.subr.bf16.mxu1 %v5333_v26  ;;  %v5374_v33 = vld [vmem:[#allocation8 + $0x28] sm:$0xff] (!%p4453_p1)   ;;  %v5376_v26 = vld [vmem:[#allocation8 + $0x70] sm:$0xff] (!%p4453_p1)  }
 0x217   : > { %v5375_v34 = vld [vmem:[#allocation8 + $0xa8] sm:$0xff] (!%p4453_p1)  }
 0x219   : > { %3055 = vmatpush1.bf16.msra.mxu0 %v5328_v35  ;;  %3342 = vmatpush1.bf16.msra.mxu1 %v5331_v36  ;;  %v5377_v35 = vld [vmem:[#allocation8 + $0xf0] sm:$0xff] (!%p4453_p1)  }
 0x21a   : > { %3056 = vmatprep.subr.bf16.mxu0 %v5336_v14  ;;  %3343 = vmatprep.subr.bf16.mxu1 %v5339_v39  ;;  %v5378_v36 = vld [vmem:[#allocation8 + $0x30] sm:$0xff] (!%p4453_p1)   ;;  %v3428_v14 = vsub.s32 (!%p4453_p1), 0, %v5917_v44 }
 0x21b   : > { %v5379_v39 = vld [vmem:[#allocation8 + $0xb0] sm:$0xff] (!%p4453_p1)  }
 0x21d   : > { %3057 = vmatpush1.bf16.msra.mxu0 %v5334_v40  ;;  %3344 = vmatpush1.bf16.msra.mxu1 %v5337_v41  ;;  %v3432_v40 = vsub.s32 (!%p4453_p1), 1, %v5917_v44  ;;  %v5380_v41 = vld [vmem:[#allocation8 + $0x78] sm:$0xff] (!%p4453_p1)  }
 0x21e   : > { %3067 = vmatprep.subr.bf16.mxu0 %v5342_v42  ;;  %3354 = vmatprep.subr.bf16.mxu1 %v5345_v43  ;;  %v3436_v42 = vsub.s32 (!%p4453_p1), 2, %v5917_v44  ;;  %v5381_v43 = vld [vmem:[#allocation8 + $0xf8] sm:$0xff] (!%p4453_p1)  }
 0x220   : > { %3059 = vmatmul.mubr.bf16.vlgmr.msra.gmra.mrb[0].mxu0 %v843_v28  ;;  %3346 = vmatmul.mubr.bf16.vlgmr.msra.gmra.mrb[0].mxu1 %v843_v28  ;;  %v3440_v28 = vsub.s32 (!%p4453_p1), 3, %v5917_v44 }
 0x221   : > { %3068 = vmatpush1.bf16.msra.mxu0 %v5340_v45  ;;  %3355 = vmatpush1.bf16.msra.mxu1 %v5343_v46  ;;  %v5382_v45 = vld [vmem:[#allocation8 + $0x38] sm:$0xff] (!%p4453_p1)  }
 0x222   : > { %3069 = vmatprep.subr.bf16.mxu0 %v5348_v47  ;;  %3356 = vmatprep.subr.bf16.mxu1 %v5351_v37  ;;  %v5383_v46 = vld [vmem:[#allocation8 + $0xb8] sm:$0xff] (!%p4453_p1)  }
 0x223   : > { %3099 = vmatprep.mubr.bf16.mxu0 %v5615_v38  ;;  %3386 = vmatprep.mubr.bf16.mxu1 %v5615_v38  ;;  %v3424_v47 = vld [vmem:[#allocation6] sm:$0xf] (!%p4453_p1)  ;;  %v5617_v38 = vmov (!%p4453_p1), 0.0|0.0  }
 0x224   : > { %v3429_v37 = vrot.slane (!%p4453_p1), %v3424_v47, %v3428_v14  ;;  %v3433_v48 = vrot.slane (!%p4453_p1), %v3424_v47, %v3432_v40 }
 0x225   : > { %3070 = vmatpush1.bf16.msra.mxu0 %v5346_v49  ;;  %3357 = vmatpush1.bf16.msra.mxu1 %v5349_v51  ;;  %v3437_v49 = vrot.slane (!%p4453_p1), %v3424_v47, %v3436_v42  ;;  %v3441_v51 = vrot.slane (!%p4453_p1), %v3424_v47, %v3440_v28 }
 0x226   : > { %4492 = vmatprep.subr.bf16.mxu0 (!%p4453_p1), %v5352_v8  ;;  %4514 = vmatprep.subr.bf16.mxu1 (!%p4453_p1), %v5353_v9  ;;  %v3442_v52 = vcombine.low (!%p4453_p1), %v3429_v37, %v3433_v48 }
 0x228   : > { %v3450_v22 = vrot.slane (!%p4453_p1), %v3442_v52, %v6339_v59 }
 0x22c   : > { %4451 = vmatmul.mubr.msk.bf16.vlgmr.msra.gmra.mrb[0].mxu0 %vm2817_vm0, %v835_v54  ;;  %4452 = vmatmul.mubr.msk.bf16.vlgmr.msra.gmra.mrb[0].mxu1 %vm2817_vm0, %v835_v54  ;;  %v3443_v54 = vcombine.low (!%p4453_p1), %v3437_v49, %v3441_v51 }
 0x22d   : > { %4493 = vmatpush3.bf16.msra.mxu0 (!%p4453_p1), %v5354_v10  ;;  %4515 = vmatpush3.bf16.msra.mxu1 (!%p4453_p1), %v5355_v11  ;;  %v3837_v10 = vld [vmem:[%s6444_s5 + $0x28] sm:$0xff] (!%p4453_p1) }
 0x22e   : > { %4494 = vmatprep.subr.bf16.mxu0 (!%p4453_p1), %v5356_v12  ;;  %4516 = vmatprep.subr.bf16.mxu1 (!%p4453_p1), %v5357_v13  ;;  %v3457_v55 = vrot.slane (!%p4453_p1), %v3443_v54, %v6339_v59  ;;  %v3838_v12 = vld [vmem:[%s6444_s5 + $0x30] sm:$0xff] (!%p4453_p1)  ;;  %v3839_v13 = vld [vmem:[%s6444_s5 + $0x38] sm:$0xff] (!%p4453_p1) }
 0x230   : > { %v3458_v56 = vcombine.low (!%p4453_p1), %v3450_v22, %v3457_v55 }
 0x231   : > { %4495 = vmatpush3.bf16.msra.mxu0 (!%p4453_p1), %v5358_v15  ;;  %4517 = vmatpush3.bf16.msra.mxu1 (!%p4453_p1), %v5359_v17  ;;  %v4598_v15 = vpack.c.bf16 (!%p4453_p1), %v3839_v13, %v3838_v12  ;;  %v3840_v17 = vld [vmem:[%s6444_s5 + $0x40] sm:$0xff] (!%p4453_p1) }
 0x232   : > { %4496 = vmatprep.subr.bf16.mxu0 (!%p4453_p1), %v5360_v53  ;;  %4518 = vmatprep.subr.bf16.mxu1 (!%p4453_p1), %v5361_v18  ;;  %v3841_v53 = vld [vmem:[%s6444_s5 + $0x48] sm:$0xff] (!%p4453_p1) }
 0x233   : > { %v4601_v18 = vpack.c.bf16 (!%p4453_p1), %v3841_v53, %v3840_v17 }
 0x235   : > { %4497 = vmatpush3.bf16.msra.mxu0 (!%p4453_p1), %v5362_v19  ;;  %4519 = vmatpush3.bf16.msra.mxu1 (!%p4453_p1), %v5363_v20  ;;  %v3842_v19 = vld [vmem:[%s6444_s5 + $0x50] sm:$0xff] (!%p4453_p1)  ;;  %v3843_v20 = vld [vmem:[%s6444_s5 + $0x58] sm:$0xff] (!%p4453_p1) }
 0x236   : > { %4498 = vmatprep.subr.bf16.mxu0 (!%p4453_p1), %v5364_v21  ;;  %4520 = vmatprep.subr.bf16.mxu1 (!%p4453_p1), %v5365_v23  ;;  %v4604_v21 = vpack.c.bf16 (!%p4453_p1), %v3843_v20, %v3842_v19  ;;  %v3844_v23 = vld [vmem:[%s6444_s5 + $0x60] sm:$0xff] (!%p4453_p1) }
 0x239   : > { %4499 = vmatpush3.bf16.msra.mxu0 (!%p4453_p1), %v5366_v24  ;;  %4521 = vmatpush3.bf16.msra.mxu1 (!%p4453_p1), %v5367_v25  ;;  %v3845_v24 = vld [vmem:[%s6444_s5 + $0x68] sm:$0xff] (!%p4453_p1) }
 0x23a   : > { %4500 = vmatprep.subr.bf16.mxu0 (!%p4453_p1), %v5368_v27  ;;  %4522 = vmatprep.subr.bf16.mxu1 (!%p4453_p1), %v5369_v29  ;;  %v4607_v25 = vpack.c.bf16 (!%p4453_p1), %v3845_v24, %v3844_v23  ;;  %v3846_v27 = vld [vmem:[%s6444_s5 + $0x70] sm:$0xff] (!%p4453_p1)  ;;  %v3847_v29 = vld [vmem:[%s6444_s5 + $0x78] sm:$0xff] (!%p4453_p1) }
 0x23d   : > { %4501 = vmatpush3.bf16.msra.mxu0 (!%p4453_p1), %v5370_v30  ;;  %4523 = vmatpush3.bf16.msra.mxu1 (!%p4453_p1), %v5371_v31  ;;  %v4610_v30 = vpack.c.bf16 (!%p4453_p1), %v3847_v29, %v3846_v27  ;;  %v5619_v31 = vmov (!%p4453_p1), 0.0  }
 0x23e   : > { %4502 = vmatprep.subr.bf16.mxu0 (!%p4453_p1), %v5372_v16  ;;  %4524 = vmatprep.subr.bf16.mxu1 (!%p4453_p1), %v5373_v32  ;;  %v4454_v32 = vld [vmem:[#allocation9] ss:$0 sm:$0xff] (!%p4453_p1) }
 0x241   : > { %4503 = vmatpush3.bf16.msra.mxu0 (!%p4453_p1), %v5374_v33  ;;  %4525 = vmatpush3.bf16.msra.mxu1 (!%p4453_p1), %v5375_v34 }
 0x242   : > { %4504 = vmatprep.subr.bf16.mxu0 (!%p4453_p1), %v5376_v26  ;;  %4526 = vmatprep.subr.bf16.mxu1 (!%p4453_p1), %v5377_v35 }
 0x245   : > { %4505 = vmatpush3.bf16.msra.mxu0 (!%p4453_p1), %v5378_v36  ;;  %4527 = vmatpush3.bf16.msra.mxu1 (!%p4453_p1), %v5379_v39 }
 0x246   : > { %4506 = vmatprep.subr.bf16.mxu0 (!%p4453_p1), %v5380_v41  ;;  %4528 = vmatprep.subr.bf16.mxu1 (!%p4453_p1), %v5381_v43 }
 0x249   : > { %4507 = vmatpush3.bf16.msra.mxu0 (!%p4453_p1), %v5382_v45  ;;  %4529 = vmatpush3.bf16.msra.mxu1 (!%p4453_p1), %v5383_v46  ;;  %v4487_v45 = vld [vmem:[#allocation11] ss:$0 sm:$0xff] (!%p4453_p1) }
 0x24a   : > { %4588 = vmatprep.subr.bf16.mxu0 (!%p4453_p1), %v5617_v38 }
 0x2ff   : > { %v3101_v57 = vpop.f32.mrb[0].mxu0  ;;  %v3388_v58 = vpop.f32.mrb[0].mxu1 }
 0x300   : > { %v3103_v60 = vpop.f32.mrb[1].mxu0  ;;  %v3390_v61 = vpop.f32.mrb[1].mxu1 }
 0x301   : > { %v3399_v62 = vcombine.low %v3101_v57, %v3103_v60  ;;  %v3400_v63 = vcombine.low %v3388_v58, %v3390_v61  ;;  %v3105_v0 = vpop.f32.mrb[2].mxu0  ;;  %v3392_v1 = vpop.f32.mrb[2].mxu1 }
 0x302   : > { %v3106_v2 = vpop.f32.mrb[3].mxu0  ;;  %v3393_v3 = vpop.f32.mrb[3].mxu1 }
 0x303   : > { %v3407_v50 = vrot.slane %v3399_v62, %v6339_v59  ;;  %v3414_v4 = vrot.slane %v3400_v63, %v6339_v59  ;;  %3422 = sbr.rel (%p4453_p1) target bundleno = 1546 (0x60a), region = 76  ;;  %v3832_v62 = vld [vmem:[%s6444_s5] sm:$0xff] (!%p4453_p1)  ;;  %v3833_v63 = vld [vmem:[%s6444_s5 + $0x8] sm:$0xff] (!%p4453_p1) }
 0x305   : > { %v3415_v6 = vcombine.low %v3407_v50, %v3414_v4  ;;  %v4589_v4 = vpack.c.bf16 (!%p4453_p1), %v3833_v63, %v3832_v62 }
 0x307   : > { %v3417_v7 = vadd.f32 %v3415_v6, %v360_v5  ;;  %v3834_v6 = vld [vmem:[%s6444_s5 + $0x10] sm:$0xff] (!%p4453_p1) }
 0x309   : > { %3418 = vst [vmem:[#allocation2] sm:$0xff] %v3417_v7  ;;  %v3835_v7 = vld [vmem:[%s6444_s5 + $0x18] sm:$0xff] (!%p4453_p1) }
 0x30a   : > { %v4592_v9 = vpack.c.bf16 %v3835_v7, %v3834_v6 }
 0x310   : > { %v3423_v44 = vld [vmem:[#allocation2] sm:$0xff] }
 0x311   : > { %v3460_v57 = vadd.f32 %v3458_v56, %v3423_v44 }
 0x313   : > { %v3461_v58 = vmax.f32 %v3460_v57, 0.0 }
 0x315   : > { %v3470_v60 = vrot.slane %v3461_v58, %v6339_v59  ;;  %v3463_v61 = vcombine.high %v3461_v58, %v3461_v58 }
 0x317   : > { %v3478_v0 = vcombine.high %v3470_v60, %v3470_v60  ;;  %v3477_v1 = vrot.slane %v3463_v61, %v6339_v59  ;;  %v3484_v2 = vpack.c.bf16 %v3470_v60, %v3470_v60  ;;  %v3836_v59 = vld [vmem:[%s6444_s5 + $0x20] sm:$0xff] }
 0x318   : > { %v4595_v11 = vpack.c.bf16 %v3837_v10, %v3836_v59 }
 0x319   : > { %v3485_v3 = vpack.c.bf16 %v3478_v0, %v3478_v0  ;;  %v3479_v50 = vcombine.high %v3477_v1, %v3477_v1  ;;  %v3486_v5 = vpack.c.bf16 %v3477_v1, %v3477_v1 }
 0x31b   : > { %3783 = vmatprep.mubr.bf16.mxu0 %v3485_v3  ;;  %v3487_v8 = vpack.c.bf16 %v3479_v50, %v3479_v50 }
 0x31c   : > { %3784 = vmatmul.mubr.bf16.vlgmr.msra.gmra.mrb[0].mxu0 %v3484_v2 }
 0x31d   : > { %3823 = vmatprep.mubr.bf16.mxu1 %v3487_v8  ;;  %4590 = vmatpush3.bf16.msra.mxu0 %v4589_v4 }
 0x31e   : > { %3824 = vmatmul.mubr.bf16.vlgmr.msra.gmra.mrb[0].mxu1 %v3486_v5  ;;  %4591 = vmatprep.subr.bf16.mxu0 %v5617_v38 }
 0x31f   : > { %4585 = vmatprep.mubr.msk.f32.mxu0 %vm5618_vm1, %v5619_v31 }
 0x321   : > { %4593 = vmatpush3.bf16.msra.mxu0 %v4592_v9 }
 0x322   : > { %4594 = vmatprep.subr.bf16.mxu0 %v5617_v38 }
 0x325   : > { %4596 = vmatpush3.bf16.msra.mxu0 %v4595_v11 }
 0x326   : > { %4597 = vmatprep.subr.bf16.mxu0 %v5617_v38 }
 0x329   : > { %4599 = vmatpush3.bf16.msra.mxu0 %v4598_v15 }
 0x32a   : > { %4600 = vmatprep.subr.bf16.mxu0 %v5617_v38 }
 0x32d   : > { %4602 = vmatpush3.bf16.msra.mxu0 %v4601_v18 }
 0x32e   : > { %4603 = vmatprep.subr.bf16.mxu0 %v5617_v38 }
 0x331   : > { %4605 = vmatpush3.bf16.msra.mxu0 %v4604_v21 }
 0x332   : > { %4606 = vmatprep.subr.bf16.mxu0 %v5617_v38 }
 0x335   : > { %4608 = vmatpush3.bf16.msra.mxu0 %v4607_v25 }
 0x336   : > { %4609 = vmatprep.subr.bf16.mxu0 %v5617_v38 }
 0x339   : > { %4611 = vmatpush3.bf16.msra.mxu0 %v4610_v30 }
 0x3ef   : > { %v4508_v16 = vpop.f32.mrb[0].mxu0 }
 0x3f0   : > { %v4509_v33 = vpop.f32.mrb[1].mxu0 }
 0x3f1   : > { %v4530_v34 = vpop.f32.mrb[0].mxu1  ;;  %v4510_v26 = vadd.f32 %v4509_v33, %v4508_v16  ;;  %v4511_v35 = vpop.f32.mrb[2].mxu0 }
 0x3f2   : > { %v4531_v36 = vpop.f32.mrb[1].mxu1  ;;  %v4512_v14 = vpop.f32.mrb[3].mxu0 }
 0x3f3   : > { %v3786_v39 = vadd.f32 %v4510_v26, %v4454_v32  ;;  %v4532_v40 = vadd.f32 %v4531_v36, %v4530_v34  ;;  %v4533_v41 = vpop.f32.mrb[2].mxu1 }
 0x3f4   : > { %v4534_v42 = vpop.f32.mrb[3].mxu1 }
 0x3f5   : > { %v3826_v43 = vadd.f32 %v4532_v40, %v3786_v39 }
 0x3f7   : > { %v3831_v28 = vmax.f32 %v3826_v43, 0.0 }
 0x3f9   : > { %4586 = vmatmul.mubr.f32.vlgmr.msra.gmra.mrb[4].mxu0 %v3831_v28 }
 0x4cc   : > { %v3921_v46 = vpop.f32.mrb[4].mxu0 }
 0x4cd   : > { %v3922_v47 = vadd.f32 %v4487_v45, %v3921_v46  ;;  %v4587_v37 = vpop.f32.mrb[5].mxu0 }
 0x4cf   : > { %v3926_v48 = vsel %vm3925_vm2, %v3922_v47, -inf }
 0x4d0   : > { %3927 = vmax.xlane.f32.xlu0 %v3926_v48 }
 0x55d   : > { %v3928_v49 = vpop.xlane.xlu0 %3927 }
 0x55e   : > { %v3929_v51 = vsub.f32 %v3922_v47, %v3928_v49 }
 0x560   : > { %v3930_v38 = vmul.f32 1.442695, %v3929_v51 }
 0x562   : > { %5384 = vpow2.f32 %v3930_v38 }
 0x56c   : > { %v5385_v52 = vpop.eup %5384 }
 0x56d   : > { %v3932_v54 = vsel %vm3925_vm2, %v5385_v52, 0.0 }
 0x56e   : > { %3933 = vadd.xlane.f32.xlu0 %v3932_v54 }
 0x5fb   : > { %v3934_v22 = vpop.xlane.xlu0 %3933 }
 0x5fc   : > { %5386 = vrcp.f32 %v3934_v22 }
 0x606   : > { %v5387_v55 = vpop.eup %5386 }
 0x607   : > { %v3936_v44 = vmul.f32 %v5387_v55, %v5385_v52 }
 0x609   : > { %3937 = vst.msk [vmem:[#allocation12] sm:$0x3] %vm3925_vm2, %v3936_v44 }
 0x60a PF: > { %p4712_p4 = scmp.eq.s32.totalorder %s5680_s28, 3  ;;  %s5620_s10 = smov [#allocation12]  }
 0x60b   : > { %s3945_s15 = sshll.u32 %s5620_s10, 4  ;;  %s3946_s15 = int_to_ptr.vmem [resolvable:$true] %s3945_s15 }
 0x60c   : > { %s5530_s29 = scalar_lea.vmem %s3946_s15, 32  ;;  %p5537_p2 = scmp.lt.s32.totalorder %s3946_s15, %s3946_s15 }
 0x60d   : > { %p5531_p8 = scmp.ne.s32.totalorder %s3946_s15, %s5530_s29  ;;  %p5538_p6 = scmp.lt.s32.totalorder %s5530_s29, %s5530_s29 }
 0x60f   : > { %p5532_p12 = pnand %p5531_p8, %p4712_p4  ;;  %p5539_p13 = por %p5538_p6, %p5537_p2 }
 0x611   : > { %p5533_p0 = pneg %p5532_p12 }
 0x613   : > { %p5540_p3 = pnand %p5539_p13, %p5533_p0 }
 0x615   : > { %5543 = shalt.err (!%p5540_p3)
}
 0x616   : > { %s5544_s9 = scalar_lea.hbm %s6446_s7, 32 }
 0x617   : > { %p5545_p5 = scmp.ne.s32.totalorder %s6446_s7, %s5544_s9  ;;  %p5550_p9 = scmp.lt.u32.totalorder %s5544_s9, %s6446_s7 }
 0x619   : > { %p5546_p7 = pnand %p5545_p5, %p4712_p4 }
 0x61b   : > { %p5547_p10 = pneg %p5546_p7 }
 0x61d   : > { %p5552_p11 = pnand %p5550_p9, %p5547_p10 }
 0x61f   : > { %5555 = shalt.err (!%p5552_p11)
}
 0x620   : > { %4683 = dma.vmem_to_hbm [thread:$0]  (%p4712_p4), %s3946_s15, 32, %s6446_s7, [#allocation5]  }
 0x621   : > { %5585 = dma.done.wait (%p4712_p4), [#allocation5], 32  }
 0x622   : > { %5587 = vsyncadd (%p4712_p4), [#allocation5], 4294967264 }
 0x623 PF: > { %p20_p1 = scmp.ge.s32.totalorder %s5799_s20, 6   ;;  %s6462_s24 = smov %s5594_s25 }
 0x624   : > { %s6463_s25 = smov %s5598_s26  ;;  %s6464_s26 = smov %s5810_s22 }
 0x625   : > { %s6465_s27 = smov %s5799_s20  ;;  %22 = sbr.rel (!%p20_p1) target bundleno = 6 (0x6), region = 112 }
 0x62c   :  { %3958 = vsyncpa [#allocation4], 1 }
 0x62d   :  { %3960 = vsyncpa [#allocation4 + $0x1], 1 }
 0x62e   :  { %3961 = vsyncpa [#allocation7], 1 }
 0x62f   :  { %3962 = vsyncpa [#allocation10], 1 }
 0x630   :  { %3963 = vsyncpa [#allocation5], 1 }
 0x631   :  { %3965 = vsyncpa [#allocation5 + $0x1], 1 }

// kernel: resnet_forward.2
= control target key start
LH: loop header
LB: loop body
LE: loop exit
PB: predicated region body
PF: predicated region fallthrough
CT: control target
= control target key end

     0   :  { %16 = vsyncpa [#allocation3], 0  ;;  %s8390_s0 = inlined_call_operand.vmem [shape: bf16[3,64,32], index: 0, kind: input, shape index: {}]   ;;  %s8391_s1 = inlined_call_operand.hbm [shape: bf16[3,32,1024], index: 1, kind: input, shape index: {}]   ;;  %s8392_s2 = inlined_call_operand.hbm [shape: bf16[64,64], index: 2, kind: input, shape index: {}]   ;;  %s8393_s3 = inlined_call_operand.hbm [shape: bf16[3,32,64], index: 3, kind: input, shape index: {}]   ;;  %s8394_s4 = inlined_call_operand.hbm [shape: bf16[3,512,256], index: 4, kind: input, shape index: {}]   ;;  %s8395_s5 = inlined_call_operand.hbm [shape: bf16[3,32,32], index: 5, kind: input, shape index: {}]   ;;  %s8396_s6 = inlined_call_operand.hbm [shape: bf16[3,256,512], index: 6, kind: input, shape index: {}]   ;;  %s8397_s7 = inlined_call_operand.hbm [shape: f32[1,512], index: 7, kind: input, shape index: {}]   ;;  %s8398_s8 = inlined_call_operand.hbm [shape: f32[1,256], index: 8, kind: input, shape index: {}]   ;;  %s8399_s9 = inlined_call_operand.hbm [shape: f32[1,512], index: 9, kind: input, shape index: {}]   ;;  %s8400_s10 = inlined_call_operand.hbm [shape: f32[32,256], index: 10, kind: input, shape index: {}]   ;;  %s8401_s11 = inlined_call_operand.vmem [shape: f32[32,512], index: 11, kind: output, shape index: {}]  }
   0x1   :  { %17 = vsyncpa [#allocation5], 0 }
   0x2   :  { %18 = vsyncpa [#allocation8], 0 }
   0x3   :  { %19 = vsyncpa [#allocation11], 0 }
   0x4   :  { %20 = vsyncpa [#allocation14], 0 }
   0x5   :  { %21 = vsyncpa [#allocation17], 0  ;;  %s7281_s17 = smov [#allocation4]   ;;  %s7049_s21 = scalar_lea.hbm %s8392_s2, 512 }
   0x6   :  { %s41_s18 = sshll.u32 %s7281_s17, 4  ;;  %p7050_p0 = scmp.ne.s32.totalorder %s8392_s2, %s7049_s21  ;;  %s42_s18 = int_to_ptr.vmem [resolvable:$true] %s41_s18 }
   0x7   :  { %p7053_p1 = scmp.lt.u32.totalorder %s7049_s21, %s8392_s2 }
   0x9   :  { %p7055_p2 = pnand %p7053_p1, %p7050_p0 }
   0xb   :  { %7058 = shalt.err (!%p7055_p2)
}
   0xc   :  { %s7059_s26 = scalar_lea.vmem %s42_s18, 512  ;;  %p7064_p4 = scmp.lt.s32.totalorder %s42_s18, %s42_s18 }
   0xd   :  { %p7060_p3 = scmp.ne.s32.totalorder %s42_s18, %s7059_s26  ;;  %p7065_p5 = scmp.lt.s32.totalorder %s7059_s26, %s7059_s26 }
   0xf   :  { %p7066_p6 = por %p7065_p5, %p7064_p4 }
  0x11   :  { %p7067_p7 = pnand %p7066_p6, %p7060_p3 }
  0x13   :  { %7070 = shalt.err (!%p7067_p7)
}
  0x14   :  { %s7282_s27 = smov 64   ;;  %s7283_s28 = smov 4  }
  0x15   :  { %47 = dma.hbm_to_vmem [thread:$0]  %s8392_s2, 512, %s42_s18, [#allocation5], %s7282_s27, %s7282_s27, %s7283_s28  }
  0x16   :  { %s7284_s12 = smov [#allocation7]   ;;  %s7071_s16 = scalar_lea.hbm %s8394_s4, 24576 }
  0x17   :  { %s65_s13 = sshll.u32 %s7284_s12, 4  ;;  %p7072_p8 = scmp.ne.s32.totalorder %s8394_s4, %s7071_s16  ;;  %s66_s13 = int_to_ptr.vmem [resolvable:$true] %s65_s13 }
  0x18   :  { %p7075_p9 = scmp.lt.u32.totalorder %s7071_s16, %s8394_s4 }
  0x1a   :  { %p7077_p10 = pnand %p7075_p9, %p7072_p8 }
  0x1c   :  { %7080 = shalt.err (!%p7077_p10)
}
  0x1d   :  { %s7081_s22 = scalar_lea.vmem %s66_s13, 24576  ;;  %p7086_p12 = scmp.lt.s32.totalorder %s66_s13, %s66_s13 }
  0x1e   :  { %p7082_p11 = scmp.ne.s32.totalorder %s66_s13, %s7081_s22  ;;  %p7087_p13 = scmp.lt.s32.totalorder %s7081_s22, %s7081_s22 }
  0x20   :  { %p7088_p0 = por %p7087_p13, %p7086_p12 }
  0x22   :  { %p7089_p1 = pnand %p7088_p0, %p7082_p11 }
  0x24   :  { %7092 = shalt.err (!%p7089_p1)
}
  0x25   :  { %s7285_s2 = smov 128   ;;  %s7286_s18 = smov 8  }
  0x26   :  { %71 = dma.hbm_to_vmem [thread:$0]  %s8394_s4, 24576, %s66_s13, [#allocation8], %s7285_s2, %s7285_s2, %s7286_s18  }
  0x27   :  { %s7287_s25 = smov [#allocation10]   ;;  %s7093_s12 = scalar_lea.hbm %s8396_s6, 24576 }
  0x28   :  { %s89_s26 = sshll.u32 %s7287_s25, 4  ;;  %p7094_p2 = scmp.ne.s32.totalorder %s8396_s6, %s7093_s12  ;;  %s90_s26 = int_to_ptr.vmem [resolvable:$true] %s89_s26 }
  0x29   :  { %p7097_p3 = scmp.lt.u32.totalorder %s7093_s12, %s8396_s6 }
  0x2b   :  { %p7099_p4 = pnand %p7097_p3, %p7094_p2 }
  0x2d   :  { %7102 = shalt.err (!%p7099_p4)
}
  0x2e   :  { %s7103_s19 = scalar_lea.vmem %s90_s26, 24576  ;;  %p7108_p6 = scmp.lt.s32.totalorder %s90_s26, %s90_s26 }
  0x2f   :  { %p7104_p5 = scmp.ne.s32.totalorder %s90_s26, %s7103_s19  ;;  %p7109_p7 = scmp.lt.s32.totalorder %s7103_s19, %s7103_s19 }
  0x31   :  { %p7110_p8 = por %p7109_p7, %p7108_p6 }
  0x33   :  { %p7111_p9 = pnand %p7110_p8, %p7104_p5 }
  0x35   :  { %7114 = shalt.err (!%p7111_p9)
}
  0x36   :  { %s7288_s4 = smov 256   ;;  %s7289_s13 = smov 16  }
  0x37   :  { %95 = dma.hbm_to_vmem [thread:$0]  %s8396_s6, 24576, %s90_s26, [#allocation11], %s7288_s4, %s7288_s4, %s7289_s13  }
  0x38   :  { %s7290_s22 = smov [#allocation13]   ;;  %s7291_s18 = smov [#allocation2]  }
  0x39   :  { %s112_s2 = sshll.u32 %s7290_s22, 4  ;;  %s29_s23 = sshll.u32 %s7291_s18, 4  ;;  %s113_s2 = int_to_ptr.vmem [resolvable:$true] %s112_s2  ;;  %s30_s23 = int_to_ptr.vmem [resolvable:$true] %s29_s23 }
  0x3a   :  { %s7115_s29 = scalar_lea.hbm %s8398_s8, 32 }
  0x3b   :  { %p7116_p10 = scmp.ne.s32.totalorder %s8398_s8, %s7115_s29  ;;  %p7119_p11 = scmp.lt.u32.totalorder %s7115_s29, %s8398_s8 }
  0x3d   :  { %p7121_p12 = pnand %p7119_p11, %p7116_p10 }
  0x3f   :  { %7124 = shalt.err (!%p7121_p12)
}
  0x40   :  { %s7125_s6 = scalar_lea.vmem %s113_s2, 32  ;;  %p7130_p0 = scmp.lt.s32.totalorder %s113_s2, %s113_s2 }
  0x41   :  { %p7126_p13 = scmp.ne.s32.totalorder %s113_s2, %s7125_s6  ;;  %p7131_p1 = scmp.lt.s32.totalorder %s7125_s6, %s7125_s6 }
  0x43   :  { %p7132_p2 = por %p7131_p1, %p7130_p0 }
  0x45   :  { %p7133_p3 = pnand %p7132_p2, %p7126_p13 }
  0x47   :  { %7136 = shalt.err (!%p7133_p3)
}
  0x48   :  { %115 = dma.hbm_to_vmem [thread:$0]  %s8398_s8, 32, %s113_s2, [#allocation14]  }
  0x49   :  { %s7137_s20 = scalar_lea.hbm %s8391_s1, 6144 }
  0x4a   :  { %p7138_p4 = scmp.ne.s32.totalorder %s8391_s1, %s7137_s20  ;;  %p7141_p5 = scmp.lt.u32.totalorder %s7137_s20, %s8391_s1 }
  0x4c   :  { %p7143_p6 = pnand %p7141_p5, %p7138_p4 }
  0x4e   :  { %7146 = shalt.err (!%p7143_p6)
}
  0x4f   :  { %s7147_s25 = scalar_lea.vmem %s30_s23, 6144  ;;  %p7152_p8 = scmp.lt.s32.totalorder %s30_s23, %s30_s23 }
  0x50   :  { %p7148_p7 = scmp.ne.s32.totalorder %s30_s23, %s7147_s25  ;;  %p7153_p9 = scmp.lt.s32.totalorder %s7147_s25, %s7147_s25 }
  0x52   :  { %p7154_p10 = por %p7153_p9, %p7152_p8 }
  0x54   :  { %p7155_p11 = pnand %p7154_p10, %p7148_p7 }
  0x56   :  { %7158 = shalt.err (!%p7155_p11)
}
  0x57   :  { %s7292_s8 = smov 512   ;;  %s7293_s2 = smov 32  }
  0x58   :  { %35 = dma.hbm_to_vmem [thread:$0]  %s8391_s1, 6144, %s30_s23, [#allocation3], %s7292_s8, %s7292_s8, %s7293_s2  }
  0x59   :  { %s7294_s12 = smov [#allocation6]   ;;  %s7295_s15 = smov [#allocation9]  }
  0x5a   :  { %s53_s14 = sshll.u32 %s7294_s12, 4  ;;  %s77_s6 = sshll.u32 %s7295_s15, 4  ;;  %s54_s14 = int_to_ptr.vmem [resolvable:$true] %s53_s14  ;;  %s78_s6 = int_to_ptr.vmem [resolvable:$true] %s77_s6 }
  0x5b   :  { %s7159_s17 = scalar_lea.hbm %s8393_s3, 768 }
  0x5c   :  { %p7160_p12 = scmp.ne.s32.totalorder %s8393_s3, %s7159_s17  ;;  %p7163_p13 = scmp.lt.u32.totalorder %s7159_s17, %s8393_s3 }
  0x5e   :  { %p7165_p0 = pnand %p7163_p13, %p7160_p12 }
  0x60   :  { %7168 = shalt.err (!%p7165_p0)
}
  0x61   :  { %s7169_s1 = scalar_lea.vmem %s54_s14, 768  ;;  %p7174_p2 = scmp.lt.s32.totalorder %s54_s14, %s54_s14 }
  0x62   :  { %p7170_p1 = scmp.ne.s32.totalorder %s54_s14, %s7169_s1  ;;  %p7175_p3 = scmp.lt.s32.totalorder %s7169_s1, %s7169_s1 }
  0x64   :  { %p7176_p4 = por %p7175_p3, %p7174_p2 }
  0x66   :  { %p7177_p5 = pnand %p7176_p4, %p7170_p1 }
  0x68   :  { %7180 = shalt.err (!%p7177_p5)
}
  0x69   :  { %59 = dma.hbm_to_vmem [thread:$0]  %s8393_s3, 768, %s54_s14, [#allocation5], %s7282_s27, %s7282_s27, %s7283_s28  }
  0x6a   :  { %s7181_s8 = scalar_lea.hbm %s8395_s5, 768 }
  0x6b   :  { %p7182_p6 = scmp.ne.s32.totalorder %s8395_s5, %s7181_s8  ;;  %p7185_p7 = scmp.lt.u32.totalorder %s7181_s8, %s8395_s5 }
  0x6d   :  { %p7187_p8 = pnand %p7185_p7, %p7182_p6 }
  0x6f   :  { %7190 = shalt.err (!%p7187_p8)
}
  0x70   :  { %s7191_s15 = scalar_lea.vmem %s78_s6, 768  ;;  %p7196_p10 = scmp.lt.s32.totalorder %s78_s6, %s78_s6 }
  0x71   :  { %p7192_p9 = scmp.ne.s32.totalorder %s78_s6, %s7191_s15  ;;  %p7197_p11 = scmp.lt.s32.totalorder %s7191_s15, %s7191_s15 }
  0x73   :  { %p7198_p12 = por %p7197_p11, %p7196_p10 }
  0x75   :  { %p7199_p13 = pnand %p7198_p12, %p7192_p9 }
  0x77   :  { %7202 = shalt.err (!%p7199_p13)
}
  0x78   :  { %83 = dma.hbm_to_vmem [thread:$0]  %s8395_s5, 768, %s78_s6, [#allocation8], %s7282_s27, %s7282_s27, %s7283_s28  }
  0x79   :  { %s7296_s26 = smov [#allocation12]   ;;  %s7297_s17 = smov [#allocation15]  }
  0x7a   :  { %s102_s16 = sshll.u32 %s7296_s26, 4  ;;  %s122_s19 = sshll.u32 %s7297_s17, 4  ;;  %s103_s16 = int_to_ptr.vmem [resolvable:$true] %s102_s16  ;;  %s123_s19 = int_to_ptr.vmem [resolvable:$true] %s122_s19 }
  0x7b   :  { %s7203_s22 = scalar_lea.hbm %s8397_s7, 64 }
  0x7c   :  { %p7204_p0 = scmp.ne.s32.totalorder %s8397_s7, %s7203_s22  ;;  %p7207_p1 = scmp.lt.u32.totalorder %s7203_s22, %s8397_s7 }
  0x7e   :  { %p7209_p2 = pnand %p7207_p1, %p7204_p0 }
  0x80   :  { %7212 = shalt.err (!%p7209_p2)
}
  0x81   :  { %s7213_s5 = scalar_lea.vmem %s103_s16, 64  ;;  %p7218_p4 = scmp.lt.s32.totalorder %s103_s16, %s103_s16 }
  0x82   :  { %p7214_p3 = scmp.ne.s32.totalorder %s103_s16, %s7213_s5  ;;  %p7219_p5 = scmp.lt.s32.totalorder %s7213_s5, %s7213_s5 }
  0x84   :  { %p7220_p6 = por %p7219_p5, %p7218_p4 }
  0x86   :  { %p7221_p7 = pnand %p7220_p6, %p7214_p3 }
  0x88   :  { %7224 = shalt.err (!%p7221_p7)
}
  0x89   :  { %105 = dma.hbm_to_vmem [thread:$0]  %s8397_s7, 64, %s103_s16, [#allocation11]  }
  0x8a   :  { %s7225_s8 = scalar_lea.hbm %s8399_s9, 64 }
  0x8b   :  { %p7226_p8 = scmp.ne.s32.totalorder %s8399_s9, %s7225_s8  ;;  %p7229_p9 = scmp.lt.u32.totalorder %s7225_s8, %s8399_s9 }
  0x8d   :  { %p7231_p10 = pnand %p7229_p9, %p7226_p8 }
  0x8f   :  { %7234 = shalt.err (!%p7231_p10)
}
  0x90   :  { %s7235_s15 = scalar_lea.vmem %s123_s19, 64  ;;  %p7240_p12 = scmp.lt.s32.totalorder %s123_s19, %s123_s19 }
  0x91   :  { %p7236_p11 = scmp.ne.s32.totalorder %s123_s19, %s7235_s15  ;;  %p7241_p13 = scmp.lt.s32.totalorder %s7235_s15, %s7235_s15 }
  0x93   :  { %p7242_p0 = por %p7241_p13, %p7240_p12 }
  0x95   :  { %p7243_p1 = pnand %p7242_p0, %p7236_p11 }
  0x97   :  { %7246 = shalt.err (!%p7243_p1)
}
  0x98   :  { %125 = dma.hbm_to_vmem [thread:$0]  %s8399_s9, 64, %s123_s19, [#allocation14]  }
  0x99   :  { %s7298_s14 = smov [#allocation16]   ;;  %s7247_s20 = scalar_lea.hbm %s8400_s10, 1024 }
  0x9a   :  { %s131_s26 = sshll.u32 %s7298_s14, 4  ;;  %p7248_p2 = scmp.ne.s32.totalorder %s8400_s10, %s7247_s20  ;;  %s132_s26 = int_to_ptr.vmem [resolvable:$true] %s131_s26 }
  0x9b   :  { %p7251_p3 = scmp.lt.u32.totalorder %s7247_s20, %s8400_s10 }
  0x9d   :  { %p7253_p4 = pnand %p7251_p3, %p7248_p2 }
  0x9f   :  { %7256 = shalt.err (!%p7253_p4)
}
  0xa0   :  { %s7257_s18 = scalar_lea.vmem %s132_s26, 1024  ;;  %p7262_p6 = scmp.lt.s32.totalorder %s132_s26, %s132_s26 }
  0xa1   :  { %p7258_p5 = scmp.ne.s32.totalorder %s132_s26, %s7257_s18  ;;  %p7263_p7 = scmp.lt.s32.totalorder %s7257_s18, %s7257_s18 }
  0xa3   :  { %p7264_p8 = por %p7263_p7, %p7262_p6 }
  0xa5   :  { %p7265_p9 = pnand %p7264_p8, %p7258_p5 }
  0xa7   :  { %7268 = shalt.err (!%p7265_p9)
}
  0xa8   :  { %137 = dma.hbm_to_vmem [thread:$0]  %s8400_s10, 1024, %s132_s26, [#allocation17], %s7288_s4, %s7288_s4, %s7289_s13  }
  0xa9   :  { %7269 = dma.done.wait [#allocation3], 6144  }
  0xaa   :  { %7270 = vsyncadd [#allocation3], 4294961152 }
  0xab   :  { %7271 = dma.done.wait [#allocation5], 1280  }
  0xac   :  { %7272 = vsyncadd [#allocation5], 4294966016 }
  0xad   :  { %7273 = dma.done.wait [#allocation8], 25344  }
  0xae   :  { %7274 = vsyncadd [#allocation8], 4294941952 }
  0xaf   :  { %7275 = dma.done.wait [#allocation11], 24640  }
  0xb0   :  { %7276 = vsyncadd [#allocation11], 4294942656 }
  0xb1   :  { %7277 = dma.done.wait [#allocation14], 96  }
  0xb2   :  { %7278 = vsyncadd [#allocation14], 4294967200 }
  0xb3   :  { %7279 = dma.done.wait [#allocation17], 1024  }
  0xb4   :  { %7280 = vsyncadd [#allocation17], 4294966272  ;;  %v7299_v0 = vmov 0   ;;  %v203_v1 = vld [vmem:[#allocation2 + $0x80] sm:$0xff]  ;;  %v206_v3 = vld [vmem:[#allocation2 + $0x98] sm:$0xff]  ;;  %vm319_vm0 = vcmask 261120  }
  0xb5   :  { %364 = vmatprep.mubr.bf16.mxu0 %v7299_v0  ;;  %593 = vmatprep.mubr.bf16.mxu1 %v7299_v0  ;;  %v207_v2 = vld [vmem:[#allocation2 + $0xa0] sm:$0xff]  ;;  %v210_v5 = vld [vmem:[#allocation2 + $0xb8] sm:$0xff]  ;;  %v204_v16 = vld [vmem:[#allocation2 + $0x88] sm:$0xff]  ;;  %vm1748_vm1 = vcmask 523264  }
  0xb6   :  { %v5685_v4 = vcombine.high %v203_v1, %v207_v2  ;;  %v5684_v6 = vcombine.low %v203_v1, %v207_v2  ;;  %v211_v7 = vld [vmem:[#allocation2 + $0xc0] sm:$0xff]  ;;  %v7497_v9 = vcombine.high %v206_v3, %v210_v5  ;;  %v7499_v10 = vcombine.low %v206_v3, %v210_v5  ;;  %v214_v12 = vld [vmem:[#allocation2 + $0xd8] sm:$0xff]  ;;  %v208_v18 = vld [vmem:[#allocation2 + $0xa8] sm:$0xff] }
  0xb7   :  { %v215_v8 = vld [vmem:[#allocation2 + $0xe0] sm:$0xff]  ;;  %v218_v13 = vld [vmem:[#allocation2 + $0xf8] sm:$0xff]  ;;  %v5687_v20 = vcombine.high %v204_v16, %v208_v18  ;;  %v7516_v21 = vld [vmem:[%s8390_s0 + $0x28] sm:$0xff]   ;;  %v5686_v24 = vcombine.low %v204_v16, %v208_v18 }
  0xb8   :  { %v5693_v11 = vcombine.high %v211_v7, %v215_v8  ;;  %332 = vmatprep.subr.bf16.mxu0 %v5685_v4  ;;  %v7501_v14 = vcombine.high %v214_v12, %v218_v13  ;;  %6222 = vmatprep.subr.bf16.mxu1 %v7497_v9  ;;  %v5692_v15 = vcombine.low %v211_v7, %v215_v8  ;;  %v7511_v19 = vld [vmem:[%s8390_s0 + $0x20] sm:$0xff]   ;;  %v178_v22 = vld [vmem:[#allocation2 + $0x8] sm:$0xff]  ;;  %v205_v33 = vld [vmem:[#allocation2 + $0x90] sm:$0xff] }
  0xb9   :  { %333 = vmatpush1.bf16.msra.mxu0 %v5684_v6  ;;  %6224 = vmatpush1.bf16.msra.mxu1 %v7499_v10  ;;  %v7505_v17 = vcombine.low %v214_v12, %v218_v13  ;;  %v182_v23 = vld [vmem:[#allocation2 + $0x28] sm:$0xff]  ;;  %v209_v34 = vld [vmem:[#allocation2 + $0xb0] sm:$0xff]  ;;  %v180_v38 = vld [vmem:[#allocation2 + $0x18] sm:$0xff] }
  0xba   :  { %334 = vmatprep.subr.bf16.mxu0 %v5693_v11  ;;  %6223 = vmatprep.subr.bf16.mxu1 %v7501_v14  ;;  %v5723_v25 = vcombine.high %v178_v22, %v182_v23  ;;  %v212_v26 = vld [vmem:[#allocation2 + $0xc8] sm:$0xff]  ;;  %v5722_v30 = vcombine.low %v178_v22, %v182_v23  ;;  %v5689_v36 = vcombine.high %v205_v33, %v209_v34  ;;  %v184_v39 = vld [vmem:[#allocation2 + $0x38] sm:$0xff]  ;;  %v7528_v41 = vld [vmem:[%s8390_s0 + $0x30] sm:$0xff]  }
  0xbb   :  { %v216_v27 = vld [vmem:[#allocation2 + $0xe8] sm:$0xff]  ;;  %v5727_v40 = vcombine.high %v180_v38, %v184_v39  ;;  %v7539_v42 = vld [vmem:[%s8390_s0 + $0x38] sm:$0xff]   ;;  %v7550_v45 = vld [vmem:[%s8390_s0] sm:$0xff]   ;;  %v5726_v46 = vcombine.low %v180_v38, %v184_v39  ;;  %v5688_v55 = vcombine.low %v205_v33, %v209_v34 }
  0xbc   :  { %v186_v28 = vld [vmem:[#allocation2 + $0x48] sm:$0xff]  ;;  %v5695_v31 = vcombine.high %v212_v26, %v216_v27  ;;  %v5694_v35 = vcombine.low %v212_v26, %v216_v27  ;;  %v188_v43 = vld [vmem:[#allocation2 + $0x58] sm:$0xff]  ;;  %v213_v50 = vld [vmem:[#allocation2 + $0xd0] sm:$0xff] }
  0xbd   :  { %335 = vmatpush1.bf16.msra.mxu0 %v5692_v15  ;;  %6225 = vmatpush1.bf16.msra.mxu1 %v7505_v17  ;;  %v190_v29 = vld [vmem:[#allocation2 + $0x68] sm:$0xff]  ;;  %v192_v44 = vld [vmem:[#allocation2 + $0x78] sm:$0xff]  ;;  %v217_v51 = vld [vmem:[#allocation2 + $0xf0] sm:$0xff] }
  0xbe   :  { %405 = vmatprep.subr.bf16.mxu0 %v5687_v20  ;;  %809 = vmatprep.subr.bf16.mxu1 %v5723_v25  ;;  %v5731_v32 = vcombine.high %v186_v28, %v190_v29  ;;  %v5730_v37 = vcombine.low %v186_v28, %v190_v29  ;;  %v5735_v47 = vcombine.high %v188_v43, %v192_v44  ;;  %v1039_v48 = vld [vmem:[#allocation2 + $0x108] sm:$0xff]  ;;  %v7572_v58 = vld [vmem:[%s8390_s0 + $0x10] sm:$0xff]   ;;  %v7584_v59 = vld [vmem:[%s8390_s0 + $0x18] sm:$0xff]  }
  0xbf   :  { %v1043_v49 = vld [vmem:[#allocation2 + $0x128] sm:$0xff]  ;;  %v5734_v52 = vcombine.low %v188_v43, %v192_v44  ;;  %v5697_v56 = vcombine.high %v213_v50, %v217_v51  ;;  %v5696_v57 = vcombine.low %v213_v50, %v217_v51  ;;  %v1041_v1 = vld [vmem:[#allocation2 + $0x118] sm:$0xff]  ;;  %v177_v5 = vld [vmem:[#allocation2] sm:$0xff] }
  0xc0   :  { %5700 = vmatmul.mubr.msk.bf16.vlgmr.msra.gmra.mrb[0].mxu0 %vm319_vm0, %v7511_v19  ;;  %5713 = vmatmul.mubr.msk.bf16.vlgmr.msra.gmra.mrb[0].mxu1 %vm319_vm0, %v7516_v21  ;;  %v7561_v53 = vld [vmem:[%s8390_s0 + $0x8] sm:$0xff]   ;;  %v5767_v54 = vcombine.high %v1039_v48, %v1043_v49  ;;  %v5766_v62 = vcombine.low %v1039_v48, %v1043_v49  ;;  %v1045_v2 = vld [vmem:[#allocation2 + $0x138] sm:$0xff]  ;;  %v181_v6 = vld [vmem:[#allocation2 + $0x20] sm:$0xff] }
  0xc1   :  { %406 = vmatpush1.bf16.msra.mxu0 %v5686_v24  ;;  %374 = vmatprep.mubr.bf16.mxu0 %v7299_v0  ;;  %v1047_v60 = vld [vmem:[#allocation2 + $0x148] sm:$0xff]  ;;  %v5771_v4 = vcombine.high %v1041_v1, %v1045_v2  ;;  %v5721_v7 = vcombine.high %v177_v5, %v181_v6  ;;  %v1049_v8 = vld [vmem:[#allocation2 + $0x158] sm:$0xff]  ;;  %v5770_v11 = vcombine.low %v1041_v1, %v1045_v2  ;;  %v185_v13 = vld [vmem:[#allocation2 + $0x40] sm:$0xff] }
  0xc2   :  { %603 = vmatprep.mubr.bf16.mxu1 %v7299_v0  ;;  %810 = vmatpush1.bf16.msra.mxu1 %v5722_v30  ;;  %v1051_v61 = vld [vmem:[#allocation2 + $0x168] sm:$0xff]  ;;  %v179_v18 = vld [vmem:[#allocation2 + $0x10] sm:$0xff]  ;;  %v1038_v27 = vld [vmem:[#allocation2 + $0x100] sm:$0xff] }
  0xc3   :  { %407 = vmatprep.subr.bf16.mxu0 %v5695_v31  ;;  %811 = vmatprep.subr.bf16.mxu1 %v5731_v32  ;;  %v5775_v63 = vcombine.high %v1047_v60, %v1051_v61  ;;  %v5774_v3 = vcombine.low %v1047_v60, %v1051_v61  ;;  %v7633_v16 = vld [vmem:[%s8390_s0 + $0x48] sm:$0xff]   ;;  %v183_v20 = vld [vmem:[#allocation2 + $0x30] sm:$0xff]  ;;  %v1042_v28 = vld [vmem:[#allocation2 + $0x120] sm:$0xff] }
  0xc4   :  { %v5725_v23 = vcombine.high %v179_v18, %v183_v20  ;;  %v187_v24 = vld [vmem:[#allocation2 + $0x50] sm:$0xff]  ;;  %v5765_v31 = vcombine.high %v1038_v27, %v1042_v28  ;;  %v6456_v32 = vld [vmem:[%s8390_s0 + $0x58] sm:$0xff]   ;;  %v1046_v33 = vld [vmem:[#allocation2 + $0x140] sm:$0xff] }
  0xc5   :  { %408 = vmatpush1.bf16.msra.mxu0 %v5694_v35  ;;  %v191_v25 = vld [vmem:[#allocation2 + $0x70] sm:$0xff]  ;;  %v1050_v34 = vld [vmem:[#allocation2 + $0x160] sm:$0xff]  ;;  %v5764_v35 = vcombine.low %v1038_v27, %v1042_v28 }
  0xc6   :  { %478 = vmatprep.subr.bf16.mxu0 %v5689_v36  ;;  %812 = vmatpush1.bf16.msra.mxu1 %v5730_v37  ;;  %v7644_v26 = vld [vmem:[%s8390_s0 + $0x50] sm:$0xff]   ;;  %v5733_v29 = vcombine.high %v187_v24, %v191_v25  ;;  %v5732_v30 = vcombine.low %v187_v24, %v191_v25  ;;  %v5773_v38 = vcombine.high %v1046_v33, %v1050_v34 }
  0xc7   :  { %955 = vmatprep.subr.bf16.mxu1 %v5727_v40  ;;  %v1040_v36 = vld [vmem:[#allocation2 + $0x110] sm:$0xff]  ;;  %v5772_v39 = vcombine.low %v1046_v33, %v1050_v34  ;;  %v7724_v33 = vld [vmem:[#allocation12] sm:$0xf] }
  0xc8   :  { %5701 = vmatmul.mubr.msk.bf16.gmra.mrb[4].mxu0 %vm319_vm0, %v7516_v21  ;;  %5714 = vmatmul.mubr.msk.bf16.gmra.mrb[4].mxu1 %vm319_vm0, %v7528_v41  ;;  %v1044_v37 = vld [vmem:[#allocation2 + $0x130] sm:$0xff] }
  0xc9   :  { %384 = vmatprep.mubr.bf16.mxu0 %v7299_v0  ;;  %613 = vmatprep.mubr.bf16.mxu1 %v7299_v0  ;;  %v5769_v40 = vcombine.high %v1040_v36, %v1044_v37  ;;  %v5768_v43 = vcombine.low %v1040_v36, %v1044_v37 }
  0xd0   :  { %5702 = vmatmul.mubr.msk.bf16.gmra.mrb[8].mxu0 %vm319_vm0, %v7528_v41  ;;  %5715 = vmatmul.mubr.msk.bf16.gmra.mrb[8].mxu1 %vm319_vm0, %v7539_v42 }
  0xd1   :  { %394 = vmatprep.mubr.bf16.mxu0 %v7299_v0  ;;  %841 = vmatprep.mubr.bf16.mxu1 %v7299_v0 }
  0xd8   :  { %5703 = vmatmul.mubr.msk.bf16.gmra.mrb[12].mxu0 %vm319_vm0, %v7539_v42  ;;  %5740 = vmatmul.mubr.msk.bf16.vlgmr.msra.gmra.mrb[12].mxu1 %vm319_vm0, %v7550_v45 }
  0xd9   :  { %437 = vmatprep.mubr.bf16.mxu0 %v7299_v0  ;;  %851 = vmatprep.mubr.bf16.mxu1 %v7299_v0 }
  0xda   :  { %956 = vmatpush1.bf16.msra.mxu1 %v5726_v46 }
  0xdb   :  { %957 = vmatprep.subr.bf16.mxu1 %v5735_v47 }
  0xde   :  { %958 = vmatpush1.bf16.msra.mxu1 %v5734_v52 }
  0xdf   :  { %1239 = vmatprep.subr.bf16.mxu1 %v5767_v54 }
  0xe0   :  { %5704 = vmatmul.mubr.msk.bf16.vlgmr.msra.gmra.mrb[16].mxu0 %vm319_vm0, %v7511_v19  ;;  %5741 = vmatmul.mubr.msk.bf16.gmra.mrb[16].mxu1 %vm319_vm0, %v7561_v53 }
  0xe1   :  { %479 = vmatpush1.bf16.msra.mxu0 %v5688_v55  ;;  %447 = vmatprep.mubr.bf16.mxu0 %v7299_v0 }
  0xe2   :  { %861 = vmatprep.mubr.bf16.mxu1 %v7299_v0  ;;  %480 = vmatprep.subr.bf16.mxu0 %v5697_v56 }
  0xe5   :  { %481 = vmatpush1.bf16.msra.mxu0 %v5696_v57 }
  0xe6   :  { %551 = vmatprep.subr.bf16.mxu0 %v7497_v9  ;;  %v1053_v9 = vld [vmem:[#allocation2 + $0x178] sm:$0xff] }
  0xe7   :  { %v5779_v12 = vcombine.high %v1049_v8, %v1053_v9  ;;  %v5778_v15 = vcombine.low %v1049_v8, %v1053_v9 }
  0xe8   :  { %5705 = vmatmul.mubr.msk.bf16.gmra.mrb[20].mxu0 %vm319_vm0, %v7516_v21  ;;  %5742 = vmatmul.mubr.msk.bf16.gmra.mrb[20].mxu1 %vm319_vm0, %v7572_v58 }
  0xe9   :  { %457 = vmatprep.mubr.bf16.mxu0 %v7299_v0  ;;  %871 = vmatprep.mubr.bf16.mxu1 %v7299_v0 }
  0xf0   :  { %5706 = vmatmul.mubr.msk.bf16.gmra.mrb[24].mxu0 %vm319_vm0, %v7528_v41  ;;  %5743 = vmatmul.mubr.msk.bf16.gmra.mrb[24].mxu1 %vm319_vm0, %v7584_v59 }
  0xf1   :  { %467 = vmatprep.mubr.bf16.mxu0 %v7299_v0  ;;  %987 = vmatprep.mubr.bf16.mxu1 %v7299_v0 }
  0xf8   :  { %5707 = vmatmul.mubr.msk.bf16.gmra.mrb[28].mxu0 %vm319_vm0, %v7539_v42  ;;  %5748 = vmatmul.mubr.msk.bf16.vlgmr.msra.gmra.mrb[28].mxu1 %vm319_vm0, %v7550_v45 }
  0xf9   :  { %510 = vmatprep.mubr.bf16.mxu0 %v7299_v0  ;;  %997 = vmatprep.mubr.bf16.mxu1 %v7299_v0 }
  0xfa   :  { %1240 = vmatpush1.bf16.msra.mxu1 %v5766_v62 }
  0xfb   :  { %1241 = vmatprep.subr.bf16.mxu1 %v5775_v63 }
  0xfe   :  { %1242 = vmatpush1.bf16.msra.mxu1 %v5774_v3 }
  0xff   :  { %1385 = vmatprep.subr.bf16.mxu1 %v5771_v4 }
 0x100   :  { %5708 = vmatmul.mubr.msk.bf16.vlgmr.msra.gmra.mrb[32].mxu0 %vm319_vm0, %v7511_v19  ;;  %5749 = vmatmul.mubr.msk.bf16.gmra.mrb[0].mxu1 %vm319_vm0, %v7561_v53 }
 0x101   :  { %552 = vmatpush1.bf16.msra.mxu0 %v7499_v10  ;;  %520 = vmatprep.mubr.bf16.mxu0 %v7299_v0  ;;  %v7622_v10 = vld [vmem:[%s8390_s0 + $0x40] sm:$0xff]  }
 0x102   :  { %1007 = vmatprep.mubr.bf16.mxu1 %v7299_v0  ;;  %553 = vmatprep.subr.bf16.mxu0 %v7501_v14  ;;  %v189_v14 = vld [vmem:[#allocation2 + $0x60] sm:$0xff] }
 0x103   :  { %v5728_v22 = vcombine.low %v185_v13, %v189_v14 }
 0x105   :  { %554 = vmatpush1.bf16.msra.mxu0 %v7505_v17  ;;  %v5720_v17 = vcombine.low %v177_v5, %v181_v6 }
 0x106   :  { %736 = vmatprep.subr.bf16.mxu0 %v5721_v7 }
 0x108   :  { %5709 = vmatmul.mubr.msk.bf16.gmra.mrb[36].mxu0 %vm319_vm0, %v7516_v21  ;;  %5750 = vmatmul.mubr.msk.bf16.gmra.mrb[4].mxu1 %vm319_vm0, %v7572_v58  ;;  %v5729_v21 = vcombine.high %v185_v13, %v189_v14 }
 0x109   :  { %530 = vmatprep.mubr.bf16.mxu0 %v7299_v0  ;;  %1017 = vmatprep.mubr.bf16.mxu1 %v7299_v0 }
 0x110   :  { %5710 = vmatmul.mubr.msk.bf16.gmra.mrb[40].mxu0 %vm319_vm0, %v7528_v41  ;;  %5751 = vmatmul.mubr.msk.bf16.gmra.mrb[8].mxu1 %vm319_vm0, %v7584_v59  ;;  %v1048_v41 = vld [vmem:[#allocation2 + $0x150] sm:$0xff] }
 0x111   :  { %540 = vmatprep.mubr.bf16.mxu0 %v7299_v0  ;;  %1271 = vmatprep.mubr.bf16.mxu1 %v7299_v0 }
 0x118   :  { %5711 = vmatmul.mubr.msk.bf16.gmra.mrb[44].mxu0 %vm319_vm0, %v7539_v42  ;;  %5784 = vmatmul.mubr.msk.bf16.vlgmr.msra.gmra.mrb[12].mxu1 %vm319_vm0, %v7622_v10  ;;  %v1052_v42 = vld [vmem:[#allocation2 + $0x170] sm:$0xff] }
 0x119   :  { %583 = vmatprep.mubr.bf16.mxu0 %v7299_v0  ;;  %1281 = vmatprep.mubr.bf16.mxu1 %v7299_v0  ;;  %v5777_v44 = vcombine.high %v1048_v41, %v1052_v42 }
 0x11a   :  { %1386 = vmatpush1.bf16.msra.mxu1 %v5770_v11 }
 0x11b   :  { %1387 = vmatprep.subr.bf16.mxu1 %v5779_v12 }
 0x11e   :  { %1388 = vmatpush1.bf16.msra.mxu1 %v5778_v15 }
 0x120   :  { %5712 = vmatmul.mubr.msk.bf16.vlgmr.msra.gmra.mrb[48].mxu0 %vm319_vm0, %v7511_v19  ;;  %5785 = vmatmul.mubr.msk.bf16.gmra.mrb[16].mxu1 %vm319_vm0, %v7633_v16  ;;  %v5724_v19 = vcombine.low %v179_v18, %v183_v20 }
 0x121   :  { %737 = vmatpush1.bf16.msra.mxu0 %v5720_v17  ;;  %768 = vmatprep.mubr.bf16.mxu0 %v7299_v0 }
 0x122   :  { %738 = vmatprep.subr.bf16.mxu0 %v5729_v21  ;;  %1291 = vmatprep.mubr.bf16.mxu1 %v7299_v0  ;;  %v1524_v21 = vlaneseq }
 0x124   :  { %v7719_v28 = vshrl.u32 %v1524_v21, 7 }
 0x125   :  { %739 = vmatpush1.bf16.msra.mxu0 %v5728_v22 }
 0x126   :  { %882 = vmatprep.subr.bf16.mxu0 %v5725_v23  ;;  %v1538_v34 = vsub.s32 3, %v7719_v28 }
 0x128   :  { %5736 = vmatmul.mubr.msk.bf16.vlgmr.msra.gmra.mrb[0].mxu0 %vm319_vm0, %v7550_v45  ;;  %5786 = vmatmul.mubr.msk.bf16.gmra.mrb[20].mxu1 %vm319_vm0, %v7644_v26 }
 0x129   :  { %883 = vmatpush1.bf16.msra.mxu0 %v5724_v19  ;;  %778 = vmatprep.mubr.bf16.mxu0 %v7299_v0 }
 0x12a   :  { %1301 = vmatprep.mubr.bf16.mxu1 %v7299_v0  ;;  %884 = vmatprep.subr.bf16.mxu0 %v5733_v29 }
 0x12d   :  { %885 = vmatpush1.bf16.msra.mxu0 %v5732_v30  ;;  %v1534_v30 = vsub.s32 2, %v7719_v28 }
 0x12e   :  { %1166 = vmatprep.subr.bf16.mxu0 %v5765_v31 }
 0x130   :  { %5737 = vmatmul.mubr.msk.bf16.gmra.mrb[4].mxu0 %vm319_vm0, %v7561_v53  ;;  %5787 = vmatmul.mubr.msk.bf16.gmra.mrb[24].mxu1 %vm319_vm0, %v6456_v32 }
 0x131   :  { %788 = vmatprep.mubr.bf16.mxu0 %v7299_v0  ;;  %1417 = vmatprep.mubr.bf16.mxu1 %v7299_v0 }
 0x138   :  { %5738 = vmatmul.mubr.msk.bf16.gmra.mrb[8].mxu0 %vm319_vm0, %v7572_v58  ;;  %5792 = vmatmul.mubr.msk.bf16.vlgmr.msra.gmra.mrb[28].mxu1 %vm319_vm0, %v7622_v10 }
 0x139   :  { %798 = vmatprep.mubr.bf16.mxu0 %v7299_v0  ;;  %1427 = vmatprep.mubr.bf16.mxu1 %v7299_v0 }
 0x140   :  { %5739 = vmatmul.mubr.msk.bf16.gmra.mrb[12].mxu0 %vm319_vm0, %v7584_v59  ;;  %5793 = vmatmul.mubr.msk.bf16.gmra.mrb[0].mxu1 %vm319_vm0, %v7633_v16 }
 0x141   :  { %914 = vmatprep.mubr.bf16.mxu0 %v7299_v0  ;;  %1437 = vmatprep.mubr.bf16.mxu1 %v7299_v0 }
 0x148   :  { %5744 = vmatmul.mubr.msk.bf16.vlgmr.msra.gmra.mrb[32].mxu0 %vm319_vm0, %v7550_v45  ;;  %5794 = vmatmul.mubr.msk.bf16.gmra.mrb[4].mxu1 %vm319_vm0, %v7644_v26  ;;  %v5776_v45 = vcombine.low %v1048_v41, %v1052_v42  ;;  %v7741_v41 = vrot.slane %v7724_v33, %v1538_v34 }
 0x149   :  { %1167 = vmatpush1.bf16.msra.mxu0 %v5764_v35  ;;  %924 = vmatprep.mubr.bf16.mxu0 %v7299_v0 }
 0x14a   :  { %1447 = vmatprep.mubr.bf16.mxu1 %v7299_v0  ;;  %1168 = vmatprep.subr.bf16.mxu0 %v5773_v38 }
 0x14d   :  { %1169 = vmatpush1.bf16.msra.mxu0 %v5772_v39 }
 0x14e   :  { %1312 = vmatprep.subr.bf16.mxu0 %v5769_v40  ;;  %v7736_v40 = vrot.slane %v7724_v33, %v1534_v30 }
 0x150   :  { %5745 = vmatmul.mubr.msk.bf16.gmra.mrb[36].mxu0 %vm319_vm0, %v7561_v53  ;;  %5795 = vmatmul.mubr.msk.bf16.gmra.mrb[8].mxu1 %vm319_vm0, %v6456_v32 }
 0x151   :  { %934 = vmatprep.mubr.bf16.mxu0 %v7299_v0  ;;  %1866 = vmatprep.mubr.bf16.mxu1 %v7299_v0 }
 0x158   :  { %5746 = vmatmul.mubr.msk.bf16.gmra.mrb[40].mxu0 %vm319_vm0, %v7572_v58 }
 0x159   :  { %944 = vmatprep.mubr.bf16.mxu0 %v7299_v0 }
 0x160   :  { %5747 = vmatmul.mubr.msk.bf16.gmra.mrb[44].mxu0 %vm319_vm0, %v7584_v59 }
 0x161   :  { %1198 = vmatprep.mubr.bf16.mxu0 %v7299_v0 }
 0x168   :  { %5780 = vmatmul.mubr.msk.bf16.vlgmr.msra.gmra.mrb[0].mxu0 %vm319_vm0, %v7622_v10 }
 0x169   :  { %1313 = vmatpush1.bf16.msra.mxu0 %v5768_v43  ;;  %1208 = vmatprep.mubr.bf16.mxu0 %v7299_v0 }
 0x16a   :  { %1314 = vmatprep.subr.bf16.mxu0 %v5777_v44 }
 0x16d   :  { %1315 = vmatpush1.bf16.msra.mxu0 %v5776_v45 }
 0x170   :  { %5781 = vmatmul.mubr.msk.bf16.gmra.mrb[4].mxu0 %vm319_vm0, %v7633_v16 }
 0x171   :  { %1218 = vmatprep.mubr.bf16.mxu0 %v7299_v0 }
 0x178   :  { %5782 = vmatmul.mubr.msk.bf16.gmra.mrb[8].mxu0 %vm319_vm0, %v7644_v26 }
 0x179   :  { %1228 = vmatprep.mubr.bf16.mxu0 %v7299_v0 }
 0x180   :  { %5783 = vmatmul.mubr.msk.bf16.gmra.mrb[12].mxu0 %vm319_vm0, %v6456_v32 }
 0x181   :  { %1344 = vmatprep.mubr.bf16.mxu0 %v7299_v0 }
 0x188   :  { %5788 = vmatmul.mubr.msk.bf16.vlgmr.msra.gmra.mrb[32].mxu0 %vm319_vm0, %v7622_v10 }
 0x189   :  { %1354 = vmatprep.mubr.bf16.mxu0 %v7299_v0 }
 0x190   :  { %5789 = vmatmul.mubr.msk.bf16.gmra.mrb[36].mxu0 %vm319_vm0, %v7633_v16 }
 0x191   :  { %1364 = vmatprep.mubr.bf16.mxu0 %v7299_v0 }
 0x198   :  { %5790 = vmatmul.mubr.msk.bf16.gmra.mrb[40].mxu0 %vm319_vm0, %v7644_v26 }
 0x199   :  { %1374 = vmatprep.mubr.bf16.mxu0 %v7299_v0 }
 0x1a0   :  { %5791 = vmatmul.mubr.msk.bf16.gmra.mrb[44].mxu0 %vm319_vm0, %v6456_v32 }
 0x1a1   :  { %1793 = vmatprep.mubr.bf16.mxu0 %v7299_v0 }
 0x1b3   :  { %v439_v46 = vpop.f32.mrb[16].mxu0 }
 0x1b4   :  { %v441_v47 = vpop.f32.mrb[17].mxu0 }
 0x1b5   :  { %v443_v48 = vpop.f32.mrb[18].mxu0 }
 0x1b6   :  { %v445_v49 = vpop.f32.mrb[19].mxu0 }
 0x1bb   :  { %v449_v50 = vpop.f32.mrb[20].mxu0 }
 0x1bc   :  { %v451_v51 = vpop.f32.mrb[21].mxu0 }
 0x1bd   :  { %v453_v52 = vpop.f32.mrb[22].mxu0 }
 0x1be   :  { %v455_v53 = vpop.f32.mrb[23].mxu0 }
 0x1c3   :  { %v459_v54 = vpop.f32.mrb[24].mxu0 }
 0x1c4   :  { %v461_v55 = vpop.f32.mrb[25].mxu0 }
 0x1c5   :  { %v463_v56 = vpop.f32.mrb[26].mxu0 }
 0x1c6   :  { %v465_v57 = vpop.f32.mrb[27].mxu0 }
 0x1cb   :  { %v469_v58 = vpop.f32.mrb[28].mxu0 }
 0x1cc   :  { %v471_v59 = vpop.f32.mrb[29].mxu0 }
 0x1cd   :  { %v473_v60 = vpop.f32.mrb[30].mxu0 }
 0x1ce   :  { %v475_v61 = vpop.f32.mrb[31].mxu0 }
 0x1eb   :  { %v1273_v62 = vpop.f32.mrb[12].mxu1 }
 0x1ec   :  { %v6226_v63 = vadd.f32 %v1273_v62, %v439_v46  ;;  %v1275_v1 = vpop.f32.mrb[13].mxu1 }
 0x1ed   :  { %v6227_v2 = vadd.f32 %v1275_v1, %v441_v47  ;;  %v1277_v3 = vpop.f32.mrb[14].mxu1 }
 0x1ee   :  { %v6228_v4 = vadd.f32 %v1277_v3, %v443_v48  ;;  %v1279_v5 = vpop.f32.mrb[15].mxu1  ;;  %v1546_v43 = vadd.f32 %v6226_v63, %v7736_v40 }
 0x1ef   :  { %v6229_v6 = vadd.f32 %v1279_v5, %v445_v49  ;;  %v1547_v46 = vadd.f32 %v6227_v2, %v7741_v41 }
 0x1f0   :  { %v1550_v49 = vadd.f32 %v6228_v4, %v7736_v40 }
 0x1f2   :  { %v1582_v62 = vmax.f32 %v1550_v49, 0.0 }
 0x1f3   :  { %v585_v7 = vpop.f32.mrb[48].mxu0  ;;  %v1283_v8 = vpop.f32.mrb[16].mxu1 }
 0x1f4   :  { %v587_v9 = vpop.f32.mrb[49].mxu0  ;;  %v6230_v10 = vadd.f32 %v1283_v8, %v449_v50  ;;  %v1285_v11 = vpop.f32.mrb[17].mxu1 }
 0x1f5   :  { %v589_v12 = vpop.f32.mrb[50].mxu0  ;;  %v6231_v13 = vadd.f32 %v1285_v11, %v451_v51  ;;  %v1287_v14 = vpop.f32.mrb[18].mxu1 }
 0x1f6   :  { %v591_v15 = vpop.f32.mrb[51].mxu0  ;;  %v6232_v16 = vadd.f32 %v1287_v14, %v453_v52  ;;  %v1289_v17 = vpop.f32.mrb[19].mxu1  ;;  %v1554_v63 = vadd.f32 %v6230_v10, %v7736_v40 }
 0x1f7   :  { %v6233_v18 = vadd.f32 %v1289_v17, %v455_v53  ;;  %v1551_v53 = vadd.f32 %v6229_v6, %v7741_v41  ;;  %v1555_v4 = vadd.f32 %v6231_v13, %v7741_v41 }
 0x1f8   :  { %v1558_v8 = vadd.f32 %v6232_v16, %v7736_v40 }
 0x1f9   :  { %v1583_v3 = vmax.f32 %v1551_v53, 0.0  ;;  %v1559_v14 = vadd.f32 %v6233_v18, %v7741_v41 }
 0x1fb   :  { %v1293_v20 = vpop.f32.mrb[20].mxu1 }
 0x1fc   :  { %v7711_v22 = vadd.f32 %v1293_v20, %v459_v54  ;;  %v1295_v23 = vpop.f32.mrb[21].mxu1  ;;  %v1586_v20 = vmax.f32 %v1554_v63, 0.0 }
 0x1fd   :  { %v7713_v24 = vadd.f32 %v1295_v23, %v461_v55  ;;  %v1297_v25 = vpop.f32.mrb[22].mxu1 }
 0x1fe   :  { %v7715_v26 = vadd.f32 %v1297_v25, %v463_v56  ;;  %v1299_v19 = vpop.f32.mrb[23].mxu1  ;;  %v1578_v56 = vmax.f32 %v1546_v43, 0.0  ;;  %v1587_v25 = vmax.f32 %v1555_v4, 0.0 }
 0x1ff   :  { %v7717_v27 = vadd.f32 %v1299_v19, %v465_v57 }
 0x201   :  { %v1567_v53 = vadd.f32 %v7717_v27, %v7741_v41 }
 0x203   :  { %v1303_v29 = vpop.f32.mrb[24].mxu1 }
 0x204   :  { %v7722_v31 = vadd.f32 %v1303_v29, %v469_v58  ;;  %v1305_v32 = vpop.f32.mrb[25].mxu1 }
 0x205   :  { %v7727_v35 = vadd.f32 %v1305_v32, %v471_v59  ;;  %v1307_v36 = vpop.f32.mrb[26].mxu1  ;;  %v1579_v59 = vmax.f32 %v1547_v46, 0.0  ;;  %v1590_v32 = vmax.f32 %v1558_v8, 0.0 }
 0x206   :  { %v7729_v37 = vadd.f32 %v1307_v36, %v473_v60  ;;  %v1309_v38 = vpop.f32.mrb[27].mxu1 }
 0x207   :  { %v7731_v39 = vadd.f32 %v1309_v38, %v475_v61  ;;  %v1571_v8 = vadd.f32 %v7727_v35, %v7741_v41 }
 0x20b   :  { %v1419_v42 = vpop.f32.mrb[28].mxu1 }
 0x20c   :  { %v6242_v44 = vadd.f32 %v1419_v42, %v585_v7  ;;  %v1421_v45 = vpop.f32.mrb[29].mxu1  ;;  %v1591_v42 = vmax.f32 %v1559_v14, 0.0  ;;  %v1574_v14 = vadd.f32 %v7729_v37, %v7736_v40 }
 0x20d   :  { %v6243_v47 = vadd.f32 %v1421_v45, %v587_v9  ;;  %v1423_v48 = vpop.f32.mrb[30].mxu1  ;;  %v1562_v45 = vadd.f32 %v7711_v22, %v7736_v40 }
 0x20e   :  { %v1610_v50 = vadd.f32 %v6242_v44, %v7736_v40  ;;  %v6244_v51 = vadd.f32 %v1423_v48, %v589_v12  ;;  %v1425_v52 = vpop.f32.mrb[31].mxu1 }
 0x20f   :  { %v1611_v54 = vadd.f32 %v6243_v47, %v7741_v41  ;;  %v6245_v55 = vadd.f32 %v1425_v52, %v591_v15  ;;  %v1563_v47 = vadd.f32 %v7713_v24, %v7741_v41 }
 0x210   :  { %v1642_v57 = vmax.f32 %v1610_v50, 0.0  ;;  %v1614_v58 = vadd.f32 %v6244_v51, %v7736_v40  ;;  %v1566_v50 = vadd.f32 %v7715_v26, %v7736_v40 }
 0x211   :  { %v1643_v60 = vmax.f32 %v1611_v54, 0.0  ;;  %v1615_v61 = vadd.f32 %v6245_v55, %v7741_v41 }
 0x212   :  { %v7752_v1 = vmax.f32 %v1578_v56, %v1642_v57  ;;  %v1646_v2 = vmax.f32 %v1614_v58, 0.0  ;;  %v1594_v56 = vmax.f32 %v1562_v45, 0.0  ;;  %v1598_v27 = vmax.f32 %v1566_v50, 0.0  ;;  %v7831_v50 = vld [vmem:[#allocation4] sm:$0xff]  }
 0x213   :  { %v7755_v5 = vmax.f32 %v1579_v59, %v1643_v60  ;;  %v1647_v6 = vmax.f32 %v1615_v61, 0.0  ;;  %v1429_v7 = vpop.f32.mrb[0].mxu1  ;;  %v1595_v59 = vmax.f32 %v1563_v47, 0.0 }
 0x214   :  { %v7758_v9 = vmax.f32 %v1582_v62, %v1646_v2  ;;  %v1618_v11 = vadd.f32 %v7736_v40, %v1429_v7  ;;  %v1431_v12 = vpop.f32.mrb[1].mxu1  ;;  %v1599_v2 = vmax.f32 %v1567_v53, 0.0 }
 0x215   :  { %v7762_v10 = vmax.f32 %v1583_v3, %v1647_v6  ;;  %v1619_v15 = vadd.f32 %v7741_v41, %v1431_v12  ;;  %v1433_v17 = vpop.f32.mrb[2].mxu1  ;;  %v1570_v6 = vadd.f32 %v7722_v31, %v7736_v40 }
 0x216   :  { %v1650_v13 = vmax.f32 %v1618_v11, 0.0  ;;  %v1622_v21 = vadd.f32 %v7736_v40, %v1433_v17  ;;  %v1435_v23 = vpop.f32.mrb[3].mxu1  ;;  %v1714_v18 = vpack.c.bf16 %v7758_v9, %v7752_v1 }
 0x217   :  { %v1651_v19 = vmax.f32 %v1619_v15, 0.0  ;;  %v1623_v16 = vadd.f32 %v7741_v41, %v1435_v23  ;;  %v1715_v29 = vpack.c.bf16 %v7762_v10, %v7755_v5  ;;  %v1602_v23 = vmax.f32 %v1570_v6, 0.0 }
 0x218   :  { %v7771_v36 = vmax.f32 %v1586_v20, %v1650_v13  ;;  %v1654_v38 = vmax.f32 %v1622_v21, 0.0  ;;  %v1575_v20 = vadd.f32 %v7731_v39, %v7741_v41  ;;  %v1606_v39 = vmax.f32 %v1574_v14, 0.0 }
 0x219   :  { %v7773_v43 = vmax.f32 %v1587_v25, %v1651_v19  ;;  %v1655_v44 = vmax.f32 %v1623_v16, 0.0  ;;  %1834 = vmatprep.subr.bf16.mxu1 %v1715_v29  ;;  %v1603_v16 = vmax.f32 %v1571_v8, 0.0 }
 0x21a   :  { %v7777_v46 = vmax.f32 %v1590_v32, %v1654_v38  ;;  %1835 = vmatpush1.bf16.msra.mxu1 %v1714_v18 }
 0x21b   :  { %v7781_v48 = vmax.f32 %v1591_v42, %v1655_v44  ;;  %v1439_v49 = vpop.f32.mrb[4].mxu1  ;;  %v1607_v42 = vmax.f32 %v1575_v20, 0.0 }
 0x21c   :  { %v1626_v51 = vadd.f32 %v7736_v40, %v1439_v49  ;;  %v1441_v52 = vpop.f32.mrb[5].mxu1  ;;  %v1718_v24 = vpack.c.bf16 %v7777_v46, %v7771_v36 }
 0x21d   :  { %v1627_v22 = vadd.f32 %v7741_v41, %v1441_v52  ;;  %v1443_v54 = vpop.f32.mrb[6].mxu1  ;;  %v1719_v55 = vpack.c.bf16 %v7781_v48, %v7773_v43 }
 0x21e   :  { %v1658_v57 = vmax.f32 %v1626_v51, 0.0  ;;  %v1630_v58 = vadd.f32 %v7736_v40, %v1443_v54  ;;  %v1445_v26 = vpop.f32.mrb[7].mxu1  ;;  %v7836_v51 = vld [vmem:[#allocation4 + $0x8] sm:$0xff]  }
 0x21f   :  { %v1659_v60 = vmax.f32 %v1627_v22, 0.0  ;;  %v1631_v61 = vadd.f32 %v7741_v41, %v1445_v26  ;;  %1836 = vmatprep.subr.bf16.mxu1 %v1719_v55  ;;  %v7841_v55 = vld [vmem:[#allocation4 + $0x10] sm:$0xff]   ;;  %v7846_v26 = vld [vmem:[#allocation4 + $0x18] sm:$0xff]  }
 0x220   :  { %v7795_v62 = vmax.f32 %v1594_v56, %v1658_v57  ;;  %v1662_v63 = vmax.f32 %v1630_v58, 0.0  ;;  %1837 = vmatpush1.bf16.msra.mxu1 %v1718_v24 }
 0x221   :  { %v7797_v3 = vmax.f32 %v1595_v59, %v1659_v60  ;;  %v1663_v4 = vmax.f32 %v1631_v61, 0.0 }
 0x222   :  { %v7801_v7 = vmax.f32 %v1598_v27, %v1662_v63  ;;  %v7860_v63 = vsub.s32 0, %v7719_v28 }
 0x223   :  { %v7805_v11 = vmax.f32 %v1599_v2, %v1663_v4  ;;  %v1449_v12 = vpop.f32.mrb[8].mxu1  ;;  %v7863_v2 = vsub.s32 1, %v7719_v28 }
 0x224   :  { %v1634_v15 = vadd.f32 %v7736_v40, %v1449_v12  ;;  %v1451_v17 = vpop.f32.mrb[9].mxu1  ;;  %v1722_v35 = vpack.c.bf16 %v7801_v7, %v7795_v62  ;;  %v7873_v12 = vrot.slane %v7724_v33, %v7860_v63 }
 0x225   :  { %v1635_v13 = vadd.f32 %v7741_v41, %v1451_v17  ;;  %v1453_v31 = vpop.f32.mrb[10].mxu1  ;;  %v1723_v21 = vpack.c.bf16 %v7805_v11, %v7797_v3 }
 0x226   :  { %v1666_v25 = vmax.f32 %v1634_v15, 0.0  ;;  %v1638_v19 = vadd.f32 %v7736_v40, %v1453_v31  ;;  %v1455_v37 = vpop.f32.mrb[11].mxu1  ;;  %v7879_v15 = vrot.slane %v7724_v33, %v7863_v2 }
 0x227   :  { %v1667_v29 = vmax.f32 %v1635_v13, 0.0  ;;  %v1639_v32 = vadd.f32 %v7741_v41, %v1455_v37  ;;  %1838 = vmatprep.subr.bf16.mxu1 %v1723_v21 }
 0x228   :  { %v7819_v18 = vmax.f32 %v1602_v23, %v1666_v25  ;;  %v1670_v38 = vmax.f32 %v1638_v19, 0.0  ;;  %1839 = vmatpush1.bf16.msra.mxu1 %v1722_v35 }
 0x229   :  { %v7821_v44 = vmax.f32 %v1603_v16, %v1667_v29  ;;  %v1671_v45 = vmax.f32 %v1639_v32, 0.0 }
 0x22a   :  { %v7823_v47 = vmax.f32 %v1606_v39, %v1670_v38 }
 0x22b   :  { %v7825_v49 = vmax.f32 %v1607_v42, %v1671_v45 }
 0x22c   :  { %v1726_v41 = vpack.c.bf16 %v7823_v47, %v7819_v18 }
 0x22d   :  { %v1727_v40 = vpack.c.bf16 %v7825_v49, %v7821_v44 }
 0x22f   :  { %1840 = vmatprep.subr.bf16.mxu1 %v1727_v40 }
 0x230   :  { %1841 = vmatpush1.bf16.msra.mxu1 %v1726_v41 }
 0x233   :  { %5804 = vmatmul.mubr.msk.bf16.vlgmr.msra.gmra.mrb[32].mxu1 %vm1748_vm1, %v7831_v50 }
 0x234   :  { %1876 = vmatprep.mubr.bf16.mxu1 %v7299_v0 }
 0x23b   :  { %v1200_v52 = vpop.f32.mrb[0].mxu0  ;;  %5805 = vmatmul.mubr.msk.bf16.gmra.mrb[36].mxu1 %vm1748_vm1, %v7836_v51 }
 0x23c   :  { %v1202_v53 = vpop.f32.mrb[1].mxu0  ;;  %1886 = vmatprep.mubr.bf16.mxu1 %v7299_v0  ;;  %v1544_v17 = vadd.f32 %v7873_v12, %v1200_v52 }
 0x23d   :  { %v1204_v22 = vpop.f32.mrb[2].mxu0  ;;  %v1545_v20 = vadd.f32 %v7879_v15, %v1202_v53 }
 0x23e   :  { %v1206_v54 = vpop.f32.mrb[3].mxu0  ;;  %v1548_v31 = vadd.f32 %v7873_v12, %v1204_v22  ;;  %v1576_v37 = vmax.f32 %v1544_v17, 0.0 }
 0x23f   :  { %v1549_v35 = vadd.f32 %v7879_v15, %v1206_v54  ;;  %v1577_v32 = vmax.f32 %v1545_v20, 0.0 }
 0x240   :  { %v1580_v42 = vmax.f32 %v1548_v31, 0.0 }
 0x241   :  { %v1581_v41 = vmax.f32 %v1549_v35, 0.0 }
 0x243   :  { %v1210_v56 = vpop.f32.mrb[4].mxu0  ;;  %5806 = vmatmul.mubr.msk.bf16.gmra.mrb[40].mxu1 %vm1748_vm1, %v7841_v55 }
 0x244   :  { %v1212_v24 = vpop.f32.mrb[5].mxu0  ;;  %1896 = vmatprep.mubr.bf16.mxu1 %v7299_v0  ;;  %v1552_v22 = vadd.f32 %v7873_v12, %v1210_v56 }
 0x245   :  { %v1214_v57 = vpop.f32.mrb[6].mxu0  ;;  %v1553_v17 = vadd.f32 %v7879_v15, %v1212_v24 }
 0x246   :  { %v1216_v58 = vpop.f32.mrb[7].mxu0 }
 0x24b   :  { %v7848_v59 = vpop.f32.mrb[8].mxu0  ;;  %5807 = vmatmul.mubr.msk.bf16.gmra.mrb[44].mxu1 %vm1748_vm1, %v7846_v26 }
 0x24c   :  { %v7852_v60 = vpop.f32.mrb[9].mxu0  ;;  %2060 = vmatprep.mubr.bf16.mxu1 %v7299_v0 }
 0x24d   :  { %v7854_v61 = vpop.f32.mrb[10].mxu0 }
 0x24e   :  { %v7857_v27 = vpop.f32.mrb[11].mxu0 }
 0x253   :  { %v7865_v4 = vpop.f32.mrb[12].mxu0 }
 0x254   :  { %v7867_v6 = vpop.f32.mrb[13].mxu0 }
 0x255   :  { %v7869_v8 = vpop.f32.mrb[14].mxu0 }
 0x256   :  { %v7875_v14 = vpop.f32.mrb[15].mxu0 }
 0x25b   :  { %v1346_v13 = vpop.f32.mrb[32].mxu0 }
 0x25c   :  { %v1608_v21 = vadd.f32 %v7873_v12, %v1346_v13  ;;  %v1348_v23 = vpop.f32.mrb[33].mxu0 }
 0x25d   :  { %v1609_v25 = vadd.f32 %v7879_v15, %v1348_v23  ;;  %v1350_v19 = vpop.f32.mrb[34].mxu0 }
 0x25e   :  { %v1640_v16 = vmax.f32 %v1608_v21, 0.0  ;;  %v1612_v33 = vadd.f32 %v7873_v12, %v1350_v19  ;;  %v1352_v29 = vpop.f32.mrb[35].mxu0  ;;  %v1556_v21 = vadd.f32 %v7873_v12, %v1214_v57  ;;  %v1585_v57 = vmax.f32 %v1553_v17, 0.0 }
 0x25f   :  { %v1641_v39 = vmax.f32 %v1609_v25, 0.0  ;;  %v1613_v38 = vadd.f32 %v7879_v15, %v1352_v29  ;;  %v1557_v25 = vadd.f32 %v7879_v15, %v1216_v58  ;;  %v1561_v17 = vadd.f32 %v7879_v15, %v7852_v60 }
 0x260   :  { %v7889_v45 = vmax.f32 %v1576_v37, %v1640_v16  ;;  %v1644_v40 = vmax.f32 %v1612_v33, 0.0  ;;  %v1584_v37 = vmax.f32 %v1552_v22, 0.0  ;;  %v1588_v58 = vmax.f32 %v1556_v21, 0.0 }
 0x261   :  { %v7891_v52 = vmax.f32 %v1577_v32, %v1641_v39  ;;  %v1645_v53 = vmax.f32 %v1613_v38, 0.0  ;;  %v1560_v22 = vadd.f32 %v7873_v12, %v7848_v59  ;;  %v1564_v21 = vadd.f32 %v7873_v12, %v7854_v61 }
 0x262   :  { %v7894_v54 = vmax.f32 %v1580_v42, %v1644_v40  ;;  %v1589_v40 = vmax.f32 %v1557_v25, 0.0 }
 0x263   :  { %v7897_v13 = vmax.f32 %v1581_v41, %v1645_v53  ;;  %v1356_v20 = vpop.f32.mrb[36].mxu0 }
 0x264   :  { %v1616_v31 = vadd.f32 %v7873_v12, %v1356_v20  ;;  %v1358_v23 = vpop.f32.mrb[37].mxu0  ;;  %v1712_v24 = vpack.c.bf16 %v7894_v54, %v7889_v45 }
 0x265   :  { %v1617_v35 = vadd.f32 %v7879_v15, %v1358_v23  ;;  %v1360_v19 = vpop.f32.mrb[38].mxu0  ;;  %v1713_v56 = vpack.c.bf16 %v7897_v13, %v7891_v52 }
 0x266   :  { %v1648_v16 = vmax.f32 %v1616_v31, 0.0  ;;  %v1620_v33 = vadd.f32 %v7873_v12, %v1360_v19  ;;  %v1362_v29 = vpop.f32.mrb[39].mxu0  ;;  %v1565_v19 = vadd.f32 %v7879_v15, %v7857_v27  ;;  %v1596_v27 = vmax.f32 %v1564_v21, 0.0 }
 0x267   :  { %v1649_v32 = vmax.f32 %v1617_v35, 0.0  ;;  %v1621_v39 = vadd.f32 %v7879_v15, %v1362_v29  ;;  %1761 = vmatprep.subr.bf16.mxu0 %v1713_v56  ;;  %v1593_v29 = vmax.f32 %v1561_v17, 0.0  ;;  %v1569_v17 = vadd.f32 %v7879_v15, %v7867_v6 }
 0x268   :  { %v7909_v38 = vmax.f32 %v1584_v37, %v1648_v16  ;;  %v1652_v42 = vmax.f32 %v1620_v33, 0.0  ;;  %1762 = vmatpush1.bf16.msra.mxu0 %v1712_v24  ;;  %v1592_v24 = vmax.f32 %v1560_v22, 0.0  ;;  %v1568_v22 = vadd.f32 %v7873_v12, %v7865_v4 }
 0x269   :  { %v7911_v41 = vmax.f32 %v1585_v57, %v1649_v32  ;;  %v1653_v53 = vmax.f32 %v1621_v39, 0.0  ;;  %v1572_v21 = vadd.f32 %v7873_v12, %v7869_v8 }
 0x26a   :  { %v7915_v20 = vmax.f32 %v1588_v58, %v1652_v42  ;;  %v1597_v42 = vmax.f32 %v1565_v19, 0.0 }
 0x26b   :  { %v7919_v31 = vmax.f32 %v1589_v40, %v1653_v53  ;;  %v1366_v23 = vpop.f32.mrb[40].mxu0 }
 0x26c   :  { %v1624_v35 = vadd.f32 %v7873_v12, %v1366_v23  ;;  %v1368_v25 = vpop.f32.mrb[41].mxu0  ;;  %v1716_v60 = vpack.c.bf16 %v7915_v20, %v7909_v38 }
 0x26d   :  { %v1625_v56 = vadd.f32 %v7879_v15, %v1368_v25  ;;  %v1370_v59 = vpop.f32.mrb[42].mxu0  ;;  %v1717_v37 = vpack.c.bf16 %v7919_v31, %v7911_v41 }
 0x26e   :  { %v1656_v16 = vmax.f32 %v1624_v35, 0.0  ;;  %v1628_v33 = vadd.f32 %v7873_v12, %v1370_v59  ;;  %v1372_v61 = vpop.f32.mrb[43].mxu0  ;;  %v1573_v59 = vadd.f32 %v7879_v15, %v7875_v14  ;;  %v1604_v14 = vmax.f32 %v1572_v21, 0.0 }
 0x26f   :  { %v1657_v57 = vmax.f32 %v1625_v56, 0.0  ;;  %v1629_v32 = vadd.f32 %v7879_v15, %v1372_v61  ;;  %1763 = vmatprep.subr.bf16.mxu0 %v1717_v37  ;;  %v1601_v61 = vmax.f32 %v1569_v17, 0.0 }
 0x270   :  { %v7933_v39 = vmax.f32 %v1592_v24, %v1656_v16  ;;  %v1660_v58 = vmax.f32 %v1628_v33, 0.0  ;;  %1764 = vmatpush1.bf16.msra.mxu0 %v1716_v60  ;;  %v1600_v60 = vmax.f32 %v1568_v22, 0.0 }
 0x271   :  { %v7935_v40 = vmax.f32 %v1593_v29, %v1657_v57  ;;  %v1661_v53 = vmax.f32 %v1629_v32, 0.0 }
 0x272   :  { %v7939_v23 = vmax.f32 %v1596_v27, %v1660_v58  ;;  %v1605_v58 = vmax.f32 %v1573_v59, 0.0 }
 0x273   :  { %v7943_v35 = vmax.f32 %v1597_v42, %v1661_v53  ;;  %v1376_v25 = vpop.f32.mrb[44].mxu0 }
 0x274   :  { %v1632_v56 = vadd.f32 %v7873_v12, %v1376_v25  ;;  %v1378_v19 = vpop.f32.mrb[45].mxu0  ;;  %v1720_v6 = vpack.c.bf16 %v7939_v23, %v7933_v39 }
 0x275   :  { %v1633_v37 = vadd.f32 %v7879_v15, %v1378_v19  ;;  %v1380_v4 = vpop.f32.mrb[46].mxu0  ;;  %v1721_v24 = vpack.c.bf16 %v7943_v35, %v7935_v40 }
 0x276   :  { %v1664_v16 = vmax.f32 %v1632_v56, 0.0  ;;  %v1636_v33 = vadd.f32 %v7873_v12, %v1380_v4  ;;  %v1382_v8 = vpop.f32.mrb[47].mxu0 }
 0x277   :  { %v1665_v29 = vmax.f32 %v1633_v37, 0.0  ;;  %v1637_v57 = vadd.f32 %v7879_v15, %v1382_v8  ;;  %1765 = vmatprep.subr.bf16.mxu0 %v1721_v24 }
 0x278   :  { %v7957_v32 = vmax.f32 %v1600_v60, %v1664_v16  ;;  %v1668_v27 = vmax.f32 %v1636_v33, 0.0  ;;  %1766 = vmatpush1.bf16.msra.mxu0 %v1720_v6 }
 0x279   :  { %v7959_v42 = vmax.f32 %v1601_v61, %v1665_v29  ;;  %v1669_v53 = vmax.f32 %v1637_v57, 0.0 }
 0x27a   :  { %v7961_v22 = vmax.f32 %v1604_v14, %v1668_v27 }
 0x27b   :  { %v7963_v25 = vmax.f32 %v1605_v58, %v1669_v53 }
 0x27c   :  { %v1724_v15 = vpack.c.bf16 %v7961_v22, %v7957_v32 }
 0x27d   :  { %v1725_v12 = vpack.c.bf16 %v7963_v25, %v7959_v42 }
 0x27f   :  { %1767 = vmatprep.subr.bf16.mxu0 %v1725_v12 }
 0x280   :  { %1768 = vmatpush1.bf16.msra.mxu0 %v1724_v15 }
 0x283   :  { %5800 = vmatmul.mubr.msk.bf16.vlgmr.msra.gmra.mrb[52].mxu0 %vm1748_vm1, %v7831_v50 }
 0x284   :  { %1803 = vmatprep.mubr.bf16.mxu0 %v7299_v0 }
 0x28b   :  { %5801 = vmatmul.mubr.msk.bf16.gmra.mrb[56].mxu0 %vm1748_vm1, %v7836_v51 }
 0x28c   :  { %1813 = vmatprep.mubr.bf16.mxu0 %v7299_v0 }
 0x293   :  { %5802 = vmatmul.mubr.msk.bf16.gmra.mrb[60].mxu0 %vm1748_vm1, %v7841_v55 }
 0x294   :  { %1823 = vmatprep.mubr.bf16.mxu0 %v7299_v0 }
 0x29b   :  { %5803 = vmatmul.mubr.msk.bf16.gmra.mrb[64].mxu0 %vm1748_vm1, %v7846_v26 }
 0x29c   :  { %2007 = vmatprep.mubr.bf16.mxu0 %v7299_v0 }
 0x306   :  { %v1868_v17 = vpop.f32.mrb[32].mxu1 }
 0x307   :  { %v1870_v21 = vpop.f32.mrb[33].mxu1  ;;  %v1909_v56 = vmax.f32 %v7752_v1, %v1868_v17 }
 0x308   :  { %v1872_v50 = vpop.f32.mrb[34].mxu1  ;;  %v1910_v59 = vmax.f32 %v7755_v5, %v1870_v21 }
 0x309   :  { %v1913_v19 = vmax.f32 %v7758_v9, %v1872_v50  ;;  %v1874_v51 = vpop.f32.mrb[35].mxu1  ;;  %v8020_v50 = vld [vmem:[#allocation6] sm:$0xff]  }
 0x30a   :  { %v1914_v37 = vmax.f32 %v7762_v10, %v1874_v51 }
 0x30b   :  { %v7985_v55 = vpack.c.bf16 %v1913_v19, %v1909_v56 }
 0x30c   :  { %v7987_v4 = vpack.c.bf16 %v1914_v37, %v1910_v59 }
 0x30e   :  { %v1878_v24 = vpop.f32.mrb[36].mxu1  ;;  %2028 = vmatprep.subr.bf16.mxu1 %v7987_v4 }
 0x30f   :  { %v1880_v26 = vpop.f32.mrb[37].mxu1  ;;  %2029 = vmatpush1.bf16.msra.mxu1 %v7985_v55  ;;  %v1917_v1 = vmax.f32 %v7771_v36, %v1878_v24 }
 0x310   :  { %v1882_v60 = vpop.f32.mrb[38].mxu1  ;;  %v1918_v5 = vmax.f32 %v7773_v43, %v1880_v26 }
 0x311   :  { %v1921_v9 = vmax.f32 %v7777_v46, %v1882_v60  ;;  %v1884_v6 = vpop.f32.mrb[39].mxu1 }
 0x312   :  { %v1922_v10 = vmax.f32 %v7781_v48, %v1884_v6 }
 0x313   :  { %v7995_v16 = vpack.c.bf16 %v1921_v9, %v1917_v1 }
 0x314   :  { %v7997_v33 = vpack.c.bf16 %v1922_v10, %v1918_v5 }
 0x316   :  { %v1888_v8 = vpop.f32.mrb[40].mxu1  ;;  %2030 = vmatprep.subr.bf16.mxu1 %v7997_v33 }
 0x317   :  { %v1890_v61 = vpop.f32.mrb[41].mxu1  ;;  %2031 = vmatpush1.bf16.msra.mxu1 %v7995_v16  ;;  %v1925_v36 = vmax.f32 %v7795_v62, %v1888_v8 }
 0x318   :  { %v1892_v29 = vpop.f32.mrb[42].mxu1  ;;  %v1926_v43 = vmax.f32 %v7797_v3, %v1890_v61 }
 0x319   :  { %v1929_v46 = vmax.f32 %v7801_v7, %v1892_v29  ;;  %v1894_v57 = vpop.f32.mrb[43].mxu1 }
 0x31a   :  { %v1930_v48 = vmax.f32 %v7805_v11, %v1894_v57 }
 0x31b   :  { %v8005_v14 = vpack.c.bf16 %v1929_v46, %v1925_v36 }
 0x31c   :  { %v8007_v27 = vpack.c.bf16 %v1930_v48, %v1926_v43 }
 0x31e   :  { %v1898_v58 = vpop.f32.mrb[44].mxu1  ;;  %2032 = vmatprep.subr.bf16.mxu1 %v8007_v27 }
 0x31f   :  { %v1900_v53 = vpop.f32.mrb[45].mxu1  ;;  %2033 = vmatpush1.bf16.msra.mxu1 %v8005_v14  ;;  %v1933_v62 = vmax.f32 %v7819_v18, %v1898_v58  ;;  %v8029_v18 = vld [vmem:[#allocation6 + $0x8] sm:$0xff]  }
 0x320   :  { %v1902_v12 = vpop.f32.mrb[46].mxu1  ;;  %v1934_v3 = vmax.f32 %v7821_v44, %v1900_v53  ;;  %v8038_v44 = vld [vmem:[#allocation6 + $0x10] sm:$0xff]  }
 0x321   :  { %v1937_v7 = vmax.f32 %v7823_v47, %v1902_v12  ;;  %v1904_v15 = vpop.f32.mrb[47].mxu1  ;;  %v8044_v47 = vld [vmem:[#allocation6 + $0x18] sm:$0xff]  }
 0x322   :  { %v1938_v11 = vmax.f32 %v7825_v49, %v1904_v15 }
 0x323   :  { %v8015_v17 = vpack.c.bf16 %v1937_v7, %v1933_v62 }
 0x324   :  { %v8017_v21 = vpack.c.bf16 %v1938_v11, %v1934_v3  ;;  %v8065_v3 = vld [vmem:[#allocation6 + $0x20] sm:$0xff]  }
 0x325   :  { %v6483_v11 = vld [vmem:[#allocation7 + $0x254] ss:$8 sps:$4 sm:$0xff]  }
 0x326   :  { %2034 = vmatprep.subr.bf16.mxu1 %v8017_v21 }
 0x327   :  { %2035 = vmatpush1.bf16.msra.mxu1 %v8015_v17 }
 0x328   :  { %2227 = vmatprep.subr.bf16.mxu1 %v7987_v4 }
 0x32a   :  { %5812 = vmatmul.mubr.msk.bf16.vlgmr.msra.gmra.mrb[48].mxu1 %vm1748_vm1, %v8020_v50 }
 0x32b   :  { %2228 = vmatpush1.bf16.msra.mxu1 %v7985_v55  ;;  %2070 = vmatprep.mubr.bf16.mxu1 %v7299_v0 }
 0x32c   :  { %2229 = vmatprep.subr.bf16.mxu1 %v7997_v33 }
 0x32f   :  { %2230 = vmatpush1.bf16.msra.mxu1 %v7995_v16 }
 0x330   :  { %2231 = vmatprep.subr.bf16.mxu1 %v8007_v27 }
 0x332   :  { %5813 = vmatmul.mubr.msk.bf16.gmra.mrb[52].mxu1 %vm1748_vm1, %v8029_v18 }
 0x333   :  { %2232 = vmatpush1.bf16.msra.mxu1 %v8005_v14  ;;  %2259 = vmatprep.mubr.bf16.mxu1 %v7299_v0 }
 0x334   :  { %2233 = vmatprep.subr.bf16.mxu1 %v8017_v21 }
 0x337   :  { %2234 = vmatpush1.bf16.msra.mxu1 %v8015_v17 }
 0x33a   :  { %5818 = vmatmul.mubr.msk.bf16.vlgmr.msra.gmra.mrb[56].mxu1 %vm1748_vm1, %v8038_v44 }
 0x33b   :  { %2269 = vmatprep.mubr.bf16.mxu1 %v7299_v0 }
 0x342   :  { %5819 = vmatmul.mubr.msk.bf16.gmra.mrb[60].mxu1 %vm1748_vm1, %v8044_v47 }
 0x343   :  { %3258 = vmatprep.mubr.bf16.mxu1 %v7299_v0 }
 0x356   :  { %v1795_v49 = vpop.f32.mrb[52].mxu0 }
 0x357   :  { %v1797_v56 = vpop.f32.mrb[53].mxu0  ;;  %v1907_v51 = vmax.f32 %v7889_v45, %v1795_v49  ;;  %v6490_v49 = vld [vmem:[#allocation7 + $0x280] ss:$8 sps:$4 sm:$0xff]  }
 0x358   :  { %v1799_v19 = vpop.f32.mrb[54].mxu0  ;;  %v1908_v24 = vmax.f32 %v7891_v52, %v1797_v56  ;;  %v6495_v56 = vld [vmem:[#allocation7 + $0x294] ss:$8 sps:$4 sm:$0xff]  }
 0x359   :  { %v1911_v59 = vmax.f32 %v7894_v54, %v1799_v19  ;;  %v1801_v37 = vpop.f32.mrb[55].mxu0  ;;  %v6493_v19 = vld [vmem:[#allocation7 + $0x290] ss:$8 sps:$4 sm:$0xff]  }
 0x35a   :  { %v1912_v26 = vmax.f32 %v7897_v13, %v1801_v37  ;;  %v6501_v37 = vld [vmem:[#allocation7 + $0x2b4] ss:$8 sps:$4 sm:$0xff]  }
 0x35b   :  { %v1939_v60 = vpack.c.bf16 %v1911_v59, %v1907_v51  ;;  %v6498_v51 = vld [vmem:[#allocation7 + $0x2a4] ss:$8 sps:$4 sm:$0xff]   ;;  %v6496_v59 = vld [vmem:[#allocation7 + $0x2a0] ss:$8 sps:$4 sm:$0xff]  }
 0x35c   :  { %v1940_v1 = vpack.c.bf16 %v1912_v26, %v1908_v24  ;;  %v6499_v24 = vld [vmem:[#allocation7 + $0x2b0] ss:$8 sps:$4 sm:$0xff]   ;;  %v6502_v26 = vld [vmem:[#allocation7 + $0x2c0] ss:$8 sps:$4 sm:$0xff]  }
 0x35e   :  { %v1805_v9 = vpop.f32.mrb[56].mxu0  ;;  %1975 = vmatprep.subr.bf16.mxu0 %v1940_v1  ;;  %3226 = vmatprep.subr.bf16.mxu1 %v1940_v1 }
 0x35f   :  { %v1807_v6 = vpop.f32.mrb[57].mxu0  ;;  %1976 = vmatpush1.bf16.msra.mxu0 %v1939_v60  ;;  %3227 = vmatpush1.bf16.msra.mxu1 %v1939_v60  ;;  %v1915_v10 = vmax.f32 %v7909_v38, %v1805_v9  ;;  %v6505_v9 = vld [vmem:[#allocation7 + $0x2d0] ss:$8 sps:$4 sm:$0xff]  }
 0x360   :  { %v1809_v5 = vpop.f32.mrb[58].mxu0  ;;  %v1916_v54 = vmax.f32 %v7911_v41, %v1807_v6  ;;  %v6508_v6 = vld [vmem:[#allocation7 + $0x2e0] ss:$8 sps:$4 sm:$0xff]  }
 0x361   :  { %v1919_v45 = vmax.f32 %v7915_v20, %v1809_v5  ;;  %v1811_v8 = vpop.f32.mrb[59].mxu0  ;;  %v6510_v5 = vld [vmem:[#allocation7 + $0x2e4] ss:$8 sps:$4 sm:$0xff]  }
 0x362   :  { %v1920_v52 = vmax.f32 %v7919_v31, %v1811_v8  ;;  %v6516_v8 = vld [vmem:[#allocation7 + $0x304] ss:$8 sps:$4 sm:$0xff]  }
 0x363   :  { %v1943_v61 = vpack.c.bf16 %v1919_v45, %v1915_v10  ;;  %v6513_v10 = vld [vmem:[#allocation7 + $0x2f4] ss:$8 sps:$4 sm:$0xff]   ;;  %v6511_v45 = vld [vmem:[#allocation7 + $0x2f0] ss:$8 sps:$4 sm:$0xff]  }
 0x364   :  { %v1944_v13 = vpack.c.bf16 %v1920_v52, %v1916_v54 }
 0x366   :  { %v1815_v29 = vpop.f32.mrb[60].mxu0  ;;  %1977 = vmatprep.subr.bf16.mxu0 %v1944_v13  ;;  %3228 = vmatprep.subr.bf16.mxu1 %v1944_v13 }
 0x367   :  { %v1817_v36 = vpop.f32.mrb[61].mxu0  ;;  %1978 = vmatpush1.bf16.msra.mxu0 %v1943_v61  ;;  %3229 = vmatpush1.bf16.msra.mxu1 %v1943_v61  ;;  %v1923_v57 = vmax.f32 %v7933_v39, %v1815_v29 }
 0x368   :  { %v1819_v46 = vpop.f32.mrb[62].mxu0  ;;  %v1924_v20 = vmax.f32 %v7935_v40, %v1817_v36 }
 0x369   :  { %v1927_v38 = vmax.f32 %v7939_v23, %v1819_v46  ;;  %v1821_v43 = vpop.f32.mrb[63].mxu0 }
 0x36a   :  { %v1928_v41 = vmax.f32 %v7943_v35, %v1821_v43 }
 0x36b   :  { %v1947_v48 = vpack.c.bf16 %v1927_v38, %v1923_v57 }
 0x36c   :  { %v1948_v31 = vpack.c.bf16 %v1928_v41, %v1924_v20 }
 0x36e   :  { %v1825_v58 = vpop.f32.mrb[64].mxu0  ;;  %1979 = vmatprep.subr.bf16.mxu0 %v1948_v31  ;;  %3230 = vmatprep.subr.bf16.mxu1 %v1948_v31 }
 0x36f   :  { %v1827_v53 = vpop.f32.mrb[65].mxu0  ;;  %1980 = vmatpush1.bf16.msra.mxu0 %v1947_v48  ;;  %3231 = vmatpush1.bf16.msra.mxu1 %v1947_v48  ;;  %v1931_v62 = vmax.f32 %v7957_v32, %v1825_v58  ;;  %v6468_v32 = vld [vmem:[#allocation7 + $0x204] ss:$8 sps:$4 sm:$0xff]  }
 0x370   :  { %v1829_v12 = vpop.f32.mrb[66].mxu0  ;;  %v1932_v23 = vmax.f32 %v7959_v42, %v1827_v53  ;;  %v6466_v42 = vld [vmem:[#allocation7 + $0x200] ss:$8 sps:$4 sm:$0xff]  }
 0x371   :  { %v1935_v39 = vmax.f32 %v7961_v22, %v1829_v12  ;;  %v1831_v7 = vpop.f32.mrb[67].mxu0  ;;  %v6471_v22 = vld [vmem:[#allocation7 + $0x214] ss:$8 sps:$4 sm:$0xff]  }
 0x372   :  { %v1936_v40 = vmax.f32 %v7963_v25, %v1831_v7  ;;  %v6469_v25 = vld [vmem:[#allocation7 + $0x210] ss:$8 sps:$4 sm:$0xff]  }
 0x373   :  { %v1951_v15 = vpack.c.bf16 %v1935_v39, %v1931_v62 }
 0x374   :  { %v1952_v35 = vpack.c.bf16 %v1936_v40, %v1932_v23 }
 0x376   :  { %1981 = vmatprep.subr.bf16.mxu0 %v1952_v35  ;;  %3232 = vmatprep.subr.bf16.mxu1 %v1952_v35 }
 0x377   :  { %1982 = vmatpush1.bf16.msra.mxu0 %v1951_v15  ;;  %3233 = vmatpush1.bf16.msra.mxu1 %v1951_v15 }
 0x378   :  { %2174 = vmatprep.subr.bf16.mxu0 %v1940_v1  ;;  %3279 = vmatprep.subr.bf16.mxu1 %v7987_v4  ;;  %v6472_v4 = vld [vmem:[#allocation7 + $0x220] ss:$8 sps:$4 sm:$0xff]   ;;  %v6507_v1 = vld [vmem:[#allocation7 + $0x2d4] ss:$8 sps:$4 sm:$0xff]  }
 0x37a   :  { %5810 = vmatmul.mubr.msk.bf16.vlgmr.msra.gmra.mrb[68].mxu0 %vm1748_vm1, %v8020_v50  ;;  %5950 = vmatmul.mubr.msk.bf16.vlgmr.msra.gmra.mrb[64].mxu1 %vm1748_vm1, %v8065_v3  ;;  %v6484_v50 = vld [vmem:[#allocation7 + $0x260] ss:$8 sps:$4 sm:$0xff]  }
 0x37b   :  { %2175 = vmatpush1.bf16.msra.mxu0 %v1939_v60  ;;  %3280 = vmatpush1.bf16.msra.mxu1 %v7985_v55  ;;  %v6474_v55 = vld [vmem:[#allocation7 + $0x224] ss:$8 sps:$4 sm:$0xff]  }
 0x37c   :  { %2176 = vmatprep.subr.bf16.mxu0 %v1944_v13  ;;  %3281 = vmatprep.subr.bf16.mxu1 %v7997_v33  ;;  %v6475_v33 = vld [vmem:[#allocation7 + $0x230] ss:$8 sps:$4 sm:$0xff]   ;;  %v6504_v60 = vld [vmem:[#allocation7 + $0x2c4] ss:$8 sps:$4 sm:$0xff]  }
 0x37d   :  { %2017 = vmatprep.mubr.bf16.mxu0 %v7299_v0  ;;  %3268 = vmatprep.mubr.bf16.mxu1 %v7299_v0 }
 0x37f   :  { %2177 = vmatpush1.bf16.msra.mxu0 %v1943_v61  ;;  %3282 = vmatpush1.bf16.msra.mxu1 %v7995_v16  ;;  %v6477_v16 = vld [vmem:[#allocation7 + $0x234] ss:$8 sps:$4 sm:$0xff]  }
 0x380   :  { %2178 = vmatprep.subr.bf16.mxu0 %v1948_v31  ;;  %3283 = vmatprep.subr.bf16.mxu1 %v8007_v27  ;;  %v6478_v27 = vld [vmem:[#allocation7 + $0x240] ss:$8 sps:$4 sm:$0xff]  }
 0x382   :  { %5811 = vmatmul.mubr.msk.bf16.gmra.mrb[72].mxu0 %vm1748_vm1, %v8029_v18  ;;  %v6489_v18 = vld [vmem:[#allocation7 + $0x274] ss:$8 sps:$4 sm:$0xff]  }
 0x383   :  { %2179 = vmatpush1.bf16.msra.mxu0 %v1947_v48  ;;  %3284 = vmatpush1.bf16.msra.mxu1 %v8005_v14  ;;  %v6480_v14 = vld [vmem:[#allocation7 + $0x244] ss:$8 sps:$4 sm:$0xff]  }
 0x384   :  { %2180 = vmatprep.subr.bf16.mxu0 %v1952_v35  ;;  %3285 = vmatprep.subr.bf16.mxu1 %v8017_v21  ;;  %v6486_v21 = vld [vmem:[#allocation7 + $0x264] ss:$8 sps:$4 sm:$0xff]  }
 0x385   :  { %2206 = vmatprep.mubr.bf16.mxu0 %v7299_v0 }
 0x387   :  { %2181 = vmatpush1.bf16.msra.mxu0 %v1951_v15  ;;  %3286 = vmatpush1.bf16.msra.mxu1 %v8015_v17  ;;  %v6481_v17 = vld [vmem:[#allocation7 + $0x250] ss:$8 sps:$4 sm:$0xff]  }
 0x388   :  { %2673 = vmatprep.subr.bf16.mxu0 %v6468_v32  ;;  %v6583_v32 = vld [vmem:[#allocation6 + $0x28] sm:$0xff]  }
 0x389   :  { %5951 = vmatmul.mubr.msk.bf16.gmra.mrb[68].mxu1 %vm1748_vm1, %v6583_v32 }
 0x38a   :  { %5816 = vmatmul.mubr.msk.bf16.vlgmr.msra.gmra.mrb[76].mxu0 %vm1748_vm1, %v8038_v44  ;;  %v6487_v44 = vld [vmem:[#allocation7 + $0x270] ss:$8 sps:$4 sm:$0xff]   ;;  %3311 = vmatprep.mubr.bf16.mxu1 %v7299_v0 }
 0x38b   :  { %2216 = vmatprep.mubr.bf16.mxu0 %v7299_v0  ;;  %2674 = vmatpush1.bf16.msra.mxu0 %v6466_v42 }
 0x38c   :  { %2675 = vmatprep.subr.bf16.mxu0 %v6471_v22 }
 0x38f   :  { %2676 = vmatpush1.bf16.msra.mxu0 %v6469_v25 }
 0x390   :  { %2677 = vmatprep.subr.bf16.mxu0 %v6474_v55 }
 0x391   :  { %5952 = vmatmul.mubr.msk.bf16.vlgmr.msra.gmra.mrb[72].mxu1 %vm1748_vm1, %v8065_v3 }
 0x392   :  { %5817 = vmatmul.mubr.msk.bf16.gmra.mrb[80].mxu0 %vm1748_vm1, %v8044_v47  ;;  %v6492_v47 = vld [vmem:[#allocation7 + $0x284] ss:$8 sps:$4 sm:$0xff]   ;;  %3321 = vmatprep.mubr.bf16.mxu1 %v7299_v0 }
 0x393   :  { %2678 = vmatpush1.bf16.msra.mxu0 %v6472_v4 }
 0x394   :  { %2679 = vmatprep.subr.bf16.mxu0 %v6477_v16 }
 0x397   :  { %2680 = vmatpush1.bf16.msra.mxu0 %v6475_v33 }
 0x398   :  { %2681 = vmatprep.subr.bf16.mxu0 %v6480_v14 }
 0x399   :  { %5953 = vmatmul.mubr.msk.bf16.gmra.mrb[76].mxu1 %vm1748_vm1, %v6583_v32  ;;  %v6534_v32 = vld [vmem:[#allocation7 + $0x364] ss:$8 sps:$4 sm:$0xff]  }
 0x39a   :  { %3939 = vmatprep.mubr.bf16.mxu1 %v7299_v0 }
 0x39b   :  { %2682 = vmatpush1.bf16.msra.mxu0 %v6478_v27 }
 0x39c   :  { %2683 = vmatprep.subr.bf16.mxu0 %v6483_v11 }
 0x39f   :  { %2684 = vmatpush1.bf16.msra.mxu0 %v6481_v17 }
 0x3a0   :  { %2685 = vmatprep.subr.bf16.mxu0 %v6486_v21 }
 0x3a3   :  { %2686 = vmatpush1.bf16.msra.mxu0 %v6484_v50 }
 0x3a4   :  { %2687 = vmatprep.subr.bf16.mxu0 %v6489_v18 }
 0x3a7   :  { %2688 = vmatpush1.bf16.msra.mxu0 %v6487_v44 }
 0x3a8   :  { %2689 = vmatprep.subr.bf16.mxu0 %v6492_v47 }
 0x3ab   :  { %2690 = vmatpush1.bf16.msra.mxu0 %v6490_v49 }
 0x3ac   :  { %2691 = vmatprep.subr.bf16.mxu0 %v6495_v56  ;;  %v6514_v56 = vld [vmem:[#allocation7 + $0x300] ss:$8 sps:$4 sm:$0xff]  }
 0x3af   :  { %2692 = vmatpush1.bf16.msra.mxu0 %v6493_v19  ;;  %v6519_v19 = vld [vmem:[#allocation7 + $0x314] ss:$8 sps:$4 sm:$0xff]  }
 0x3b0   :  { %2693 = vmatprep.subr.bf16.mxu0 %v6498_v51  ;;  %v6517_v51 = vld [vmem:[#allocation7 + $0x310] ss:$8 sps:$4 sm:$0xff]  }
 0x3b3   :  { %2694 = vmatpush1.bf16.msra.mxu0 %v6496_v59 }
 0x3b4   :  { %2695 = vmatprep.subr.bf16.mxu0 %v6501_v37  ;;  %v6522_v37 = vld [vmem:[#allocation7 + $0x324] ss:$8 sps:$4 sm:$0xff]  }
 0x3b7   :  { %2696 = vmatpush1.bf16.msra.mxu0 %v6499_v24 }
 0x3b8   :  { %2697 = vmatprep.subr.bf16.mxu0 %v6504_v60 }
 0x3bb   :  { %2698 = vmatpush1.bf16.msra.mxu0 %v6502_v26 }
 0x3bc   :  { %2699 = vmatprep.subr.bf16.mxu0 %v6507_v1 }
 0x3bf   :  { %2700 = vmatpush1.bf16.msra.mxu0 %v6505_v9  ;;  %v6520_v9 = vld [vmem:[#allocation7 + $0x320] ss:$8 sps:$4 sm:$0xff]  }
 0x3c0   :  { %2701 = vmatprep.subr.bf16.mxu0 %v6510_v5  ;;  %v6525_v5 = vld [vmem:[#allocation7 + $0x334] ss:$8 sps:$4 sm:$0xff]  }
 0x3c3   :  { %2702 = vmatpush1.bf16.msra.mxu0 %v6508_v6 }
 0x3c4   :  { %2703 = vmatprep.subr.bf16.mxu0 %v6513_v10  ;;  %v6523_v10 = vld [vmem:[#allocation7 + $0x330] ss:$8 sps:$4 sm:$0xff]  }
 0x3c7   :  { %2704 = vmatpush1.bf16.msra.mxu0 %v6511_v45  ;;  %v6528_v45 = vld [vmem:[#allocation7 + $0x344] ss:$8 sps:$4 sm:$0xff]  }
 0x3c8   :  { %2726 = vmatprep.subr.bf16.mxu0 %v6516_v8  ;;  %v6526_v8 = vld [vmem:[#allocation7 + $0x340] ss:$8 sps:$4 sm:$0xff]  }
 0x3fd   :  { %v8089_v54 = vpop.f32.mrb[48].mxu1 }
 0x3fe   :  { %v8091_v52 = vpop.f32.mrb[49].mxu1 }
 0x3ff   :  { %v8093_v61 = vpop.f32.mrb[50].mxu1 }
 0x400   :  { %v2083_v13 = vpack.c.bf16 %v8093_v61, %v8089_v54  ;;  %v8097_v29 = vpop.f32.mrb[51].mxu1  ;;  %v6670_v54 = vld [vmem:[#allocation7 + $0x434] ss:$8 sps:$4 sm:$0xff]   ;;  %v6668_v61 = vld [vmem:[#allocation7 + $0x430] ss:$8 sps:$4 sm:$0xff]  }
 0x401   :  { %v2084_v36 = vpack.c.bf16 %v8097_v29, %v8091_v52  ;;  %v6637_v52 = vld [vmem:[#allocation7 + $0x184] ss:$8 sps:$4 sm:$0xff]   ;;  %v6635_v29 = vld [vmem:[#allocation7 + $0x180] ss:$8 sps:$4 sm:$0xff]  }
 0x405   :  { %v8101_v46 = vpop.f32.mrb[52].mxu1 }
 0x406   :  { %v8103_v57 = vpop.f32.mrb[53].mxu1 }
 0x407   :  { %v8105_v38 = vpop.f32.mrb[54].mxu1 }
 0x408   :  { %v2087_v43 = vpack.c.bf16 %v8105_v38, %v8101_v46  ;;  %v8109_v20 = vpop.f32.mrb[55].mxu1  ;;  %v6682_v46 = vld [vmem:[#allocation7 + $0x474] ss:$8 sps:$4 sm:$0xff]   ;;  %v6680_v38 = vld [vmem:[#allocation7 + $0x470] ss:$8 sps:$4 sm:$0xff]  }
 0x409   :  { %v2088_v41 = vpack.c.bf16 %v8109_v20, %v8103_v57  ;;  %v6671_v57 = vld [vmem:[#allocation7 + $0x440] ss:$8 sps:$4 sm:$0xff]   ;;  %v6676_v20 = vld [vmem:[#allocation7 + $0x454] ss:$8 sps:$4 sm:$0xff]  }
 0x40d   :  { %v8113_v48 = vpop.f32.mrb[56].mxu1 }
 0x40e   :  { %v2263_v31 = vpop.f32.mrb[57].mxu1 }
 0x40f   :  { %v8115_v58 = vpop.f32.mrb[58].mxu1 }
 0x410   :  { %v2282_v53 = vpack.c.bf16 %v8115_v58, %v8113_v48  ;;  %v2267_v12 = vpop.f32.mrb[59].mxu1  ;;  %v6571_v48 = vld [vmem:[#allocation7 + $0x30] ss:$8 sps:$4 sm:$0xff]   ;;  %v6576_v58 = vld [vmem:[#allocation7 + $0x44] ss:$8 sps:$4 sm:$0xff]  }
 0x411   :  { %v2283_v62 = vpack.c.bf16 %v2267_v12, %v2263_v31  ;;  %v6531_v31 = vld [vmem:[#allocation7 + $0x354] ss:$8 sps:$4 sm:$0xff]   ;;  %v6529_v12 = vld [vmem:[#allocation7 + $0x350] ss:$8 sps:$4 sm:$0xff]  }
 0x415   :  { %v8119_v39 = vpop.f32.mrb[60].mxu1 }
 0x416   :  { %v8121_v7 = vpop.f32.mrb[61].mxu1 }
 0x417   :  { %v8123_v23 = vpop.f32.mrb[62].mxu1 }
 0x418   :  { %v2286_v40 = vpack.c.bf16 %v8123_v23, %v8119_v39  ;;  %v8127_v15 = vpop.f32.mrb[63].mxu1  ;;  %v6586_v39 = vld [vmem:[#allocation7 + $0x74] ss:$8 sps:$4 sm:$0xff]   ;;  %v6584_v23 = vld [vmem:[#allocation7 + $0x70] ss:$8 sps:$4 sm:$0xff]  }
 0x419   :  { %v2287_v35 = vpack.c.bf16 %v8127_v15, %v8121_v7  ;;  %v6579_v7 = vld [vmem:[#allocation7 + $0x54] ss:$8 sps:$4 sm:$0xff]   ;;  %v6577_v15 = vld [vmem:[#allocation7 + $0x50] ss:$8 sps:$4 sm:$0xff]  }
 0x44d   :  { %v8136_v42 = vpop.f32.mrb[68].mxu0 }
 0x44e   :  { %v8138_v22 = vpop.f32.mrb[69].mxu0 }
 0x44f   :  { %v8141_v25 = vpop.f32.mrb[70].mxu0 }
 0x450   :  { %v2081_v55 = vpack.c.bf16 %v8141_v25, %v8136_v42  ;;  %v8146_v4 = vpop.f32.mrb[71].mxu0  ;;  %v6620_v42 = vld [vmem:[#allocation7 + $0x130] ss:$8 sps:$4 sm:$0xff]   ;;  %v6625_v25 = vld [vmem:[#allocation7 + $0x144] ss:$8 sps:$4 sm:$0xff]  }
 0x451   :  { %v2082_v3 = vpack.c.bf16 %v8146_v4, %v8138_v22  ;;  %v6587_v22 = vld [vmem:[#allocation7 + $0x80] ss:$8 sps:$4 sm:$0xff]   ;;  %v6592_v4 = vld [vmem:[#allocation7 + $0x94] ss:$8 sps:$4 sm:$0xff]  }
 0x455   :  { %v8150_v16 = vpop.f32.mrb[72].mxu0 }
 0x456   :  { %v8152_v33 = vpop.f32.mrb[73].mxu0 }
 0x457   :  { %v8154_v14 = vpop.f32.mrb[74].mxu0 }
 0x458   :  { %v2085_v27 = vpack.c.bf16 %v8154_v14, %v8150_v16  ;;  %v8158_v11 = vpop.f32.mrb[75].mxu0  ;;  %v6634_v16 = vld [vmem:[#allocation7 + $0x174] ss:$8 sps:$4 sm:$0xff]   ;;  %v6632_v14 = vld [vmem:[#allocation7 + $0x170] ss:$8 sps:$4 sm:$0xff]  }
 0x459   :  { %v2086_v17 = vpack.c.bf16 %v8158_v11, %v8152_v33  ;;  %v6628_v33 = vld [vmem:[#allocation7 + $0x154] ss:$8 sps:$4 sm:$0xff]   ;;  %v6626_v11 = vld [vmem:[#allocation7 + $0x150] ss:$8 sps:$4 sm:$0xff]  }
 0x45d   :  { %v2208_v21 = vpop.f32.mrb[76].mxu0 }
 0x45e   :  { %v2210_v50 = vpop.f32.mrb[77].mxu0 }
 0x45f   :  { %v2212_v18 = vpop.f32.mrb[78].mxu0 }
 0x460   :  { %v2280_v44 = vpack.c.bf16 %v2212_v18, %v2208_v21  ;;  %v2214_v47 = vpop.f32.mrb[79].mxu0  ;;  %v6532_v21 = vld [vmem:[#allocation7 + $0x360] ss:$8 sps:$4 sm:$0xff]   ;;  %v6535_v18 = vld [vmem:[#allocation7 + $0x370] ss:$8 sps:$4 sm:$0xff]  }
 0x461   :  { %v2281_v49 = vpack.c.bf16 %v2214_v47, %v2210_v50  ;;  %v6537_v50 = vld [vmem:[#allocation7 + $0x374] ss:$8 sps:$4 sm:$0xff]  }
 0x462   :  { %v6543_v47 = vld [vmem:[#allocation7 + $0x394] ss:$8 sps:$4 sm:$0xff]  }
 0x463   :  { %2705 = vmatprep.mubr.bf16.mxu0 %v2281_v49  ;;  %v6541_v49 = vld [vmem:[#allocation7 + $0x390] ss:$8 sps:$4 sm:$0xff]  }
 0x464   :  { %2706 = vmatmul.mubr.bf16.vlgmr.msra.gmra.mrb[84].mxu0 %v2280_v44  ;;  %v6540_v44 = vld [vmem:[#allocation7 + $0x384] ss:$8 sps:$4 sm:$0xff]  }
 0x465   :  { %2727 = vmatpush1.bf16.msra.mxu0 %v6514_v56  ;;  %v2218_v59 = vpop.f32.mrb[80].mxu0  ;;  %v6546_v56 = vld [vmem:[#allocation7 + $0x3a4] ss:$8 sps:$4 sm:$0xff]  }
 0x466   :  { %2728 = vmatprep.subr.bf16.mxu0 %v6519_v19  ;;  %v2220_v24 = vpop.f32.mrb[81].mxu0  ;;  %v6544_v19 = vld [vmem:[#allocation7 + $0x3a0] ss:$8 sps:$4 sm:$0xff]  }
 0x467   :  { %v2222_v26 = vpop.f32.mrb[82].mxu0 }
 0x468   :  { %v2284_v60 = vpack.c.bf16 %v2222_v26, %v2218_v59  ;;  %v2224_v1 = vpop.f32.mrb[83].mxu0  ;;  %v6547_v59 = vld [vmem:[#allocation7 + $0x3b0] ss:$8 sps:$4 sm:$0xff]   ;;  %v6555_v26 = vld [vmem:[#allocation7 + $0x3d4] ss:$8 sps:$4 sm:$0xff]  }
 0x469   :  { %2729 = vmatpush1.bf16.msra.mxu0 %v6517_v51  ;;  %v2285_v6 = vpack.c.bf16 %v2224_v1, %v2220_v24  ;;  %v6549_v51 = vld [vmem:[#allocation7 + $0x3b4] ss:$8 sps:$4 sm:$0xff]   ;;  %v6550_v24 = vld [vmem:[#allocation7 + $0x3c0] ss:$8 sps:$4 sm:$0xff]   ;;  %v6558_v1 = vld [vmem:[#allocation7 + $0x3e4] ss:$8 sps:$4 sm:$0xff]  }
 0x46a   :  { %2730 = vmatprep.subr.bf16.mxu0 %v6522_v37  ;;  %v6552_v37 = vld [vmem:[#allocation7 + $0x3c4] ss:$8 sps:$4 sm:$0xff]  }
 0x46b   :  { %2715 = vmatprep.mubr.bf16.mxu0 %v2285_v6  ;;  %v6561_v6 = vld [vmem:[#allocation7 + $0x3f4] ss:$8 sps:$4 sm:$0xff]  }
 0x46c   :  { %2716 = vmatmul.mubr.bf16.gmra.mrb[88].mxu0 %v2284_v60  ;;  %v6553_v60 = vld [vmem:[#allocation7 + $0x3d0] ss:$8 sps:$4 sm:$0xff]  }
 0x46d   :  { %2731 = vmatpush1.bf16.msra.mxu0 %v6520_v9  ;;  %2758 = vmatprep.mubr.bf16.mxu0 %v2283_v62  ;;  %v6538_v62 = vld [vmem:[#allocation7 + $0x380] ss:$8 sps:$4 sm:$0xff]  }
 0x46e   :  { %2732 = vmatprep.subr.bf16.mxu0 %v6525_v5  ;;  %v6556_v9 = vld [vmem:[#allocation7 + $0x3e0] ss:$8 sps:$4 sm:$0xff]   ;;  %v6559_v5 = vld [vmem:[#allocation7 + $0x3f0] ss:$8 sps:$4 sm:$0xff]  }
 0x471   :  { %2733 = vmatpush1.bf16.msra.mxu0 %v6523_v10  ;;  %v6564_v10 = vld [vmem:[#allocation7 + $0x4] ss:$8 sps:$4 sm:$0xff]  }
 0x472   :  { %2734 = vmatprep.subr.bf16.mxu0 %v6528_v45  ;;  %v6562_v45 = vld [vmem:[#allocation7] ss:$8 sps:$4 sm:$0xff]  }
 0x475   :  { %2735 = vmatpush1.bf16.msra.mxu0 %v6526_v8  ;;  %v6567_v8 = vld [vmem:[#allocation7 + $0x14] ss:$8 sps:$4 sm:$0xff]  }
 0x476   :  { %2736 = vmatprep.subr.bf16.mxu0 %v6531_v31  ;;  %v6565_v31 = vld [vmem:[#allocation7 + $0x10] ss:$8 sps:$4 sm:$0xff]  }
 0x479   :  { %2737 = vmatpush1.bf16.msra.mxu0 %v6529_v12  ;;  %v6570_v12 = vld [vmem:[#allocation7 + $0x24] ss:$8 sps:$4 sm:$0xff]  }
 0x47a   :  { %2738 = vmatprep.subr.bf16.mxu0 %v6534_v32  ;;  %v6568_v32 = vld [vmem:[#allocation7 + $0x20] ss:$8 sps:$4 sm:$0xff]  }
 0x47d   :  { %2739 = vmatpush1.bf16.msra.mxu0 %v6532_v21  ;;  %v6573_v21 = vld [vmem:[#allocation7 + $0x34] ss:$8 sps:$4 sm:$0xff]  }
 0x47e   :  { %2740 = vmatprep.subr.bf16.mxu0 %v6537_v50  ;;  %v6580_v50 = vld [vmem:[#allocation7 + $0x60] ss:$8 sps:$4 sm:$0xff]  }
 0x481   :  { %2741 = vmatpush1.bf16.msra.mxu0 %v6535_v18  ;;  %v6595_v18 = vld [vmem:[#allocation7 + $0xa4] ss:$8 sps:$4 sm:$0xff]  }
 0x482   :  { %2742 = vmatprep.subr.bf16.mxu0 %v6540_v44  ;;  %v6593_v44 = vld [vmem:[#allocation7 + $0xa0] ss:$8 sps:$4 sm:$0xff]  }
 0x485   :  { %2743 = vmatpush1.bf16.msra.mxu0 %v6538_v62  ;;  %v6598_v62 = vld [vmem:[#allocation7 + $0xb4] ss:$8 sps:$4 sm:$0xff]  }
 0x486   :  { %2744 = vmatprep.subr.bf16.mxu0 %v6543_v47  ;;  %v6596_v47 = vld [vmem:[#allocation7 + $0xb0] ss:$8 sps:$4 sm:$0xff]  }
 0x489   :  { %2745 = vmatpush1.bf16.msra.mxu0 %v6541_v49  ;;  %v6601_v49 = vld [vmem:[#allocation7 + $0xc4] ss:$8 sps:$4 sm:$0xff]  }
 0x48a   :  { %2746 = vmatprep.subr.bf16.mxu0 %v6546_v56  ;;  %v6599_v56 = vld [vmem:[#allocation7 + $0xc0] ss:$8 sps:$4 sm:$0xff]  }
 0x48d   :  { %2747 = vmatpush1.bf16.msra.mxu0 %v6544_v19  ;;  %v6604_v19 = vld [vmem:[#allocation7 + $0xd4] ss:$8 sps:$4 sm:$0xff]  }
 0x48e   :  { %2748 = vmatprep.subr.bf16.mxu0 %v6549_v51  ;;  %v6602_v51 = vld [vmem:[#allocation7 + $0xd0] ss:$8 sps:$4 sm:$0xff]  }
 0x491   :  { %2749 = vmatpush1.bf16.msra.mxu0 %v6547_v59  ;;  %v6607_v59 = vld [vmem:[#allocation7 + $0xe4] ss:$8 sps:$4 sm:$0xff]  }
 0x492   :  { %2750 = vmatprep.subr.bf16.mxu0 %v6552_v37  ;;  %v6605_v37 = vld [vmem:[#allocation7 + $0xe0] ss:$8 sps:$4 sm:$0xff]  }
 0x495   :  { %2751 = vmatpush1.bf16.msra.mxu0 %v6550_v24  ;;  %v8174_v24 = vpop.f32.mrb[64].mxu1 }
 0x496   :  { %2752 = vmatprep.subr.bf16.mxu0 %v6555_v26  ;;  %v6610_v26 = vld [vmem:[#allocation7 + $0xf4] ss:$8 sps:$4 sm:$0xff]  }
 0x499   :  { %2753 = vmatpush1.bf16.msra.mxu0 %v6553_v60  ;;  %v8176_v60 = vpop.f32.mrb[65].mxu1 }
 0x49a   :  { %2754 = vmatprep.subr.bf16.mxu0 %v6558_v1  ;;  %v8178_v1 = vpop.f32.mrb[66].mxu1 }
 0x49d   :  { %2755 = vmatpush1.bf16.msra.mxu0 %v6556_v9  ;;  %v3332_v9 = vpack.c.bf16 %v8178_v1, %v8174_v24  ;;  %v6721_v24 = vld [vmem:[#allocation7 + $0x544] ss:$8 sps:$4 sm:$0xff]   ;;  %v6719_v1 = vld [vmem:[#allocation7 + $0x540] ss:$8 sps:$4 sm:$0xff]  }
 0x49e   :  { %2756 = vmatprep.subr.bf16.mxu0 %v6561_v6  ;;  %v6608_v6 = vld [vmem:[#allocation7 + $0xf0] ss:$8 sps:$4 sm:$0xff]  }
 0x4a1   :  { %2757 = vmatpush1.bf16.msra.mxu0 %v6559_v5  ;;  %v8182_v5 = vpop.f32.mrb[67].mxu1 }
 0x4a2   :  { %3099 = vmatprep.subr.bf16.mxu0 %v6564_v10  ;;  %v6613_v10 = vld [vmem:[#allocation7 + $0x104] ss:$8 sps:$4 sm:$0xff]  }
 0x4a4   :  { %2759 = vmatmul.mubr.bf16.vlgmr.msra.gmra.mrb[84].mxu0 %v2282_v53  ;;  %v6574_v53 = vld [vmem:[#allocation7 + $0x40] ss:$8 sps:$4 sm:$0xff]  }
 0x4a5   :  { %3100 = vmatpush1.bf16.msra.mxu0 %v6562_v45  ;;  %2768 = vmatprep.mubr.bf16.mxu0 %v2287_v35  ;;  %v6582_v35 = vld [vmem:[#allocation7 + $0x64] ss:$8 sps:$4 sm:$0xff]   ;;  %v3333_v45 = vpack.c.bf16 %v8182_v5, %v8176_v60  ;;  %v6683_v60 = vld [vmem:[#allocation7 + $0x480] ss:$8 sps:$4 sm:$0xff]   ;;  %v6688_v5 = vld [vmem:[#allocation7 + $0x494] ss:$8 sps:$4 sm:$0xff]  }
 0x4a6   :  { %3101 = vmatprep.subr.bf16.mxu0 %v6567_v8  ;;  %v6611_v8 = vld [vmem:[#allocation7 + $0x100] ss:$8 sps:$4 sm:$0xff]  }
 0x4a9   :  { %3102 = vmatpush1.bf16.msra.mxu0 %v6565_v31  ;;  %v6616_v31 = vld [vmem:[#allocation7 + $0x114] ss:$8 sps:$4 sm:$0xff]  }
 0x4aa   :  { %3103 = vmatprep.subr.bf16.mxu0 %v6570_v12  ;;  %v6614_v12 = vld [vmem:[#allocation7 + $0x110] ss:$8 sps:$4 sm:$0xff]  }
 0x4ac   :  { %2769 = vmatmul.mubr.bf16.gmra.mrb[88].mxu0 %v2286_v40  ;;  %v6589_v40 = vld [vmem:[#allocation7 + $0x84] ss:$8 sps:$4 sm:$0xff]  }
 0x4ad   :  { %3104 = vmatpush1.bf16.msra.mxu0 %v6568_v32  ;;  %3131 = vmatprep.mubr.bf16.mxu0 %v2082_v3  ;;  %v6590_v3 = vld [vmem:[#allocation7 + $0x90] ss:$8 sps:$4 sm:$0xff]   ;;  %v6619_v32 = vld [vmem:[#allocation7 + $0x124] ss:$8 sps:$4 sm:$0xff]  }
 0x4ae   :  { %3105 = vmatprep.subr.bf16.mxu0 %v6573_v21  ;;  %v6617_v21 = vld [vmem:[#allocation7 + $0x120] ss:$8 sps:$4 sm:$0xff]  }
 0x4b1   :  { %3106 = vmatpush1.bf16.msra.mxu0 %v6571_v48  ;;  %v6622_v48 = vld [vmem:[#allocation7 + $0x134] ss:$8 sps:$4 sm:$0xff]  }
 0x4b2   :  { %3107 = vmatprep.subr.bf16.mxu0 %v6576_v58  ;;  %v6629_v58 = vld [vmem:[#allocation7 + $0x160] ss:$8 sps:$4 sm:$0xff]  }
 0x4b5   :  { %3108 = vmatpush1.bf16.msra.mxu0 %v6574_v53  ;;  %v6643_v53 = vld [vmem:[#allocation7 + $0x1a4] ss:$8 sps:$4 sm:$0xff]  }
 0x4b6   :  { %3109 = vmatprep.subr.bf16.mxu0 %v6579_v7  ;;  %v6641_v7 = vld [vmem:[#allocation7 + $0x1a0] ss:$8 sps:$4 sm:$0xff]  }
 0x4b9   :  { %3110 = vmatpush1.bf16.msra.mxu0 %v6577_v15  ;;  %v6646_v15 = vld [vmem:[#allocation7 + $0x1b4] ss:$8 sps:$4 sm:$0xff]  }
 0x4ba   :  { %3111 = vmatprep.subr.bf16.mxu0 %v6582_v35  ;;  %v6644_v35 = vld [vmem:[#allocation7 + $0x1b0] ss:$8 sps:$4 sm:$0xff]  }
 0x4bd   :  { %3112 = vmatpush1.bf16.msra.mxu0 %v6580_v50  ;;  %v6649_v50 = vld [vmem:[#allocation7 + $0x1c4] ss:$8 sps:$4 sm:$0xff]  }
 0x4be   :  { %3113 = vmatprep.subr.bf16.mxu0 %v6586_v39  ;;  %v6647_v39 = vld [vmem:[#allocation7 + $0x1c0] ss:$8 sps:$4 sm:$0xff]  }
 0x4c1   :  { %3114 = vmatpush1.bf16.msra.mxu0 %v6584_v23  ;;  %v8198_v23 = vpop.f32.mrb[68].mxu1 }
 0x4c2   :  { %3115 = vmatprep.subr.bf16.mxu0 %v6589_v40  ;;  %v6652_v40 = vld [vmem:[#allocation7 + $0x1d4] ss:$8 sps:$4 sm:$0xff]  }
 0x4c5   :  { %3116 = vmatpush1.bf16.msra.mxu0 %v6587_v22  ;;  %v8200_v22 = vpop.f32.mrb[69].mxu1 }
 0x4c6   :  { %3117 = vmatprep.subr.bf16.mxu0 %v6592_v4  ;;  %v8202_v4 = vpop.f32.mrb[70].mxu1 }
 0x4c9   :  { %3118 = vmatpush1.bf16.msra.mxu0 %v6590_v3  ;;  %v3336_v3 = vpack.c.bf16 %v8202_v4, %v8198_v23  ;;  %v6730_v23 = vld [vmem:[#allocation7 + $0x574] ss:$8 sps:$4 sm:$0xff]   ;;  %v6728_v4 = vld [vmem:[#allocation7 + $0x570] ss:$8 sps:$4 sm:$0xff]  }
 0x4ca   :  { %3119 = vmatprep.subr.bf16.mxu0 %v6595_v18  ;;  %v8206_v18 = vpop.f32.mrb[71].mxu1 }
 0x4cd   :  { %3120 = vmatpush1.bf16.msra.mxu0 %v6593_v44  ;;  %v6650_v44 = vld [vmem:[#allocation7 + $0x1d0] ss:$8 sps:$4 sm:$0xff]  }
 0x4ce   :  { %3121 = vmatprep.subr.bf16.mxu0 %v6598_v62  ;;  %v3337_v62 = vpack.c.bf16 %v8206_v18, %v8200_v22  ;;  %v6722_v22 = vld [vmem:[#allocation7 + $0x550] ss:$8 sps:$4 sm:$0xff]   ;;  %v6727_v18 = vld [vmem:[#allocation7 + $0x564] ss:$8 sps:$4 sm:$0xff]  }
 0x4d1   :  { %3122 = vmatpush1.bf16.msra.mxu0 %v6596_v47  ;;  %v6655_v47 = vld [vmem:[#allocation7 + $0x1e4] ss:$8 sps:$4 sm:$0xff]  }
 0x4d2   :  { %3123 = vmatprep.subr.bf16.mxu0 %v6601_v49  ;;  %v6653_v49 = vld [vmem:[#allocation7 + $0x1e0] ss:$8 sps:$4 sm:$0xff]  }
 0x4d5   :  { %3124 = vmatpush1.bf16.msra.mxu0 %v6599_v56  ;;  %v8210_v56 = vpop.f32.mrb[72].mxu1 }
 0x4d6   :  { %3125 = vmatprep.subr.bf16.mxu0 %v6604_v19  ;;  %v6658_v19 = vld [vmem:[#allocation7 + $0x1f4] ss:$8 sps:$4 sm:$0xff]  }
 0x4d9   :  { %3126 = vmatpush1.bf16.msra.mxu0 %v6602_v51  ;;  %v8212_v51 = vpop.f32.mrb[73].mxu1 }
 0x4da   :  { %3127 = vmatprep.subr.bf16.mxu0 %v6607_v59  ;;  %v8214_v59 = vpop.f32.mrb[74].mxu1 }
 0x4dd   :  { %3128 = vmatpush1.bf16.msra.mxu0 %v6605_v37  ;;  %v3334_v37 = vpack.c.bf16 %v8214_v59, %v8210_v56 }
 0x4de   :  { %3129 = vmatprep.subr.bf16.mxu0 %v6610_v26  ;;  %v8218_v26 = vpop.f32.mrb[75].mxu1 }
 0x4e1   :  { %3130 = vmatpush1.bf16.msra.mxu0 %v6608_v6  ;;  %v6656_v6 = vld [vmem:[#allocation7 + $0x1f0] ss:$8 sps:$4 sm:$0xff]  }
 0x4e2   :  { %3152 = vmatprep.subr.bf16.mxu0 %v6613_v10  ;;  %v3335_v10 = vpack.c.bf16 %v8218_v26, %v8212_v51  ;;  %v6731_v51 = vld [vmem:[#allocation7 + $0x580] ss:$8 sps:$4 sm:$0xff]   ;;  %v6736_v26 = vld [vmem:[#allocation7 + $0x594] ss:$8 sps:$4 sm:$0xff]  }
 0x4e4   :  { %3132 = vmatmul.mubr.bf16.vlgmr.msra.gmra.mrb[84].mxu0 %v2081_v55  ;;  %v6623_v55 = vld [vmem:[#allocation7 + $0x140] ss:$8 sps:$4 sm:$0xff]  }
 0x4e5   :  { %3141 = vmatprep.mubr.bf16.mxu0 %v2086_v17  ;;  %3153 = vmatpush1.bf16.msra.mxu0 %v6611_v8  ;;  %v6631_v17 = vld [vmem:[#allocation7 + $0x164] ss:$8 sps:$4 sm:$0xff]  }
 0x4e6   :  { %3154 = vmatprep.subr.bf16.mxu0 %v6616_v31  ;;  %v6661_v8 = vld [vmem:[#allocation7 + $0x404] ss:$8 sps:$4 sm:$0xff]   ;;  %v6659_v31 = vld [vmem:[#allocation7 + $0x400] ss:$8 sps:$4 sm:$0xff]  }
 0x4e9   :  { %3155 = vmatpush1.bf16.msra.mxu0 %v6614_v12  ;;  %v8222_v12 = vpop.f32.mrb[76].mxu1 }
 0x4ea   :  { %3156 = vmatprep.subr.bf16.mxu0 %v6619_v32  ;;  %v6664_v32 = vld [vmem:[#allocation7 + $0x414] ss:$8 sps:$4 sm:$0xff]  }
 0x4ec   :  { %3142 = vmatmul.mubr.bf16.gmra.mrb[88].mxu0 %v2085_v27  ;;  %v6638_v27 = vld [vmem:[#allocation7 + $0x190] ss:$8 sps:$4 sm:$0xff]  }
 0x4ed   :  { %3157 = vmatpush1.bf16.msra.mxu0 %v6617_v21  ;;  %3184 = vmatprep.mubr.bf16.mxu0 %v2084_v36  ;;  %v6640_v36 = vld [vmem:[#allocation7 + $0x194] ss:$8 sps:$4 sm:$0xff]   ;;  %v8224_v21 = vpop.f32.mrb[77].mxu1 }
 0x4ee   :  { %3158 = vmatprep.subr.bf16.mxu0 %v6622_v48  ;;  %v8226_v48 = vpop.f32.mrb[78].mxu1 }
 0x4f1   :  { %3159 = vmatpush1.bf16.msra.mxu0 %v6620_v42  ;;  %v3338_v42 = vpack.c.bf16 %v8226_v48, %v8222_v12  ;;  %v3870_v48 = vld [vmem:[#allocation16 + $0x18] sm:$0xff] }
 0x4f2   :  { %3160 = vmatprep.subr.bf16.mxu0 %v6625_v25  ;;  %v8233_v25 = vpop.f32.mrb[79].mxu1 }
 0x4f5   :  { %3161 = vmatpush1.bf16.msra.mxu0 %v6623_v55  ;;  %v6662_v55 = vld [vmem:[#allocation7 + $0x410] ss:$8 sps:$4 sm:$0xff]  }
 0x4f6   :  { %3162 = vmatprep.subr.bf16.mxu0 %v6628_v33  ;;  %v3339_v33 = vpack.c.bf16 %v8233_v25, %v8224_v21  ;;  %v3869_v25 = vld [vmem:[#allocation16 + $0x10] sm:$0xff] }
 0x4f9   :  { %3163 = vmatpush1.bf16.msra.mxu0 %v6626_v11  ;;  %v6667_v11 = vld [vmem:[#allocation7 + $0x424] ss:$8 sps:$4 sm:$0xff]  }
 0x4fa   :  { %3164 = vmatprep.subr.bf16.mxu0 %v6631_v17  ;;  %v6665_v17 = vld [vmem:[#allocation7 + $0x420] ss:$8 sps:$4 sm:$0xff]  }
 0x4fd   :  { %3165 = vmatpush1.bf16.msra.mxu0 %v6629_v58  ;;  %v6679_v58 = vld [vmem:[#allocation7 + $0x464] ss:$8 sps:$4 sm:$0xff]  }
 0x4fe   :  { %3166 = vmatprep.subr.bf16.mxu0 %v6634_v16  ;;  %v6677_v16 = vld [vmem:[#allocation7 + $0x460] ss:$8 sps:$4 sm:$0xff]  }
 0x501   :  { %3167 = vmatpush1.bf16.msra.mxu0 %v6632_v14  ;;  %v6691_v14 = vld [vmem:[#allocation7 + $0x4a4] ss:$8 sps:$4 sm:$0xff]  }
 0x502   :  { %3168 = vmatprep.subr.bf16.mxu0 %v6637_v52  ;;  %v6689_v52 = vld [vmem:[#allocation7 + $0x4a0] ss:$8 sps:$4 sm:$0xff]  }
 0x505   :  { %3169 = vmatpush1.bf16.msra.mxu0 %v6635_v29  ;;  %v6694_v29 = vld [vmem:[#allocation7 + $0x4b4] ss:$8 sps:$4 sm:$0xff]  }
 0x506   :  { %3170 = vmatprep.subr.bf16.mxu0 %v6640_v36  ;;  %v6692_v36 = vld [vmem:[#allocation7 + $0x4b0] ss:$8 sps:$4 sm:$0xff]  }
 0x509   :  { %3171 = vmatpush1.bf16.msra.mxu0 %v6638_v27  ;;  %v6697_v27 = vld [vmem:[#allocation7 + $0x4c4] ss:$8 sps:$4 sm:$0xff]  }
 0x50a   :  { %3172 = vmatprep.subr.bf16.mxu0 %v6643_v53  ;;  %v6695_v53 = vld [vmem:[#allocation7 + $0x4c0] ss:$8 sps:$4 sm:$0xff]  }
 0x50d   :  { %3173 = vmatpush1.bf16.msra.mxu0 %v6641_v7  ;;  %v6700_v7 = vld [vmem:[#allocation7 + $0x4d4] ss:$8 sps:$4 sm:$0xff]  }
 0x50e   :  { %3174 = vmatprep.subr.bf16.mxu0 %v6646_v15  ;;  %v6698_v15 = vld [vmem:[#allocation7 + $0x4d0] ss:$8 sps:$4 sm:$0xff]  }
 0x511   :  { %3175 = vmatpush1.bf16.msra.mxu0 %v6644_v35  ;;  %v6703_v35 = vld [vmem:[#allocation7 + $0x4e4] ss:$8 sps:$4 sm:$0xff]  }
 0x512   :  { %3176 = vmatprep.subr.bf16.mxu0 %v6649_v50  ;;  %v6701_v50 = vld [vmem:[#allocation7 + $0x4e0] ss:$8 sps:$4 sm:$0xff]  }
 0x515   :  { %3177 = vmatpush1.bf16.msra.mxu0 %v6647_v39  ;;  %v6706_v39 = vld [vmem:[#allocation7 + $0x4f4] ss:$8 sps:$4 sm:$0xff]  }
 0x516   :  { %3178 = vmatprep.subr.bf16.mxu0 %v6652_v40  ;;  %v6704_v40 = vld [vmem:[#allocation7 + $0x4f0] ss:$8 sps:$4 sm:$0xff]  }
 0x519   :  { %3179 = vmatpush1.bf16.msra.mxu0 %v6650_v44  ;;  %v6709_v44 = vld [vmem:[#allocation7 + $0x504] ss:$8 sps:$4 sm:$0xff]  }
 0x51a   :  { %3180 = vmatprep.subr.bf16.mxu0 %v6655_v47  ;;  %v6707_v47 = vld [vmem:[#allocation7 + $0x500] ss:$8 sps:$4 sm:$0xff]  }
 0x51d   :  { %3181 = vmatpush1.bf16.msra.mxu0 %v6653_v49  ;;  %v6712_v49 = vld [vmem:[#allocation7 + $0x514] ss:$8 sps:$4 sm:$0xff]  }
 0x51e   :  { %3182 = vmatprep.subr.bf16.mxu0 %v6658_v19  ;;  %v6710_v19 = vld [vmem:[#allocation7 + $0x510] ss:$8 sps:$4 sm:$0xff]  }
 0x521   :  { %3183 = vmatpush1.bf16.msra.mxu0 %v6656_v6  ;;  %v6715_v6 = vld [vmem:[#allocation7 + $0x524] ss:$8 sps:$4 sm:$0xff]  }
 0x522   :  { %3725 = vmatprep.subr.bf16.mxu0 %v6661_v8  ;;  %v6713_v8 = vld [vmem:[#allocation7 + $0x520] ss:$8 sps:$4 sm:$0xff]  }
 0x524   :  { %3185 = vmatmul.mubr.bf16.vlgmr.msra.gmra.mrb[84].mxu0 %v2083_v13  ;;  %v6673_v13 = vld [vmem:[#allocation7 + $0x444] ss:$8 sps:$4 sm:$0xff]  }
 0x525   :  { %3194 = vmatprep.mubr.bf16.mxu0 %v2088_v41  ;;  %3726 = vmatpush1.bf16.msra.mxu0 %v6659_v31  ;;  %v6674_v41 = vld [vmem:[#allocation7 + $0x450] ss:$8 sps:$4 sm:$0xff]   ;;  %v6718_v31 = vld [vmem:[#allocation7 + $0x534] ss:$8 sps:$4 sm:$0xff]  }
 0x526   :  { %3727 = vmatprep.subr.bf16.mxu0 %v6664_v32  ;;  %v6716_v32 = vld [vmem:[#allocation7 + $0x530] ss:$8 sps:$4 sm:$0xff]  }
 0x529   :  { %3728 = vmatpush1.bf16.msra.mxu0 %v6662_v55  ;;  %v6739_v55 = vld [vmem:[#allocation7 + $0x5a4] ss:$8 sps:$4 sm:$0xff]  }
 0x52a   :  { %3729 = vmatprep.subr.bf16.mxu0 %v6667_v11  ;;  %v6737_v11 = vld [vmem:[#allocation7 + $0x5a0] ss:$8 sps:$4 sm:$0xff]  }
 0x52c   :  { %3195 = vmatmul.mubr.bf16.gmra.mrb[88].mxu0 %v2087_v43  ;;  %v6685_v43 = vld [vmem:[#allocation7 + $0x484] ss:$8 sps:$4 sm:$0xff]  }
 0x52d   :  { %3730 = vmatpush1.bf16.msra.mxu0 %v6665_v17  ;;  %3757 = vmatprep.mubr.bf16.mxu0 %v3333_v45  ;;  %v6686_v45 = vld [vmem:[#allocation7 + $0x490] ss:$8 sps:$4 sm:$0xff]   ;;  %v6742_v17 = vld [vmem:[#allocation7 + $0x5b4] ss:$8 sps:$4 sm:$0xff]  }
 0x52e   :  { %3731 = vmatprep.subr.bf16.mxu0 %v6670_v54  ;;  %v6740_v54 = vld [vmem:[#allocation7 + $0x5b0] ss:$8 sps:$4 sm:$0xff]  }
 0x531   :  { %3732 = vmatpush1.bf16.msra.mxu0 %v6668_v61  ;;  %v6745_v61 = vld [vmem:[#allocation7 + $0x5c4] ss:$8 sps:$4 sm:$0xff]  }
 0x532   :  { %3733 = vmatprep.subr.bf16.mxu0 %v6673_v13  ;;  %v6743_v13 = vld [vmem:[#allocation7 + $0x5c0] ss:$8 sps:$4 sm:$0xff]  }
 0x535   :  { %3734 = vmatpush1.bf16.msra.mxu0 %v6671_v57  ;;  %v6748_v57 = vld [vmem:[#allocation7 + $0x5d4] ss:$8 sps:$4 sm:$0xff]  }
 0x536   :  { %3735 = vmatprep.subr.bf16.mxu0 %v6676_v20  ;;  %v6746_v20 = vld [vmem:[#allocation7 + $0x5d0] ss:$8 sps:$4 sm:$0xff]  }
 0x539   :  { %3736 = vmatpush1.bf16.msra.mxu0 %v6674_v41  ;;  %v6751_v41 = vld [vmem:[#allocation7 + $0x5e4] ss:$8 sps:$4 sm:$0xff]  }
 0x53a   :  { %3737 = vmatprep.subr.bf16.mxu0 %v6679_v58  ;;  %v6749_v58 = vld [vmem:[#allocation7 + $0x5e0] ss:$8 sps:$4 sm:$0xff]  }
 0x53d   :  { %3738 = vmatpush1.bf16.msra.mxu0 %v6677_v16  ;;  %v6754_v16 = vld [vmem:[#allocation7 + $0x5f4] ss:$8 sps:$4 sm:$0xff]  }
 0x53e   :  { %3739 = vmatprep.subr.bf16.mxu0 %v6682_v46  ;;  %v6752_v46 = vld [vmem:[#allocation7 + $0x5f0] ss:$8 sps:$4 sm:$0xff]  }
 0x541   :  { %3740 = vmatpush1.bf16.msra.mxu0 %v6680_v38  ;;  %v3839_v38 = vld [vmem:[#allocation13] sm:$0x3] }
 0x542   :  { %3741 = vmatprep.subr.bf16.mxu0 %v6685_v43  ;;  %v3844_v43 = vrot.slane %v3839_v38, %v7860_v63 }
 0x545   :  { %3742 = vmatpush1.bf16.msra.mxu0 %v6683_v60  ;;  %v3848_v60 = vrot.slane %v3839_v38, %v7863_v2  ;;  %v6768_v38 = vld [vmem:[#allocation10 + $0x260] ss:$16 sps:$4 sm:$0xff]  }
 0x546   :  { %3743 = vmatprep.subr.bf16.mxu0 %v6688_v5 }
 0x549   :  { %3744 = vmatpush1.bf16.msra.mxu0 %v6686_v45 }
 0x54a   :  { %3745 = vmatprep.subr.bf16.mxu0 %v6691_v14 }
 0x54d   :  { %3746 = vmatpush1.bf16.msra.mxu0 %v6689_v52 }
 0x54e   :  { %3747 = vmatprep.subr.bf16.mxu0 %v6694_v29 }
 0x551   :  { %3748 = vmatpush1.bf16.msra.mxu0 %v6692_v36  ;;  %v3867_v36 = vld [vmem:[#allocation16] sm:$0xff] }
 0x552   :  { %3749 = vmatprep.subr.bf16.mxu0 %v6697_v27  ;;  %v3868_v27 = vld [vmem:[#allocation16 + $0x8] sm:$0xff] }
 0x555   :  { %3750 = vmatpush1.bf16.msra.mxu0 %v6695_v53 }
 0x556   :  { %3751 = vmatprep.subr.bf16.mxu0 %v6700_v7 }
 0x559   :  { %3752 = vmatpush1.bf16.msra.mxu0 %v6698_v15 }
 0x55a   :  { %3753 = vmatprep.subr.bf16.mxu0 %v6703_v35 }
 0x55d   :  { %3754 = vmatpush1.bf16.msra.mxu0 %v6701_v50 }
 0x55e   :  { %3755 = vmatprep.subr.bf16.mxu0 %v6706_v39 }
 0x561   :  { %3756 = vmatpush1.bf16.msra.mxu0 %v6704_v40 }
 0x562   :  { %3778 = vmatprep.subr.bf16.mxu0 %v6709_v44 }
 0x564   :  { %3758 = vmatmul.mubr.bf16.vlgmr.msra.gmra.mrb[84].mxu0 %v3332_v9  ;;  %v6724_v9 = vld [vmem:[#allocation7 + $0x554] ss:$8 sps:$4 sm:$0xff]  }
 0x565   :  { %3779 = vmatpush1.bf16.msra.mxu0 %v6707_v47  ;;  %3767 = vmatprep.mubr.bf16.mxu0 %v3337_v62  ;;  %v6725_v62 = vld [vmem:[#allocation7 + $0x560] ss:$8 sps:$4 sm:$0xff]  }
 0x566   :  { %3780 = vmatprep.subr.bf16.mxu0 %v6712_v49 }
 0x569   :  { %3781 = vmatpush1.bf16.msra.mxu0 %v6710_v19 }
 0x56a   :  { %3782 = vmatprep.subr.bf16.mxu0 %v6715_v6 }
 0x56c   :  { %3768 = vmatmul.mubr.bf16.gmra.mrb[88].mxu0 %v3336_v3  ;;  %v6733_v3 = vld [vmem:[#allocation7 + $0x584] ss:$8 sps:$4 sm:$0xff]  }
 0x56d   :  { %3783 = vmatpush1.bf16.msra.mxu0 %v6713_v8  ;;  %3810 = vmatprep.mubr.bf16.mxu0 %v3335_v10  ;;  %v6734_v10 = vld [vmem:[#allocation7 + $0x590] ss:$8 sps:$4 sm:$0xff]  }
 0x56e   :  { %3784 = vmatprep.subr.bf16.mxu0 %v6718_v31 }
 0x571   :  { %3785 = vmatpush1.bf16.msra.mxu0 %v6716_v32  ;;  %v3871_v32 = vld [vmem:[#allocation16 + $0x20] sm:$0xff] }
 0x572   :  { %3786 = vmatprep.subr.bf16.mxu0 %v6721_v24 }
 0x575   :  { %3787 = vmatpush1.bf16.msra.mxu0 %v6719_v1  ;;  %v3873_v1 = vld [vmem:[#allocation16 + $0x30] sm:$0xff] }
 0x576   :  { %3788 = vmatprep.subr.bf16.mxu0 %v6724_v9 }
 0x579   :  { %3789 = vmatpush1.bf16.msra.mxu0 %v6722_v22  ;;  %v3872_v22 = vld [vmem:[#allocation16 + $0x28] sm:$0xff] }
 0x57a   :  { %3790 = vmatprep.subr.bf16.mxu0 %v6727_v18 }
 0x57d   :  { %3791 = vmatpush1.bf16.msra.mxu0 %v6725_v62  ;;  %v3874_v62 = vld [vmem:[#allocation16 + $0x38] sm:$0xff] }
 0x57e   :  { %3792 = vmatprep.subr.bf16.mxu0 %v6730_v23 }
 0x581   :  { %3793 = vmatpush1.bf16.msra.mxu0 %v6728_v4 }
 0x582   :  { %3794 = vmatprep.subr.bf16.mxu0 %v6733_v3 }
 0x585   :  { %3795 = vmatpush1.bf16.msra.mxu0 %v6731_v51 }
 0x586   :  { %3796 = vmatprep.subr.bf16.mxu0 %v6736_v26 }
 0x589   :  { %3797 = vmatpush1.bf16.msra.mxu0 %v6734_v10 }
 0x58a   :  { %3798 = vmatprep.subr.bf16.mxu0 %v6739_v55 }
 0x58d   :  { %3799 = vmatpush1.bf16.msra.mxu0 %v6737_v11  ;;  %v6755_v11 = vld [vmem:[#allocation9] sm:$0xff]  }
 0x58e   :  { %3800 = vmatprep.subr.bf16.mxu0 %v6742_v17  ;;  %v6761_v17 = vld [vmem:[#allocation10 + $0x204] ss:$16 sps:$4 sm:$0xff]  }
 0x591   :  { %3801 = vmatpush1.bf16.msra.mxu0 %v6740_v54  ;;  %v6756_v54 = vld [vmem:[#allocation9 + $0x8] sm:$0xff]  }
 0x592   :  { %3802 = vmatprep.subr.bf16.mxu0 %v6745_v61  ;;  %v6757_v61 = vld [vmem:[#allocation9 + $0x10] sm:$0xff]  }
 0x595   :  { %3803 = vmatpush1.bf16.msra.mxu0 %v6743_v13  ;;  %v6759_v13 = vld [vmem:[#allocation10 + $0x200] ss:$16 sps:$4 sm:$0xff]  }
 0x596   :  { %3804 = vmatprep.subr.bf16.mxu0 %v6748_v57  ;;  %v6764_v57 = vld [vmem:[#allocation10 + $0x224] ss:$16 sps:$4 sm:$0xff]  }
 0x599   :  { %3805 = vmatpush1.bf16.msra.mxu0 %v6746_v20  ;;  %v6762_v20 = vld [vmem:[#allocation10 + $0x220] ss:$16 sps:$4 sm:$0xff]  }
 0x59a   :  { %3806 = vmatprep.subr.bf16.mxu0 %v6751_v41  ;;  %v6767_v41 = vld [vmem:[#allocation10 + $0x244] ss:$16 sps:$4 sm:$0xff]  }
 0x59d   :  { %3807 = vmatpush1.bf16.msra.mxu0 %v6749_v58  ;;  %v6758_v58 = vld [vmem:[#allocation9 + $0x18] sm:$0xff]  }
 0x59e   :  { %3808 = vmatprep.subr.bf16.mxu0 %v6754_v16  ;;  %v6765_v16 = vld [vmem:[#allocation10 + $0x240] ss:$16 sps:$4 sm:$0xff]  }
 0x5a1   :  { %3809 = vmatpush1.bf16.msra.mxu0 %v6752_v46  ;;  %v6770_v46 = vld [vmem:[#allocation10 + $0x264] ss:$16 sps:$4 sm:$0xff]  }
 0x5a4   :  { %3811 = vmatmul.mubr.bf16.vlgmr.msra.gmra.mrb[84].mxu0 %v3334_v37 }
 0x5a5   :  { %3820 = vmatprep.mubr.bf16.mxu0 %v3339_v33 }
 0x5ac   :  { %3821 = vmatmul.mubr.bf16.gmra.mrb[88].mxu0 %v3338_v42 }
 0x677   :  { %v3812_v5 = vpop.f32.mrb[84].mxu0 }
 0x678   :  { %v3851_v45 = vadd.f32 %v3844_v43, %v3812_v5  ;;  %v3814_v14 = vpop.f32.mrb[85].mxu0  ;;  %v6776_v5 = vld [vmem:[#allocation10 + $0x2a4] ss:$16 sps:$4 sm:$0xff]  }
 0x679   :  { %v3852_v52 = vadd.f32 %v3848_v60, %v3814_v14  ;;  %v3816_v29 = vpop.f32.mrb[86].mxu0  ;;  %v6779_v14 = vld [vmem:[#allocation10 + $0x2c4] ss:$16 sps:$4 sm:$0xff]  }
 0x67a   :  { %v3859_v56 = vmax.f32 %v3851_v45, 0.0  ;;  %v3853_v59 = vadd.f32 %v3844_v43, %v3816_v29  ;;  %v3818_v37 = vpop.f32.mrb[87].mxu0  ;;  %v6774_v45 = vld [vmem:[#allocation10 + $0x2a0] ss:$16 sps:$4 sm:$0xff]   ;;  %v6782_v29 = vld [vmem:[#allocation10 + $0x2e4] ss:$16 sps:$4 sm:$0xff]  }
 0x67b   :  { %v3860_v21 = vmax.f32 %v3852_v52, 0.0  ;;  %v3854_v33 = vadd.f32 %v3848_v60, %v3818_v37  ;;  %v6777_v52 = vld [vmem:[#allocation10 + $0x2c0] ss:$16 sps:$4 sm:$0xff]  }
 0x67c   :  { %v3861_v12 = vmax.f32 %v3853_v59, 0.0  ;;  %v3875_v53 = vmul.f32 %v3867_v36, %v3859_v56  ;;  %v6780_v56 = vld [vmem:[#allocation10 + $0x2e0] ss:$16 sps:$4 sm:$0xff]   ;;  %v6785_v59 = vld [vmem:[#allocation10 + $0x304] ss:$16 sps:$4 sm:$0xff]  }
 0x67d   :  { %v3862_v42 = vmax.f32 %v3854_v33, 0.0  ;;  %v3876_v15 = vmul.f32 %v3868_v27, %v3860_v21  ;;  %v6783_v37 = vld [vmem:[#allocation10 + $0x300] ss:$16 sps:$4 sm:$0xff]   ;;  %v6788_v36 = vld [vmem:[#allocation10 + $0x324] ss:$16 sps:$4 sm:$0xff]  }
 0x67e   :  { %v3877_v7 = vmul.f32 %v3869_v25, %v3861_v12  ;;  %v6786_v21 = vld [vmem:[#allocation10 + $0x320] ss:$16 sps:$4 sm:$0xff]   ;;  %v6791_v25 = vld [vmem:[#allocation10 + $0x344] ss:$16 sps:$4 sm:$0xff]  }
 0x67f   :  { %v3878_v35 = vmul.f32 %v3870_v48, %v3862_v42  ;;  %v3822_v50 = vpop.f32.mrb[88].mxu0  ;;  %v6789_v33 = vld [vmem:[#allocation10 + $0x340] ss:$16 sps:$4 sm:$0xff]   ;;  %v6794_v27 = vld [vmem:[#allocation10 + $0x364] ss:$16 sps:$4 sm:$0xff]  }
 0x680   :  { %v8269_v39 = vpack.c.bf16 %v3877_v7, %v3875_v53  ;;  %v3855_v40 = vadd.f32 %v3844_v43, %v3822_v50  ;;  %v3824_v44 = vpop.f32.mrb[89].mxu0  ;;  %v6792_v12 = vld [vmem:[#allocation10 + $0x360] ss:$16 sps:$4 sm:$0xff]   ;;  %v6797_v42 = vld [vmem:[#allocation10 + $0x384] ss:$16 sps:$4 sm:$0xff]  }
 0x681   :  { %v3856_v47 = vadd.f32 %v3848_v60, %v3824_v44  ;;  %v3826_v49 = vpop.f32.mrb[90].mxu0  ;;  %v8271_v19 = vpack.c.bf16 %v3878_v35, %v3876_v15  ;;  %v6795_v48 = vld [vmem:[#allocation10 + $0x380] ss:$16 sps:$4 sm:$0xff]   ;;  %v6800_v53 = vld [vmem:[#allocation10 + $0x3a4] ss:$16 sps:$4 sm:$0xff]  }
 0x682   :  { %v3863_v6 = vmax.f32 %v3855_v40, 0.0  ;;  %v3857_v8 = vadd.f32 %v3844_v43, %v3826_v49  ;;  %v3828_v31 = vpop.f32.mrb[91].mxu0  ;;  %v6773_v43 = vld [vmem:[#allocation10 + $0x284] ss:$16 sps:$4 sm:$0xff]   ;;  %v6798_v7 = vld [vmem:[#allocation10 + $0x3a0] ss:$16 sps:$4 sm:$0xff]  }
 0x683   :  { %v3864_v24 = vmax.f32 %v3856_v47, 0.0  ;;  %v3858_v9 = vadd.f32 %v3848_v60, %v3828_v31  ;;  %3907 = vmatprep.subr.bf16.mxu1 %v8271_v19  ;;  %v6771_v60 = vld [vmem:[#allocation10 + $0x280] ss:$16 sps:$4 sm:$0xff]   ;;  %v6803_v35 = vld [vmem:[#allocation10 + $0x3c4] ss:$16 sps:$4 sm:$0xff]  }
 0x684   :  { %v3865_v18 = vmax.f32 %v3857_v8, 0.0  ;;  %3908 = vmatpush1.bf16.msra.mxu1 %v8269_v39  ;;  %v3879_v4 = vmul.f32 %v3871_v32, %v3863_v6  ;;  %v6801_v15 = vld [vmem:[#allocation10 + $0x3c0] ss:$16 sps:$4 sm:$0xff]   ;;  %v6806_v50 = vld [vmem:[#allocation10 + $0x3e4] ss:$16 sps:$4 sm:$0xff]  }
 0x685   :  { %v3866_v23 = vmax.f32 %v3858_v9, 0.0  ;;  %v3880_v51 = vmul.f32 %v3872_v22, %v3864_v24  ;;  %v6804_v40 = vld [vmem:[#allocation10 + $0x3e0] ss:$16 sps:$4 sm:$0xff]   ;;  %v6809_v44 = vld [vmem:[#allocation10 + $0x20c] ss:$16 sps:$4 sm:$0xff]  }
 0x686   :  { %v3881_v3 = vmul.f32 %v3873_v1, %v3865_v18 }
 0x687   :  { %v3882_v26 = vmul.f32 %v3874_v62, %v3866_v23 }
 0x688   :  { %v8275_v10 = vpack.c.bf16 %v3881_v3, %v3879_v4 }
 0x689   :  { %v8277_v55 = vpack.c.bf16 %v3882_v26, %v3880_v51 }
 0x68b   :  { %3909 = vmatprep.subr.bf16.mxu1 %v8277_v55 }
 0x68c   :  { %3910 = vmatpush1.bf16.msra.mxu1 %v8275_v10 }
 0x68d   :  { %4049 = vmatprep.subr.bf16.mxu1 %v8271_v19 }
 0x68f   :  { %6020 = vmatmul.mubr.msk.bf16.vlgmr.msra.gmra.mrb[80].mxu1 %vm319_vm0, %v6755_v11 }
 0x690   :  { %4050 = vmatpush1.bf16.msra.mxu1 %v8269_v39  ;;  %3949 = vmatprep.mubr.bf16.mxu1 %v7299_v0 }
 0x691   :  { %4051 = vmatprep.subr.bf16.mxu1 %v8277_v55 }
 0x694   :  { %4052 = vmatpush1.bf16.msra.mxu1 %v8275_v10 }
 0x695   :  { %4491 = vmatprep.subr.bf16.mxu1 %v6761_v17  ;;  %v6807_v17 = vld [vmem:[#allocation10 + $0x208] ss:$16 sps:$4 sm:$0xff]  }
 0x697   :  { %6021 = vmatmul.mubr.msk.bf16.gmra.mrb[84].mxu1 %vm319_vm0, %v6756_v54  ;;  %v6812_v54 = vld [vmem:[#allocation10 + $0x22c] ss:$16 sps:$4 sm:$0xff]  }
 0x698   :  { %4081 = vmatprep.mubr.bf16.mxu1 %v7299_v0 }
 0x69f   :  { %6024 = vmatmul.mubr.msk.bf16.vlgmr.msra.gmra.mrb[88].mxu1 %vm319_vm0, %v6757_v61 }
 0x6a0   :  { %4091 = vmatprep.mubr.bf16.mxu1 %v7299_v0  ;;  %4492 = vmatpush1.bf16.msra.mxu1 %v6759_v13  ;;  %v6810_v13 = vld [vmem:[#allocation10 + $0x228] ss:$16 sps:$4 sm:$0xff]  }
 0x6a1   :  { %4493 = vmatprep.subr.bf16.mxu1 %v6764_v57 }
 0x6a4   :  { %4494 = vmatpush1.bf16.msra.mxu1 %v6762_v20  ;;  %v6815_v20 = vld [vmem:[#allocation10 + $0x24c] ss:$16 sps:$4 sm:$0xff]  }
 0x6a5   :  { %4495 = vmatprep.subr.bf16.mxu1 %v6767_v41 }
 0x6a7   :  { %6025 = vmatmul.mubr.msk.bf16.gmra.mrb[92].mxu1 %vm319_vm0, %v6758_v58 }
 0x6a8   :  { %4496 = vmatpush1.bf16.msra.mxu1 %v6765_v16 }
 0x6a9   :  { %4497 = vmatprep.subr.bf16.mxu1 %v6770_v46 }
 0x6ac   :  { %4498 = vmatpush1.bf16.msra.mxu1 %v6768_v38  ;;  %v6813_v38 = vld [vmem:[#allocation10 + $0x248] ss:$16 sps:$4 sm:$0xff]  }
 0x6ad   :  { %4499 = vmatprep.subr.bf16.mxu1 %v6773_v43  ;;  %v6818_v43 = vld [vmem:[#allocation10 + $0x26c] ss:$16 sps:$4 sm:$0xff]  }
 0x6b0   :  { %4500 = vmatpush1.bf16.msra.mxu1 %v6771_v60  ;;  %v6816_v60 = vld [vmem:[#allocation10 + $0x268] ss:$16 sps:$4 sm:$0xff]  }
 0x6b1   :  { %4501 = vmatprep.subr.bf16.mxu1 %v6776_v5  ;;  %v6821_v5 = vld [vmem:[#allocation10 + $0x28c] ss:$16 sps:$4 sm:$0xff]  }
 0x6b4   :  { %4502 = vmatpush1.bf16.msra.mxu1 %v6774_v45  ;;  %v6819_v45 = vld [vmem:[#allocation10 + $0x288] ss:$16 sps:$4 sm:$0xff]  }
 0x6b5   :  { %4503 = vmatprep.subr.bf16.mxu1 %v6779_v14  ;;  %v6824_v14 = vld [vmem:[#allocation10 + $0x2ac] ss:$16 sps:$4 sm:$0xff]  }
 0x6b8   :  { %4504 = vmatpush1.bf16.msra.mxu1 %v6777_v52  ;;  %v6822_v52 = vld [vmem:[#allocation10 + $0x2a8] ss:$16 sps:$4 sm:$0xff]  }
 0x6b9   :  { %4505 = vmatprep.subr.bf16.mxu1 %v6782_v29  ;;  %v6827_v29 = vld [vmem:[#allocation10 + $0x2cc] ss:$16 sps:$4 sm:$0xff]  }
 0x6bc   :  { %4506 = vmatpush1.bf16.msra.mxu1 %v6780_v56  ;;  %v6825_v56 = vld [vmem:[#allocation10 + $0x2c8] ss:$16 sps:$4 sm:$0xff]  }
 0x6bd   :  { %4507 = vmatprep.subr.bf16.mxu1 %v6785_v59  ;;  %v6830_v59 = vld [vmem:[#allocation10 + $0x2ec] ss:$16 sps:$4 sm:$0xff]  }
 0x6c0   :  { %4508 = vmatpush1.bf16.msra.mxu1 %v6783_v37  ;;  %v6828_v37 = vld [vmem:[#allocation10 + $0x2e8] ss:$16 sps:$4 sm:$0xff]  }
 0x6c1   :  { %4509 = vmatprep.subr.bf16.mxu1 %v6788_v36  ;;  %v6833_v36 = vld [vmem:[#allocation10 + $0x30c] ss:$16 sps:$4 sm:$0xff]  }
 0x6c4   :  { %4510 = vmatpush1.bf16.msra.mxu1 %v6786_v21  ;;  %v6831_v21 = vld [vmem:[#allocation10 + $0x308] ss:$16 sps:$4 sm:$0xff]  }
 0x6c5   :  { %4511 = vmatprep.subr.bf16.mxu1 %v6791_v25  ;;  %v6836_v25 = vld [vmem:[#allocation10 + $0x32c] ss:$16 sps:$4 sm:$0xff]  }
 0x6c8   :  { %4512 = vmatpush1.bf16.msra.mxu1 %v6789_v33  ;;  %v6834_v33 = vld [vmem:[#allocation10 + $0x328] ss:$16 sps:$4 sm:$0xff]  }
 0x6c9   :  { %4513 = vmatprep.subr.bf16.mxu1 %v6794_v27  ;;  %v6839_v27 = vld [vmem:[#allocation10 + $0x34c] ss:$16 sps:$4 sm:$0xff]  }
 0x6cc   :  { %4514 = vmatpush1.bf16.msra.mxu1 %v6792_v12  ;;  %v6837_v12 = vld [vmem:[#allocation10 + $0x348] ss:$16 sps:$4 sm:$0xff]  }
 0x6cd   :  { %4515 = vmatprep.subr.bf16.mxu1 %v6797_v42  ;;  %v6840_v42 = vld [vmem:[#allocation10 + $0x368] ss:$16 sps:$4 sm:$0xff]  }
 0x6d0   :  { %4516 = vmatpush1.bf16.msra.mxu1 %v6795_v48  ;;  %v6842_v48 = vld [vmem:[#allocation10 + $0x36c] ss:$16 sps:$4 sm:$0xff]  }
 0x6d1   :  { %4517 = vmatprep.subr.bf16.mxu1 %v6800_v53  ;;  %v6845_v53 = vld [vmem:[#allocation10 + $0x38c] ss:$16 sps:$4 sm:$0xff]  }
 0x6d4   :  { %4518 = vmatpush1.bf16.msra.mxu1 %v6798_v7  ;;  %v6843_v7 = vld [vmem:[#allocation10 + $0x388] ss:$16 sps:$4 sm:$0xff]  }
 0x6d5   :  { %4519 = vmatprep.subr.bf16.mxu1 %v6803_v35  ;;  %v6846_v35 = vld [vmem:[#allocation10 + $0x3a8] ss:$16 sps:$4 sm:$0xff]  }
 0x6d8   :  { %4520 = vmatpush1.bf16.msra.mxu1 %v6801_v15  ;;  %v6848_v15 = vld [vmem:[#allocation10 + $0x3ac] ss:$16 sps:$4 sm:$0xff]  }
 0x6d9   :  { %4521 = vmatprep.subr.bf16.mxu1 %v6806_v50  ;;  %v6851_v50 = vld [vmem:[#allocation10 + $0x3cc] ss:$16 sps:$4 sm:$0xff]  }
 0x6dc   :  { %4522 = vmatpush1.bf16.msra.mxu1 %v6804_v40  ;;  %v6849_v40 = vld [vmem:[#allocation10 + $0x3c8] ss:$16 sps:$4 sm:$0xff]  }
 0x6dd   :  { %4544 = vmatprep.subr.bf16.mxu1 %v6809_v44  ;;  %v6854_v44 = vld [vmem:[#allocation10 + $0x3ec] ss:$16 sps:$4 sm:$0xff]  }
 0x762   :  { %v3941_v47 = vpop.f32.mrb[80].mxu1 }
 0x763   :  { %v3943_v49 = vpop.f32.mrb[81].mxu1 }
 0x764   :  { %v3945_v6 = vpop.f32.mrb[82].mxu1 }
 0x765   :  { %v8292_v8 = vpack.c.bf16 %v3945_v6, %v3941_v47  ;;  %v3947_v31 = vpop.f32.mrb[83].mxu1  ;;  %v6852_v47 = vld [vmem:[#allocation10 + $0x3e8] ss:$16 sps:$4 sm:$0xff]   ;;  %v6855_v6 = vld [vmem:[#allocation10] ss:$16 sps:$4 sm:$0xff]  }
 0x766   :  { %v8294_v32 = vpack.c.bf16 %v3947_v31, %v3943_v49  ;;  %v6857_v49 = vld [vmem:[#allocation10 + $0x4] ss:$16 sps:$4 sm:$0xff]  }
 0x767   :  { %v6860_v31 = vld [vmem:[#allocation10 + $0x24] ss:$16 sps:$4 sm:$0xff]  }
 0x76a   :  { %v3951_v24 = vpop.f32.mrb[84].mxu1 }
 0x76b   :  { %v3953_v1 = vpop.f32.mrb[85].mxu1 }
 0x76c   :  { %v3955_v9 = vpop.f32.mrb[86].mxu1 }
 0x76d   :  { %v8296_v22 = vpack.c.bf16 %v3955_v9, %v3951_v24  ;;  %v3957_v18 = vpop.f32.mrb[87].mxu1  ;;  %v6858_v24 = vld [vmem:[#allocation10 + $0x20] ss:$16 sps:$4 sm:$0xff]  }
 0x76e   :  { %v8298_v62 = vpack.c.bf16 %v3957_v18, %v3953_v1  ;;  %v6863_v1 = vld [vmem:[#allocation10 + $0x44] ss:$16 sps:$4 sm:$0xff]   ;;  %v6861_v9 = vld [vmem:[#allocation10 + $0x40] ss:$16 sps:$4 sm:$0xff]  }
 0x76f   :  { %v6866_v18 = vld [vmem:[#allocation10 + $0x64] ss:$16 sps:$4 sm:$0xff]  }
 0x772   :  { %v4083_v23 = vpop.f32.mrb[88].mxu1 }
 0x773   :  { %v4085_v4 = vpop.f32.mrb[89].mxu1 }
 0x774   :  { %v4087_v3 = vpop.f32.mrb[90].mxu1 }
 0x775   :  { %v8300_v51 = vpack.c.bf16 %v4087_v3, %v4083_v23  ;;  %v4089_v26 = vpop.f32.mrb[91].mxu1  ;;  %v6864_v23 = vld [vmem:[#allocation10 + $0x60] ss:$16 sps:$4 sm:$0xff]  }
 0x776   :  { %v4103_v11 = vpack.c.bf16 %v4089_v26, %v4085_v4  ;;  %v6869_v4 = vld [vmem:[#allocation10 + $0x84] ss:$16 sps:$4 sm:$0xff]   ;;  %v6867_v3 = vld [vmem:[#allocation10 + $0x80] ss:$16 sps:$4 sm:$0xff]  }
 0x777   :  { %v6870_v26 = vld [vmem:[#allocation10 + $0xa0] ss:$16 sps:$4 sm:$0xff]  }
 0x778   :  { %4523 = vmatprep.mubr.bf16.mxu1 %v4103_v11 }
 0x779   :  { %4524 = vmatmul.mubr.bf16.vlgmr.msra.gmra.mrb[96].mxu1 %v8300_v51 }
 0x77a   :  { %4545 = vmatpush1.bf16.msra.mxu1 %v6807_v17  ;;  %v4093_v61 = vpop.f32.mrb[92].mxu1  ;;  %v6873_v17 = vld [vmem:[#allocation10 + $0xc0] ss:$16 sps:$4 sm:$0xff]  }
 0x77b   :  { %v4095_v57 = vpop.f32.mrb[93].mxu1  ;;  %4546 = vmatprep.subr.bf16.mxu1 %v6812_v54  ;;  %v6878_v54 = vld [vmem:[#allocation10 + $0xe4] ss:$16 sps:$4 sm:$0xff]  }
 0x77c   :  { %v4097_v41 = vpop.f32.mrb[94].mxu1 }
 0x77d   :  { %v8303_v58 = vpack.c.bf16 %v4097_v41, %v4093_v61  ;;  %v4099_v16 = vpop.f32.mrb[95].mxu1  ;;  %v6876_v61 = vld [vmem:[#allocation10 + $0xe0] ss:$16 sps:$4 sm:$0xff]  }
 0x77e   :  { %v8305_v46 = vpack.c.bf16 %v4099_v16, %v4095_v57  ;;  %4547 = vmatpush1.bf16.msra.mxu1 %v6810_v13  ;;  %v6881_v13 = vld [vmem:[#allocation10 + $0x104] ss:$16 sps:$4 sm:$0xff]   ;;  %v6879_v57 = vld [vmem:[#allocation10 + $0x100] ss:$16 sps:$4 sm:$0xff]  }
 0x77f   :  { %4548 = vmatprep.subr.bf16.mxu1 %v6815_v20  ;;  %v6884_v20 = vld [vmem:[#allocation10 + $0x124] ss:$16 sps:$4 sm:$0xff]   ;;  %v6882_v41 = vld [vmem:[#allocation10 + $0x120] ss:$16 sps:$4 sm:$0xff]  }
 0x780   :  { %4533 = vmatprep.mubr.bf16.mxu1 %v8305_v46  ;;  %v6885_v16 = vld [vmem:[#allocation10 + $0x140] ss:$16 sps:$4 sm:$0xff]  }
 0x781   :  { %4534 = vmatmul.mubr.bf16.gmra.mrb[100].mxu1 %v8303_v58 }
 0x782   :  { %4549 = vmatpush1.bf16.msra.mxu1 %v6813_v38  ;;  %4576 = vmatprep.mubr.bf16.mxu1 %v4103_v11  ;;  %v6875_v11 = vld [vmem:[#allocation10 + $0xc4] ss:$16 sps:$4 sm:$0xff]   ;;  %v6888_v38 = vld [vmem:[#allocation10 + $0x160] ss:$16 sps:$4 sm:$0xff]  }
 0x783   :  { %4550 = vmatprep.subr.bf16.mxu1 %v6818_v43  ;;  %v6893_v43 = vld [vmem:[#allocation10 + $0x184] ss:$16 sps:$4 sm:$0xff]  }
 0x786   :  { %4551 = vmatpush1.bf16.msra.mxu1 %v6816_v60  ;;  %v6891_v60 = vld [vmem:[#allocation10 + $0x180] ss:$16 sps:$4 sm:$0xff]  }
 0x787   :  { %4552 = vmatprep.subr.bf16.mxu1 %v6821_v5  ;;  %v6896_v5 = vld [vmem:[#allocation10 + $0x1a4] ss:$16 sps:$4 sm:$0xff]  }
 0x78a   :  { %4553 = vmatpush1.bf16.msra.mxu1 %v6819_v45  ;;  %v6894_v45 = vld [vmem:[#allocation10 + $0x1a0] ss:$16 sps:$4 sm:$0xff]  }
 0x78b   :  { %4554 = vmatprep.subr.bf16.mxu1 %v6824_v14  ;;  %v6899_v14 = vld [vmem:[#allocation10 + $0x1c4] ss:$16 sps:$4 sm:$0xff]  }
 0x78e   :  { %4555 = vmatpush1.bf16.msra.mxu1 %v6822_v52  ;;  %v6897_v52 = vld [vmem:[#allocation10 + $0x1c0] ss:$16 sps:$4 sm:$0xff]  }
 0x78f   :  { %4556 = vmatprep.subr.bf16.mxu1 %v6827_v29  ;;  %v6902_v29 = vld [vmem:[#allocation10 + $0x1e4] ss:$16 sps:$4 sm:$0xff]  }
 0x792   :  { %4557 = vmatpush1.bf16.msra.mxu1 %v6825_v56  ;;  %v6900_v56 = vld [vmem:[#allocation10 + $0x1e0] ss:$16 sps:$4 sm:$0xff]  }
 0x793   :  { %4558 = vmatprep.subr.bf16.mxu1 %v6830_v59  ;;  %v6905_v59 = vld [vmem:[#allocation10 + $0xc] ss:$16 sps:$4 sm:$0xff]  }
 0x796   :  { %4559 = vmatpush1.bf16.msra.mxu1 %v6828_v37  ;;  %v6903_v37 = vld [vmem:[#allocation10 + $0x8] ss:$16 sps:$4 sm:$0xff]  }
 0x797   :  { %4560 = vmatprep.subr.bf16.mxu1 %v6833_v36  ;;  %v6908_v36 = vld [vmem:[#allocation10 + $0x2c] ss:$16 sps:$4 sm:$0xff]  }
 0x79a   :  { %4561 = vmatpush1.bf16.msra.mxu1 %v6831_v21  ;;  %v6906_v21 = vld [vmem:[#allocation10 + $0x28] ss:$16 sps:$4 sm:$0xff]  }
 0x79b   :  { %4562 = vmatprep.subr.bf16.mxu1 %v6836_v25  ;;  %v6911_v25 = vld [vmem:[#allocation10 + $0x4c] ss:$16 sps:$4 sm:$0xff]  }
 0x79e   :  { %4563 = vmatpush1.bf16.msra.mxu1 %v6834_v33  ;;  %v6909_v33 = vld [vmem:[#allocation10 + $0x48] ss:$16 sps:$4 sm:$0xff]  }
 0x79f   :  { %4564 = vmatprep.subr.bf16.mxu1 %v6839_v27  ;;  %v6914_v27 = vld [vmem:[#allocation10 + $0x6c] ss:$16 sps:$4 sm:$0xff]  }
 0x7a2   :  { %4565 = vmatpush1.bf16.msra.mxu1 %v6837_v12  ;;  %v6912_v12 = vld [vmem:[#allocation10 + $0x68] ss:$16 sps:$4 sm:$0xff]  }
 0x7a3   :  { %4566 = vmatprep.subr.bf16.mxu1 %v6842_v48  ;;  %v6917_v48 = vld [vmem:[#allocation10 + $0x8c] ss:$16 sps:$4 sm:$0xff]  }
 0x7a6   :  { %4567 = vmatpush1.bf16.msra.mxu1 %v6840_v42  ;;  %v6915_v42 = vld [vmem:[#allocation10 + $0x88] ss:$16 sps:$4 sm:$0xff]  }
 0x7a7   :  { %4568 = vmatprep.subr.bf16.mxu1 %v6845_v53  ;;  %v6920_v53 = vld [vmem:[#allocation10 + $0xac] ss:$16 sps:$4 sm:$0xff]  }
 0x7aa   :  { %4569 = vmatpush1.bf16.msra.mxu1 %v6843_v7  ;;  %v6918_v7 = vld [vmem:[#allocation10 + $0xa8] ss:$16 sps:$4 sm:$0xff]  }
 0x7ab   :  { %4570 = vmatprep.subr.bf16.mxu1 %v6848_v15  ;;  %v6923_v15 = vld [vmem:[#allocation10 + $0xcc] ss:$16 sps:$4 sm:$0xff]  }
 0x7ae   :  { %4571 = vmatpush1.bf16.msra.mxu1 %v6846_v35  ;;  %v6921_v35 = vld [vmem:[#allocation10 + $0xc8] ss:$16 sps:$4 sm:$0xff]  }
 0x7af   :  { %4572 = vmatprep.subr.bf16.mxu1 %v6851_v50  ;;  %v6926_v50 = vld [vmem:[#allocation10 + $0xec] ss:$16 sps:$4 sm:$0xff]  }
 0x7b2   :  { %4573 = vmatpush1.bf16.msra.mxu1 %v6849_v40  ;;  %v6924_v40 = vld [vmem:[#allocation10 + $0xe8] ss:$16 sps:$4 sm:$0xff]  }
 0x7b3   :  { %4574 = vmatprep.subr.bf16.mxu1 %v6854_v44  ;;  %v6929_v44 = vld [vmem:[#allocation10 + $0x10c] ss:$16 sps:$4 sm:$0xff]  }
 0x7b6   :  { %4575 = vmatpush1.bf16.msra.mxu1 %v6852_v47  ;;  %v6932_v47 = vld [vmem:[#allocation10 + $0x12c] ss:$16 sps:$4 sm:$0xff]  }
 0x7b7   :  { %4917 = vmatprep.subr.bf16.mxu1 %v6857_v49  ;;  %v6930_v49 = vld [vmem:[#allocation10 + $0x128] ss:$16 sps:$4 sm:$0xff]  }
 0x7b9   :  { %4577 = vmatmul.mubr.bf16.vlgmr.msra.gmra.mrb[104].mxu1 %v8300_v51  ;;  %v6872_v51 = vld [vmem:[#allocation10 + $0xa4] ss:$16 sps:$4 sm:$0xff]  }
 0x7ba   :  { %4586 = vmatprep.mubr.bf16.mxu1 %v8305_v46  ;;  %4918 = vmatpush1.bf16.msra.mxu1 %v6855_v6  ;;  %v6890_v46 = vld [vmem:[#allocation10 + $0x164] ss:$16 sps:$4 sm:$0xff]   ;;  %v6935_v6 = vld [vmem:[#allocation10 + $0x14c] ss:$16 sps:$4 sm:$0xff]  }
 0x7bb   :  { %4919 = vmatprep.subr.bf16.mxu1 %v6860_v31  ;;  %v6933_v31 = vld [vmem:[#allocation10 + $0x148] ss:$16 sps:$4 sm:$0xff]  }
 0x7be   :  { %4920 = vmatpush1.bf16.msra.mxu1 %v6858_v24  ;;  %v6938_v24 = vld [vmem:[#allocation10 + $0x16c] ss:$16 sps:$4 sm:$0xff]  }
 0x7bf   :  { %4921 = vmatprep.subr.bf16.mxu1 %v6863_v1  ;;  %v6936_v1 = vld [vmem:[#allocation10 + $0x168] ss:$16 sps:$4 sm:$0xff]  }
 0x7c1   :  { %4587 = vmatmul.mubr.bf16.gmra.mrb[108].mxu1 %v8303_v58  ;;  %v6887_v58 = vld [vmem:[#allocation10 + $0x144] ss:$16 sps:$4 sm:$0xff]  }
 0x7c2   :  { %4922 = vmatpush1.bf16.msra.mxu1 %v6861_v9  ;;  %4949 = vmatprep.mubr.bf16.mxu1 %v8294_v32  ;;  %v6941_v9 = vld [vmem:[#allocation10 + $0x18c] ss:$16 sps:$4 sm:$0xff]  }
 0x7c3   :  { %4923 = vmatprep.subr.bf16.mxu1 %v6866_v18  ;;  %v6939_v18 = vld [vmem:[#allocation10 + $0x188] ss:$16 sps:$4 sm:$0xff]  }
 0x7c6   :  { %4924 = vmatpush1.bf16.msra.mxu1 %v6864_v23  ;;  %v6944_v23 = vld [vmem:[#allocation10 + $0x1ac] ss:$16 sps:$4 sm:$0xff]  }
 0x7c7   :  { %4925 = vmatprep.subr.bf16.mxu1 %v6869_v4  ;;  %v6942_v4 = vld [vmem:[#allocation10 + $0x1a8] ss:$16 sps:$4 sm:$0xff]  }
 0x7ca   :  { %4926 = vmatpush1.bf16.msra.mxu1 %v6867_v3  ;;  %v6947_v3 = vld [vmem:[#allocation10 + $0x1cc] ss:$16 sps:$4 sm:$0xff]  }
 0x7cb   :  { %4927 = vmatprep.subr.bf16.mxu1 %v6872_v51  ;;  %v6945_v51 = vld [vmem:[#allocation10 + $0x1c8] ss:$16 sps:$4 sm:$0xff]  }
 0x7ce   :  { %4928 = vmatpush1.bf16.msra.mxu1 %v6870_v26  ;;  %v6950_v26 = vld [vmem:[#allocation10 + $0x1ec] ss:$16 sps:$4 sm:$0xff]  }
 0x7cf   :  { %4929 = vmatprep.subr.bf16.mxu1 %v6875_v11  ;;  %v6948_v11 = vld [vmem:[#allocation10 + $0x1e8] ss:$16 sps:$4 sm:$0xff]  }
 0x7d2   :  { %4930 = vmatpush1.bf16.msra.mxu1 %v6873_v17  ;;  %v6955_v17 = vld [vmem:[#allocation10 + $0x404] ss:$16 sps:$4 sm:$0xff]  }
 0x7d3   :  { %4931 = vmatprep.subr.bf16.mxu1 %v6878_v54  ;;  %v6951_v54 = vld [vmem:[#allocation9 + $0x20] sm:$0xff]  }
 0x7d6   :  { %4932 = vmatpush1.bf16.msra.mxu1 %v6876_v61  ;;  %v6953_v61 = vld [vmem:[#allocation10 + $0x400] ss:$16 sps:$4 sm:$0xff]  }
 0x7d7   :  { %4933 = vmatprep.subr.bf16.mxu1 %v6881_v13  ;;  %v6958_v13 = vld [vmem:[#allocation10 + $0x424] ss:$16 sps:$4 sm:$0xff]  }
 0x7da   :  { %4934 = vmatpush1.bf16.msra.mxu1 %v6879_v57  ;;  %v6965_v57 = vld [vmem:[#allocation10 + $0x480] ss:$16 sps:$4 sm:$0xff]  }
 0x7db   :  { %4935 = vmatprep.subr.bf16.mxu1 %v6884_v20  ;;  %v6970_v20 = vld [vmem:[#allocation10 + $0x4a4] ss:$16 sps:$4 sm:$0xff]  }
 0x7de   :  { %4936 = vmatpush1.bf16.msra.mxu1 %v6882_v41  ;;  %v6973_v41 = vld [vmem:[#allocation10 + $0x4c4] ss:$16 sps:$4 sm:$0xff]  }
 0x7df   :  { %4937 = vmatprep.subr.bf16.mxu1 %v6887_v58  ;;  %v6971_v58 = vld [vmem:[#allocation10 + $0x4c0] ss:$16 sps:$4 sm:$0xff]  }
 0x7e2   :  { %4938 = vmatpush1.bf16.msra.mxu1 %v6885_v16  ;;  %v6976_v16 = vld [vmem:[#allocation10 + $0x4e4] ss:$16 sps:$4 sm:$0xff]  }
 0x7e3   :  { %4939 = vmatprep.subr.bf16.mxu1 %v6890_v46  ;;  %v6974_v46 = vld [vmem:[#allocation10 + $0x4e0] ss:$16 sps:$4 sm:$0xff]  }
 0x7e6   :  { %4940 = vmatpush1.bf16.msra.mxu1 %v6888_v38  ;;  %v6979_v38 = vld [vmem:[#allocation10 + $0x504] ss:$16 sps:$4 sm:$0xff]  }
 0x7e7   :  { %4941 = vmatprep.subr.bf16.mxu1 %v6893_v43  ;;  %v6977_v43 = vld [vmem:[#allocation10 + $0x500] ss:$16 sps:$4 sm:$0xff]  }
 0x7ea   :  { %4942 = vmatpush1.bf16.msra.mxu1 %v6891_v60  ;;  %v6982_v60 = vld [vmem:[#allocation10 + $0x524] ss:$16 sps:$4 sm:$0xff]  }
 0x7eb   :  { %4943 = vmatprep.subr.bf16.mxu1 %v6896_v5  ;;  %v6980_v5 = vld [vmem:[#allocation10 + $0x520] ss:$16 sps:$4 sm:$0xff]  }
 0x7ee   :  { %4944 = vmatpush1.bf16.msra.mxu1 %v6894_v45  ;;  %v6985_v45 = vld [vmem:[#allocation10 + $0x544] ss:$16 sps:$4 sm:$0xff]  }
 0x7ef   :  { %4945 = vmatprep.subr.bf16.mxu1 %v6899_v14  ;;  %v6983_v14 = vld [vmem:[#allocation10 + $0x540] ss:$16 sps:$4 sm:$0xff]  }
 0x7f2   :  { %4946 = vmatpush1.bf16.msra.mxu1 %v6897_v52  ;;  %v6988_v52 = vld [vmem:[#allocation10 + $0x564] ss:$16 sps:$4 sm:$0xff]  }
 0x7f3   :  { %4947 = vmatprep.subr.bf16.mxu1 %v6902_v29  ;;  %v6986_v29 = vld [vmem:[#allocation10 + $0x560] ss:$16 sps:$4 sm:$0xff]  }
 0x7f6   :  { %4948 = vmatpush1.bf16.msra.mxu1 %v6900_v56  ;;  %v6991_v56 = vld [vmem:[#allocation10 + $0x584] ss:$16 sps:$4 sm:$0xff]  }
 0x7f7   :  { %4970 = vmatprep.subr.bf16.mxu1 %v6905_v59  ;;  %v6989_v59 = vld [vmem:[#allocation10 + $0x580] ss:$16 sps:$4 sm:$0xff]  }
 0x7f9   :  { %4950 = vmatmul.mubr.bf16.vlgmr.msra.gmra.mrb[96].mxu1 %v8292_v8 }
 0x7fa   :  { %4959 = vmatprep.mubr.bf16.mxu1 %v8298_v62  ;;  %4971 = vmatpush1.bf16.msra.mxu1 %v6903_v37  ;;  %v6994_v37 = vld [vmem:[#allocation10 + $0x5a4] ss:$16 sps:$4 sm:$0xff]  }
 0x7fb   :  { %4972 = vmatprep.subr.bf16.mxu1 %v6908_v36  ;;  %v6992_v36 = vld [vmem:[#allocation10 + $0x5a0] ss:$16 sps:$4 sm:$0xff]  }
 0x7fe   :  { %4973 = vmatpush1.bf16.msra.mxu1 %v6906_v21  ;;  %v6997_v21 = vld [vmem:[#allocation10 + $0x5c4] ss:$16 sps:$4 sm:$0xff]  }
 0x7ff   :  { %4974 = vmatprep.subr.bf16.mxu1 %v6911_v25  ;;  %v6995_v25 = vld [vmem:[#allocation10 + $0x5c0] ss:$16 sps:$4 sm:$0xff]  }
 0x801   :  { %4960 = vmatmul.mubr.bf16.gmra.mrb[100].mxu1 %v8296_v22 }
 0x802   :  { %4975 = vmatpush1.bf16.msra.mxu1 %v6909_v33  ;;  %5002 = vmatprep.mubr.bf16.mxu1 %v8294_v32  ;;  %v6927_v32 = vld [vmem:[#allocation10 + $0x108] ss:$16 sps:$4 sm:$0xff]   ;;  %v7000_v33 = vld [vmem:[#allocation10 + $0x5e4] ss:$16 sps:$4 sm:$0xff]  }
 0x803   :  { %4976 = vmatprep.subr.bf16.mxu1 %v6914_v27  ;;  %v6998_v27 = vld [vmem:[#allocation10 + $0x5e0] ss:$16 sps:$4 sm:$0xff]  }
 0x806   :  { %4977 = vmatpush1.bf16.msra.mxu1 %v6912_v12  ;;  %v7003_v12 = vld [vmem:[#allocation10 + $0x40c] ss:$16 sps:$4 sm:$0xff]  }
 0x807   :  { %4978 = vmatprep.subr.bf16.mxu1 %v6917_v48 }
 0x80a   :  { %4979 = vmatpush1.bf16.msra.mxu1 %v6915_v42 }
 0x80b   :  { %4980 = vmatprep.subr.bf16.mxu1 %v6920_v53 }
 0x80e   :  { %4981 = vmatpush1.bf16.msra.mxu1 %v6918_v7 }
 0x80f   :  { %4982 = vmatprep.subr.bf16.mxu1 %v6923_v15 }
 0x812   :  { %4983 = vmatpush1.bf16.msra.mxu1 %v6921_v35 }
 0x813   :  { %4984 = vmatprep.subr.bf16.mxu1 %v6926_v50  ;;  %v7001_v50 = vld [vmem:[#allocation10 + $0x408] ss:$16 sps:$4 sm:$0xff]  }
 0x816   :  { %4985 = vmatpush1.bf16.msra.mxu1 %v6924_v40  ;;  %v7006_v40 = vld [vmem:[#allocation10 + $0x42c] ss:$16 sps:$4 sm:$0xff]  }
 0x817   :  { %4986 = vmatprep.subr.bf16.mxu1 %v6929_v44 }
 0x81a   :  { %4987 = vmatpush1.bf16.msra.mxu1 %v6927_v32  ;;  %v7004_v32 = vld [vmem:[#allocation10 + $0x428] ss:$16 sps:$4 sm:$0xff]  }
 0x81b   :  { %4988 = vmatprep.subr.bf16.mxu1 %v6932_v47 }
 0x81e   :  { %4989 = vmatpush1.bf16.msra.mxu1 %v6930_v49  ;;  %v7009_v49 = vld [vmem:[#allocation10 + $0x44c] ss:$16 sps:$4 sm:$0xff]  }
 0x81f   :  { %4990 = vmatprep.subr.bf16.mxu1 %v6935_v6 }
 0x822   :  { %4991 = vmatpush1.bf16.msra.mxu1 %v6933_v31 }
 0x823   :  { %4992 = vmatprep.subr.bf16.mxu1 %v6938_v24 }
 0x826   :  { %4993 = vmatpush1.bf16.msra.mxu1 %v6936_v1 }
 0x827   :  { %4994 = vmatprep.subr.bf16.mxu1 %v6941_v9  ;;  %v7007_v9 = vld [vmem:[#allocation10 + $0x448] ss:$16 sps:$4 sm:$0xff]  }
 0x82a   :  { %4995 = vmatpush1.bf16.msra.mxu1 %v6939_v18  ;;  %v7012_v18 = vld [vmem:[#allocation10 + $0x46c] ss:$16 sps:$4 sm:$0xff]  }
 0x82b   :  { %4996 = vmatprep.subr.bf16.mxu1 %v6944_v23  ;;  %v7010_v23 = vld [vmem:[#allocation10 + $0x468] ss:$16 sps:$4 sm:$0xff]  }
 0x82e   :  { %4997 = vmatpush1.bf16.msra.mxu1 %v6942_v4  ;;  %v7015_v4 = vld [vmem:[#allocation10 + $0x48c] ss:$16 sps:$4 sm:$0xff]  }
 0x82f   :  { %4998 = vmatprep.subr.bf16.mxu1 %v6947_v3  ;;  %v7013_v3 = vld [vmem:[#allocation10 + $0x488] ss:$16 sps:$4 sm:$0xff]  }
 0x832   :  { %4999 = vmatpush1.bf16.msra.mxu1 %v6945_v51  ;;  %v7018_v51 = vld [vmem:[#allocation10 + $0x4ac] ss:$16 sps:$4 sm:$0xff]  }
 0x833   :  { %5000 = vmatprep.subr.bf16.mxu1 %v6950_v26  ;;  %v7016_v26 = vld [vmem:[#allocation10 + $0x4a8] ss:$16 sps:$4 sm:$0xff]  }
 0x836   :  { %5001 = vmatpush1.bf16.msra.mxu1 %v6948_v11  ;;  %v7021_v11 = vld [vmem:[#allocation10 + $0x4cc] ss:$16 sps:$4 sm:$0xff]  }
 0x837   :  { %5044 = vmatprep.subr.bf16.mxu1 %v8271_v19  ;;  %v6956_v19 = vld [vmem:[#allocation10 + $0x420] ss:$16 sps:$4 sm:$0xff]  }
 0x839   :  { %5003 = vmatmul.mubr.bf16.vlgmr.msra.gmra.mrb[104].mxu1 %v8292_v8  ;;  %v6959_v8 = vld [vmem:[#allocation10 + $0x440] ss:$16 sps:$4 sm:$0xff]  }
 0x83a   :  { %5012 = vmatprep.mubr.bf16.mxu1 %v8298_v62  ;;  %5045 = vmatpush1.bf16.msra.mxu1 %v8269_v39  ;;  %v6961_v39 = vld [vmem:[#allocation10 + $0x444] ss:$16 sps:$4 sm:$0xff]  }
 0x83b   :  { %5046 = vmatprep.subr.bf16.mxu1 %v8277_v55  ;;  %v6952_v55 = vld [vmem:[#allocation9 + $0x28] sm:$0xff]   ;;  %v6967_v62 = vld [vmem:[#allocation10 + $0x484] ss:$16 sps:$4 sm:$0xff]  }
 0x83e   :  { %5047 = vmatpush1.bf16.msra.mxu1 %v8275_v10  ;;  %v6964_v10 = vld [vmem:[#allocation10 + $0x464] ss:$16 sps:$4 sm:$0xff]  }
 0x83f   :  { %5486 = vmatprep.subr.bf16.mxu1 %v6955_v17  ;;  %v7019_v17 = vld [vmem:[#allocation10 + $0x4c8] ss:$16 sps:$4 sm:$0xff]  }
 0x841   :  { %5013 = vmatmul.mubr.bf16.gmra.mrb[108].mxu1 %v8296_v22  ;;  %v6962_v22 = vld [vmem:[#allocation10 + $0x460] ss:$16 sps:$4 sm:$0xff]  }
 0x842   :  { %5076 = vmatprep.mubr.bf16.mxu1 %v7299_v0 }
 0x849   :  { %6156 = vmatmul.mubr.msk.bf16.vlgmr.msra.gmra.mrb[112].mxu1 %vm319_vm0, %v6951_v54  ;;  %v7024_v54 = vld [vmem:[#allocation10 + $0x4ec] ss:$16 sps:$4 sm:$0xff]  }
 0x84a   :  { %5086 = vmatprep.mubr.bf16.mxu1 %v7299_v0  ;;  %5487 = vmatpush1.bf16.msra.mxu1 %v6953_v61  ;;  %v6968_v0 = vld [vmem:[#allocation10 + $0x4a0] ss:$16 sps:$4 sm:$0xff]   ;;  %v7022_v61 = vld [vmem:[#allocation10 + $0x4e8] ss:$16 sps:$4 sm:$0xff]  }
 0x84b   :  { %5488 = vmatprep.subr.bf16.mxu1 %v6958_v13  ;;  %v7027_v13 = vld [vmem:[#allocation10 + $0x50c] ss:$16 sps:$4 sm:$0xff]  }
 0x84e   :  { %5489 = vmatpush1.bf16.msra.mxu1 %v6956_v19  ;;  %v7025_v19 = vld [vmem:[#allocation10 + $0x508] ss:$16 sps:$4 sm:$0xff]  }
 0x84f   :  { %5490 = vmatprep.subr.bf16.mxu1 %v6961_v39  ;;  %v7030_v39 = vld [vmem:[#allocation10 + $0x52c] ss:$16 sps:$4 sm:$0xff]  }
 0x851   :  { %6157 = vmatmul.mubr.msk.bf16.gmra.mrb[116].mxu1 %vm319_vm0, %v6952_v55  ;;  %v7028_v55 = vld [vmem:[#allocation10 + $0x528] ss:$16 sps:$4 sm:$0xff]  }
 0x852   :  { %5491 = vmatpush1.bf16.msra.mxu1 %v6959_v8  ;;  %v7033_v8 = vld [vmem:[#allocation10 + $0x54c] ss:$16 sps:$4 sm:$0xff]  }
 0x853   :  { %5492 = vmatprep.subr.bf16.mxu1 %v6964_v10  ;;  %v7031_v10 = vld [vmem:[#allocation10 + $0x548] ss:$16 sps:$4 sm:$0xff]  }
 0x856   :  { %5493 = vmatpush1.bf16.msra.mxu1 %v6962_v22  ;;  %v7036_v22 = vld [vmem:[#allocation10 + $0x56c] ss:$16 sps:$4 sm:$0xff]  }
 0x857   :  { %5494 = vmatprep.subr.bf16.mxu1 %v6967_v62  ;;  %v7034_v62 = vld [vmem:[#allocation10 + $0x568] ss:$16 sps:$4 sm:$0xff]  }
 0x85a   :  { %5495 = vmatpush1.bf16.msra.mxu1 %v6965_v57  ;;  %v7039_v57 = vld [vmem:[#allocation10 + $0x58c] ss:$16 sps:$4 sm:$0xff]  }
 0x85b   :  { %5496 = vmatprep.subr.bf16.mxu1 %v6970_v20  ;;  %v7037_v20 = vld [vmem:[#allocation10 + $0x588] ss:$16 sps:$4 sm:$0xff]  }
 0x85e   :  { %5497 = vmatpush1.bf16.msra.mxu1 %v6968_v0  ;;  %v7042_v0 = vld [vmem:[#allocation10 + $0x5ac] ss:$16 sps:$4 sm:$0xff]  }
 0x85f   :  { %5498 = vmatprep.subr.bf16.mxu1 %v6973_v41  ;;  %v7040_v41 = vld [vmem:[#allocation10 + $0x5a8] ss:$16 sps:$4 sm:$0xff]  }
 0x862   :  { %5499 = vmatpush1.bf16.msra.mxu1 %v6971_v58  ;;  %v7045_v58 = vld [vmem:[#allocation10 + $0x5cc] ss:$16 sps:$4 sm:$0xff]  }
 0x863   :  { %5500 = vmatprep.subr.bf16.mxu1 %v6976_v16  ;;  %v7043_v16 = vld [vmem:[#allocation10 + $0x5c8] ss:$16 sps:$4 sm:$0xff]  }
 0x866   :  { %5501 = vmatpush1.bf16.msra.mxu1 %v6974_v46  ;;  %v7048_v46 = vld [vmem:[#allocation10 + $0x5ec] ss:$16 sps:$4 sm:$0xff]  }
 0x867   :  { %5502 = vmatprep.subr.bf16.mxu1 %v6979_v38  ;;  %v7046_v38 = vld [vmem:[#allocation10 + $0x5e8] ss:$16 sps:$4 sm:$0xff]  }
 0x86a   :  { %5503 = vmatpush1.bf16.msra.mxu1 %v6977_v43  ;;  %v5608_v43 = vld [vmem:[#allocation15] sm:$0xf] }
 0x86b   :  { %5504 = vmatprep.subr.bf16.mxu1 %v6982_v60  ;;  %v5613_v60 = vrot.slane %v5608_v43, %v7860_v63 }
 0x86e   :  { %5505 = vmatpush1.bf16.msra.mxu1 %v6980_v5  ;;  %v5617_v5 = vrot.slane %v5608_v43, %v7863_v2 }
 0x86f   :  { %5506 = vmatprep.subr.bf16.mxu1 %v6985_v45 }
 0x872   :  { %5507 = vmatpush1.bf16.msra.mxu1 %v6983_v14 }
 0x873   :  { %5508 = vmatprep.subr.bf16.mxu1 %v6988_v52 }
 0x876   :  { %5509 = vmatpush1.bf16.msra.mxu1 %v6986_v29 }
 0x877   :  { %5510 = vmatprep.subr.bf16.mxu1 %v6991_v56 }
 0x87a   :  { %5511 = vmatpush1.bf16.msra.mxu1 %v6989_v59 }
 0x87b   :  { %5512 = vmatprep.subr.bf16.mxu1 %v6994_v37 }
 0x87e   :  { %5513 = vmatpush1.bf16.msra.mxu1 %v6992_v36 }
 0x87f   :  { %5514 = vmatprep.subr.bf16.mxu1 %v6997_v21 }
 0x882   :  { %5515 = vmatpush1.bf16.msra.mxu1 %v6995_v25 }
 0x883   :  { %5516 = vmatprep.subr.bf16.mxu1 %v7000_v33 }
 0x886   :  { %5517 = vmatpush1.bf16.msra.mxu1 %v6998_v27 }
 0x887   :  { %5539 = vmatprep.subr.bf16.mxu1 %v7003_v12 }
 0x91c   :  { %v5078_v48 = vpop.f32.mrb[112].mxu1 }
 0x91d   :  { %v5080_v42 = vpop.f32.mrb[113].mxu1 }
 0x91e   :  { %v5082_v53 = vpop.f32.mrb[114].mxu1 }
 0x91f   :  { %v8328_v7 = vpack.c.bf16 %v5082_v53, %v5078_v48  ;;  %v5084_v15 = vpop.f32.mrb[115].mxu1  ;;  %v5625_v53 = vrot.slane %v5608_v43, %v1538_v34 }
 0x920   :  { %v5098_v35 = vpack.c.bf16 %v5084_v15, %v5080_v42  ;;  %v5621_v42 = vrot.slane %v5608_v43, %v1534_v30 }
 0x922   :  { %5518 = vmatprep.mubr.bf16.mxu1 %v5098_v35 }
 0x923   :  { %5519 = vmatmul.mubr.bf16.vlgmr.msra.gmra.mrb[96].mxu1 %v8328_v7 }
 0x924   :  { %5540 = vmatpush1.bf16.msra.mxu1 %v7001_v50  ;;  %v5088_v44 = vpop.f32.mrb[116].mxu1 }
 0x925   :  { %v5090_v47 = vpop.f32.mrb[117].mxu1  ;;  %5541 = vmatprep.subr.bf16.mxu1 %v7006_v40 }
 0x926   :  { %v5092_v6 = vpop.f32.mrb[118].mxu1 }
 0x927   :  { %v8331_v31 = vpack.c.bf16 %v5092_v6, %v5088_v44  ;;  %v5094_v24 = vpop.f32.mrb[119].mxu1 }
 0x928   :  { %v5100_v1 = vpack.c.bf16 %v5094_v24, %v5090_v47  ;;  %5542 = vmatpush1.bf16.msra.mxu1 %v7004_v32 }
 0x929   :  { %5543 = vmatprep.subr.bf16.mxu1 %v7009_v49 }
 0x92a   :  { %5528 = vmatprep.mubr.bf16.mxu1 %v5100_v1 }
 0x92b   :  { %5529 = vmatmul.mubr.bf16.gmra.mrb[100].mxu1 %v8331_v31 }
 0x92c   :  { %5544 = vmatpush1.bf16.msra.mxu1 %v7007_v9  ;;  %5571 = vmatprep.mubr.bf16.mxu1 %v5098_v35 }
 0x92d   :  { %5545 = vmatprep.subr.bf16.mxu1 %v7012_v18 }
 0x930   :  { %5546 = vmatpush1.bf16.msra.mxu1 %v7010_v23 }
 0x931   :  { %5547 = vmatprep.subr.bf16.mxu1 %v7015_v4 }
 0x934   :  { %5548 = vmatpush1.bf16.msra.mxu1 %v7013_v3 }
 0x935   :  { %5549 = vmatprep.subr.bf16.mxu1 %v7018_v51 }
 0x938   :  { %5550 = vmatpush1.bf16.msra.mxu1 %v7016_v26 }
 0x939   :  { %5551 = vmatprep.subr.bf16.mxu1 %v7021_v11 }
 0x93c   :  { %5552 = vmatpush1.bf16.msra.mxu1 %v7019_v17 }
 0x93d   :  { %5553 = vmatprep.subr.bf16.mxu1 %v7024_v54 }
 0x940   :  { %5554 = vmatpush1.bf16.msra.mxu1 %v7022_v61 }
 0x941   :  { %5555 = vmatprep.subr.bf16.mxu1 %v7027_v13 }
 0x944   :  { %5556 = vmatpush1.bf16.msra.mxu1 %v7025_v19 }
 0x945   :  { %5557 = vmatprep.subr.bf16.mxu1 %v7030_v39 }
 0x948   :  { %5558 = vmatpush1.bf16.msra.mxu1 %v7028_v55 }
 0x949   :  { %5559 = vmatprep.subr.bf16.mxu1 %v7033_v8 }
 0x94c   :  { %5560 = vmatpush1.bf16.msra.mxu1 %v7031_v10 }
 0x94d   :  { %5561 = vmatprep.subr.bf16.mxu1 %v7036_v22 }
 0x950   :  { %5562 = vmatpush1.bf16.msra.mxu1 %v7034_v62 }
 0x951   :  { %5563 = vmatprep.subr.bf16.mxu1 %v7039_v57 }
 0x954   :  { %5564 = vmatpush1.bf16.msra.mxu1 %v7037_v20 }
 0x955   :  { %5565 = vmatprep.subr.bf16.mxu1 %v7042_v0 }
 0x958   :  { %5566 = vmatpush1.bf16.msra.mxu1 %v7040_v41 }
 0x959   :  { %5567 = vmatprep.subr.bf16.mxu1 %v7045_v58 }
 0x95c   :  { %5568 = vmatpush1.bf16.msra.mxu1 %v7043_v16 }
 0x95d   :  { %5569 = vmatprep.subr.bf16.mxu1 %v7048_v46 }
 0x960   :  { %5570 = vmatpush1.bf16.msra.mxu1 %v7046_v38 }
 0x963   :  { %5572 = vmatmul.mubr.bf16.vlgmr.msra.gmra.mrb[104].mxu1 %v8328_v7 }
 0x964   :  { %5581 = vmatprep.mubr.bf16.mxu1 %v5100_v1 }
 0x96b   :  { %5582 = vmatmul.mubr.bf16.gmra.mrb[108].mxu1 %v8331_v31 }
 0x9f6   :  { %v5520_v45 = vpop.f32.mrb[96].mxu1 }
 0x9f7   :  { %v5630_v14 = vadd.f32 %v5613_v60, %v5520_v45  ;;  %v5522_v52 = vpop.f32.mrb[97].mxu1 }
 0x9f8   :  { %v5631_v29 = vadd.f32 %v5617_v5, %v5522_v52  ;;  %v5524_v56 = vpop.f32.mrb[98].mxu1 }
 0x9f9   :  { %5646 = vst [vmem:[%s8401_s11] sm:$0xff] %v5630_v14  ;;  %v5634_v59 = vadd.f32 %v5613_v60, %v5524_v56  ;;  %v5526_v37 = vpop.f32.mrb[99].mxu1 }
 0x9fa   :  { %5647 = vst [vmem:[%s8401_s11 + $0x8] sm:$0xff] %v5631_v29  ;;  %v5635_v36 = vadd.f32 %v5617_v5, %v5526_v37 }
 0x9fb   :  { %5650 = vst [vmem:[%s8401_s11 + $0x20] sm:$0xff] %v5634_v59 }
 0x9fc   :  { %5651 = vst [vmem:[%s8401_s11 + $0x28] sm:$0xff] %v5635_v36 }
 0x9fe   :  { %v5530_v63 = vpop.f32.mrb[100].mxu1 }
 0x9ff   :  { %v5638_v2 = vadd.f32 %v5613_v60, %v5530_v63  ;;  %v5532_v21 = vpop.f32.mrb[101].mxu1 }
 0xa00   :  { %v5639_v25 = vadd.f32 %v5617_v5, %v5532_v21  ;;  %v5534_v33 = vpop.f32.mrb[102].mxu1 }
 0xa01   :  { %5654 = vst [vmem:[%s8401_s11 + $0x40] sm:$0xff] %v5638_v2  ;;  %v5642_v27 = vadd.f32 %v5613_v60, %v5534_v33  ;;  %v5536_v12 = vpop.f32.mrb[103].mxu1 }
 0xa02   :  { %5655 = vst [vmem:[%s8401_s11 + $0x48] sm:$0xff] %v5639_v25  ;;  %v5643_v48 = vadd.f32 %v5617_v5, %v5536_v12 }
 0xa03   :  { %5658 = vst [vmem:[%s8401_s11 + $0x60] sm:$0xff] %v5642_v27 }
 0xa04   :  { %5659 = vst [vmem:[%s8401_s11 + $0x68] sm:$0xff] %v5643_v48 }
 0xa36   :  { %v5573_v7 = vpop.f32.mrb[104].mxu1 }
 0xa37   :  { %v5632_v15 = vadd.f32 %v5621_v42, %v5573_v7  ;;  %v5575_v35 = vpop.f32.mrb[105].mxu1 }
 0xa38   :  { %v5633_v50 = vadd.f32 %v5625_v53, %v5575_v35  ;;  %v5577_v40 = vpop.f32.mrb[106].mxu1 }
 0xa39   :  { %5648 = vst [vmem:[%s8401_s11 + $0x10] sm:$0xff] %v5632_v15  ;;  %v5636_v44 = vadd.f32 %v5621_v42, %v5577_v40  ;;  %v5579_v32 = vpop.f32.mrb[107].mxu1 }
 0xa3a   :  { %5649 = vst [vmem:[%s8401_s11 + $0x18] sm:$0xff] %v5633_v50  ;;  %v5637_v47 = vadd.f32 %v5625_v53, %v5579_v32 }
 0xa3b   :  { %5652 = vst [vmem:[%s8401_s11 + $0x30] sm:$0xff] %v5636_v44 }
 0xa3c   :  { %5653 = vst [vmem:[%s8401_s11 + $0x38] sm:$0xff] %v5637_v47 }
 0xa3e   :  { %v5583_v28 = vpop.f32.mrb[108].mxu1 }
 0xa3f   :  { %v5640_v30 = vadd.f32 %v5621_v42, %v5583_v28  ;;  %v5585_v34 = vpop.f32.mrb[109].mxu1 }
 0xa40   :  { %v5641_v49 = vadd.f32 %v5625_v53, %v5585_v34  ;;  %v5587_v6 = vpop.f32.mrb[110].mxu1 }
 0xa41   :  { %5656 = vst [vmem:[%s8401_s11 + $0x50] sm:$0xff] %v5640_v30  ;;  %v5644_v31 = vadd.f32 %v5621_v42, %v5587_v6  ;;  %v5589_v24 = vpop.f32.mrb[111].mxu1 }
 0xa42   :  { %5657 = vst [vmem:[%s8401_s11 + $0x58] sm:$0xff] %v5641_v49  ;;  %v5645_v1 = vadd.f32 %v5625_v53, %v5589_v24 }
 0xa43   :  { %5660 = vst [vmem:[%s8401_s11 + $0x70] sm:$0xff] %v5644_v31 }
 0xa44   :  { %5661 = vst [vmem:[%s8401_s11 + $0x78] sm:$0xff] %v5645_v1 }
 0xa45   :  { %5666 = vsyncpa [#allocation3], 1 }
 0xa46   :  { %5667 = vsyncpa [#allocation5], 1 }
 0xa47   :  { %5668 = vsyncpa [#allocation8], 1 }
 0xa48   :  { %5669 = vsyncpa [#allocation11], 1 }
 0xa49   :  { %5670 = vsyncpa [#allocation14], 1 }
 0xa4a   :  { %5671 = vsyncpa [#allocation17], 1 }

</bundles_post_ra>
